<compile_context>
chip_gen: v7x
topology: tpu7x:2x2x1
jax: 0.10.0
libtpu: 0.0.40
codegen_flags: <defaults>
</compile_context>

<pallas_src>
import jax
import jax.numpy as jnp
from jax import lax
from jax.experimental import pallas as pl
from jax.experimental.pallas import tpu as pltpu

BN_EPS = 1e-5

# Set to jnp.bfloat16 for realistic channel counts (MXU is bf16-native on
# v5e/v6e/v7x); kept f32 here so the C=4/8 test matches the f32 reference.
MATMUL_DTYPE = jnp.float32


# ----------------------------- Pallas helpers --------------------------------

def _conv3x3(y, yp_ref, w_ref, cout):
    """3x3 / stride-1 / pad-1 conv of y:(Hh, Ww, C) against w_ref:(9C, cout).

    yp_ref is a (Hh+2, Ww+2, C) VMEM scratch whose 1-pixel halo is already
    zero; only the interior is (re)written.  The conv is 9 shifted-window
    accumulating MXU matmuls -- no (M, 9C) col buffer, no lane-offset scatter
    stores, no full-buffer zero fill."""
    hh, ww, c = y.shape
    yp_ref[1:hh + 1, 1:ww + 1, :] = y
    acc = jnp.zeros((hh * ww, cout), jnp.float32)
    for di in range(3):
        for dj in range(3):
            k = di * 3 + dj
            tap = yp_ref[di:di + hh, dj:dj + ww, :].reshape(hh * ww, c)
            acc = acc + jnp.dot(tap.astype(MATMUL_DTYPE),
                                w_ref[k * c:(k + 1) * c, :].astype(MATMUL_DTYPE),
                                preferred_element_type=jnp.float32)
    return acc                                            # (hh*ww, cout)


def _conv3x3_stride2(x_ref, s1, b1, ypar_ref, w_ref, ho, wo, cin, cout):
    """First conv of a stride-2 block, computed directly at the strided output
    positions (no full-resolution conv, no selection matmul).

    x_ref block shape is (1, 4, ho, wo, cin) holding the 4 parity planes
    x[a::2, b::2].  Tap (di, dj) of the stride-2 conv needs
    y1[2*oh + di - 1, 2*ow + dj - 1], which is exactly a (possibly 1-px
    shifted) BN1+ReLU'd parity plane (exact for k=3 / pad=1 / even H, W)."""
    # BN1 + ReLU each parity plane and park it (with a zero top/left halo) in
    # the scratch so shifted taps are plain static window reads.
    for a in range(2):
        for b in range(2):
            xpl = x_ref[0, 2 * a + b, :, :, :]            # (ho, wo, cin)
            ypar_ref[2 * a + b, 1:ho + 1, 1:wo + 1, :] = (
                jnp.maximum(xpl * s1 + b1, 0.0))
    acc = jnp.zeros((ho * wo, cout), jnp.float32)
    for di in range(3):
        a = (di + 1) % 2              # row parity of input row 2*oh + di - 1
        r0 = 0 if di == 0 else 1      # di == 0 needs the zero halo row on top
        for dj in range(3):
            b = (dj + 1) % 2
            c0 = 0 if dj == 0 else 1
            k = di * 3 + dj
            tap = ypar_ref[2 * a + b, r0:r0 + ho, c0:c0 + wo, :].reshape(
                ho * wo, cin)
            acc = acc + jnp.dot(tap.astype(MATMUL_DTYPE),
                                w_ref[k * cin:(k + 1) * cin, :].astype(MATMUL_DTYPE),
                                preferred_element_type=jnp.float32)
    return acc                                            # (ho*wo, cout)


def _make_stage_kernel(H, W, Cin, Cout, Ho, Wo, stride, block_cfgs):
    """Whole StageBlock (prune=None) for ONE batch element per grid step."""

    def kernel(*refs):
        it = iter(refs)
        x_ref = next(it)
        bparams = []
        for (_, _, proj_b) in block_cfgs:
            bparams.append([next(it) for _ in range(8 if proj_b else 6)])
        o_ref = next(it)
        yp0_ref = next(it)   # block-0 conv1 scratch (parity planes or padded y1)
        yp_ref = next(it)    # padded-y scratch shared by all Cout-channel convs

        # Zero ONLY the 1-pixel halos once per grid step; the interiors are
        # fully rewritten by every conv.
        if stride == 2:
            yp0_ref[:, 0:1, :, :] = jnp.zeros((4, 1, Wo + 1, Cin), jnp.float32)
            yp0_ref[:, :, 0:1, :] = jnp.zeros((4, Ho + 1, 1, Cin), jnp.float32)
        else:
            yp0_ref[0:1, :, :] = jnp.zeros((1, W + 2, Cin), jnp.float32)
            yp0_ref[H + 1:H + 2, :, :] = jnp.zeros((1, W + 2, Cin), jnp.float32)
            yp0_ref[:, 0:1, :] = jnp.zeros((H + 2, 1, Cin), jnp.float32)
            yp0_ref[:, W + 1:W + 2, :] = jnp.zeros((H + 2, 1, Cin), jnp.float32)
        yp_ref[0:1, :, :] = jnp.zeros((1, Wo + 2, Cout), jnp.float32)
        yp_ref[Ho + 1:Ho + 2, :, :] = jnp.zeros((1, Wo + 2, Cout), jnp.float32)
        yp_ref[:, 0:1, :] = jnp.zeros((Ho + 2, 1, Cout), jnp.float32)
        yp_ref[:, Wo + 1:Wo + 2, :] = jnp.zeros((Ho + 2, 1, Cout), jnp.float32)

        # ---------------- block 0 (may be strided / projected) ---------------
        cin0, s0, proj0 = block_cfgs[0]
        p = bparams[0]
        s1, b1, w1 = p[0][...], p[1][...], p[2]
        s2, b2, w2 = p[3][...], p[4][...], p[5]

        if s0 == 2:
            h1 = _conv3x3_stride2(x_ref, s1, b1, yp0_ref, w1, Ho, Wo, cin0, Cout)
            # 1x1 / stride-2 shortcut taps == even/even parity plane of x.
            x_sc = x_ref[0, 0, :, :, :].reshape(Ho * Wo, cin0)
        else:
            x0 = x_ref[...].reshape(H, W, cin0)
            y1 = jnp.maximum(x0 * s1 + b1, 0.0)
            h1 = _conv3x3(y1, yp0_ref, w1, Cout)
            x_sc = x0.reshape(H * W, cin0)

        y2 = jnp.maximum(h1.reshape(Ho, Wo, Cout) * s2 + b2, 0.0)
        h2 = _conv3x3(y2, yp_ref, w2, Cout)

        if proj0:
            ws, bs = p[6], p[7]
            sc = jnp.dot(x_sc.astype(MATMUL_DTYPE), ws[...].astype(MATMUL_DTYPE),
                         preferred_element_type=jnp.float32) + bs[...]
        else:
            sc = x_sc                                     # Cin == Cout, stride 1
        acc = h2 + sc                                     # (Ho*Wo, Cout)

        # -------------- blocks 1.. (stride 1, identity shortcut) -------------
        for bi in range(1, len(block_cfgs)):
            p = bparams[bi]
            s1, b1, w1 = p[0][...], p[1][...], p[2]
            s2, b2, w2 = p[3][...], p[4][...], p[5]
            y1 = jnp.maximum(acc.reshape(Ho, Wo, Cout) * s1 + b1, 0.0)
            h1 = _conv3x3(y1, yp_ref, w1, Cout)
            y2 = jnp.maximum(h1.reshape(Ho, Wo, Cout) * s2 + b2, 0.0)
            h2 = _conv3x3(y2, yp_ref, w2, Cout)
            acc = acc + h2                                # residual add

        # Channel-major, spatially flat output: minor (lane) dim is Ho*Wo, so
        # stores are much denser than Cout-minor, and NCHW is a pure reshape
        # in the wrapper (no XLA transpose epilogue).
        o_ref[...] = jnp.transpose(acc).reshape(1, Cout, Ho * Wo)

    return kernel


# ------------------------------ JAX wrappers ---------------------------------

def fused_stage(x_nhwc, blocks_params, stride):
    """Whole StageBlock.forward (prune=None) as one pallas_call."""
    N, H, W, Cin = x_nhwc.shape
    Cout = blocks_params[0]["conv1_w"].shape[-1]
    assert stride in (1, 2)
    if stride == 2:
        assert H % 2 == 0 and W % 2 == 0
        Ho, Wo = H // 2, W // 2
    else:
        Ho, Wo = H, W
    f32 = jnp.float32

    args, in_specs, block_cfgs = [], [], []

    if stride == 2:
        # Pre-split x into its 4 stride-2 parity planes (pure layout change,
        # once, in XLA): x_par[n, 2a+b, r, c, :] == x[n, 2r+a, 2c+b, :].
        x_par = x_nhwc.reshape(N, Ho, 2, Wo, 2, Cin).transpose(0, 2, 4, 1, 3, 5)
        args.append(x_par.reshape(N, 4, Ho, Wo, Cin).astype(f32))
        in_specs.append(pl.BlockSpec((1, 4, Ho, Wo, Cin),
                                     lambda n: (n, 0, 0, 0, 0)))
    else:
        args.append(x_nhwc.astype(f32))
        in_specs.append(pl.BlockSpec((1, H, W, Cin), lambda n: (n, 0, 0, 0)))

    # Grid-invariant operands (constant index_maps) stay resident across grid
    # steps; at these sizes they are tiny so default buffering is fine.
    for bi, p in enumerate(blocks_params):
        b_stride = stride if bi == 0 else 1
        cin_b = Cin if bi == 0 else Cout
        has_proj = (b_stride != 1) or (cin_b != Cout)
        block_cfgs.append((cin_b, b_stride, has_proj))
        args += [p["bn1_scale"].reshape(1, cin_b).astype(f32),
                 p["bn1_bias"].reshape(1, cin_b).astype(f32),
                 p["conv1_w"].reshape(9 * cin_b, Cout).astype(f32),
                 p["bn2_scale"].reshape(1, Cout).astype(f32),
                 p["bn2_bias"].reshape(1, Cout).astype(f32),
                 p["conv2_w"].reshape(9 * Cout, Cout).astype(f32)]
        in_specs += [pl.BlockSpec((1, cin_b), lambda n: (0, 0)),
                     pl.BlockSpec((1, cin_b), lambda n: (0, 0)),
                     pl.BlockSpec((9 * cin_b, Cout), lambda n: (0, 0)),
                     pl.BlockSpec((1, Cout), lambda n: (0, 0)),
                     pl.BlockSpec((1, Cout), lambda n: (0, 0)),
                     pl.BlockSpec((9 * Cout, Cout), lambda n: (0, 0))]
        if has_proj:
            args += [p["short_w"].astype(f32),
                     p["short_b"].reshape(1, Cout).astype(f32)]
            in_specs += [pl.BlockSpec((cin_b, Cout), lambda n: (0, 0)),
                         pl.BlockSpec((1, Cout), lambda n: (0, 0))]

    scratch_shapes = []
    if stride == 2:
        scratch_shapes.append(pltpu.VMEM((4, Ho + 1, Wo + 1, Cin), f32))
    else:
        scratch_shapes.append(pltpu.VMEM((H + 2, W + 2, Cin), f32))
    scratch_shapes.append(pltpu.VMEM((Ho + 2, Wo + 2, Cout), f32))

    kernel = _make_stage_kernel(H, W, Cin, Cout, Ho, Wo, stride, block_cfgs)
    out = pl.pallas_call(
        kernel,
        grid=(N,),
        out_shape=jax.ShapeDtypeStruct((N, Cout, Ho * Wo), f32),
        in_specs=in_specs,
        out_specs=pl.BlockSpec((1, Cout, Ho * Wo), lambda n: (n, 0, 0)),
        scratch_shapes=scratch_shapes,
        compiler_params=pltpu.CompilerParams(
            dimension_semantics=("parallel",),
            vmem_limit_bytes=32 * 1024 * 1024),
    )(*args)
    return out                                            # (N, Cout, Ho*Wo)


def stage_block_forward(x_nchw, blocks_params, stride):
    """StageBlock.forward (prune=None, bottleneck_factor=None)."""
    N, _, H, W = x_nchw.shape
    Cout = blocks_params[0]["conv1_w"].shape[-1]
    Ho = (H - 1) // stride + 1
    Wo = (W - 1) // stride + 1
    x = jnp.transpose(x_nchw, (0, 2, 3, 1))               # NCHW -> NHWC
    out = fused_stage(x, blocks_params, stride)            # (N, Cout, Ho*Wo)
    return out.reshape(N, Cout, Ho, Wo)                    # already NCHW-major


# ------------------------ deterministic parameter init -----------------------

def _bn_affine(keys, c):
    gamma = 1.0 + 0.1 * jax.random.normal(keys[0], (c,), jnp.float32)
    beta = 0.1 * jax.random.normal(keys[1], (c,), jnp.float32)
    mean = 0.1 * jax.random.normal(keys[2], (c,), jnp.float32)
    var = jax.random.uniform(keys[3], (c,), jnp.float32, 0.5, 1.5)
    scale = gamma / jnp.sqrt(var + BN_EPS)
    bias = beta - mean * scale
    return scale, bias


def init_preact_block(key, cin, cout, stride):
    keys = jax.random.split(key, 12)
    p = {}
    p["bn1_scale"], p["bn1_bias"] = _bn_affine(keys[0:4], cin)
    p["conv1_w"] = 0.1 * jax.random.normal(keys[4], (3, 3, cin, cout), jnp.float32)
    p["bn2_scale"], p["bn2_bias"] = _bn_affine(keys[5:9], cout)
    p["conv2_w"] = 0.1 * jax.random.normal(keys[9], (3, 3, cout, cout), jnp.float32)
    if stride != 1 or cin != cout:
        p["short_w"] = 0.1 * jax.random.normal(keys[10], (cin, cout), jnp.float32)
        p["short_b"] = 0.1 * jax.random.normal(keys[11], (cout,), jnp.float32)
    return p


# ------------------------------- reference -----------------------------------

def _block_reference(x, p, stride):
    def bn_relu(v, s, b):
        return jnp.maximum(v * s.reshape(1, 1, 1, -1) + b.reshape(1, 1, 1, -1), 0.0)
    cin, cout = x.shape[-1], p["conv1_w"].shape[-1]
    dn = ("NHWC", "HWIO", "NHWC")
    if stride == 1 and cin == cout:
        shortcut = x
    else:
        shortcut = lax.conv_general_dilated(
            x, p["short_w"].reshape(1, 1, cin, cout), (stride, stride), "VALID",
            dimension_numbers=dn) + p["short_b"].reshape(1, 1, 1, -1)
    out = lax.conv_general_dilated(
        bn_relu(x, p["bn1_scale"], p["bn1_bias"]), p["conv1_w"],
        (stride, stride), ((1, 1), (1, 1)), dimension_numbers=dn)
    out = lax.conv_general_dilated(
        bn_relu(out, p["bn2_scale"], p["bn2_bias"]), p["conv2_w"],
        (1, 1), ((1, 1), (1, 1)), dimension_numbers=dn)
    return out + shortcut


def _stage_reference(x_nchw, blocks_params, stride):
    x = jnp.transpose(x_nchw, (0, 2, 3, 1))
    for i, p in enumerate(blocks_params):
        x = _block_reference(x, p, stride if i == 0 else 1)
    return jnp.transpose(x, (0, 3, 1, 2))


# --------------------------------- main ---------------------------------------

if __name__ == "__main__":
    # StageBlock(num_block=2, in_channels=4, out_channels=8, stride=2,
    #            prune=None, bottleneck_factor=None)
    num_block, cin, cout, stride = 2, 4, 8, 2

    root = jax.random.PRNGKey(0)
    kx, kp = jax.random.split(root)
    x = jax.random.normal(kx, (2, cin, 16, 16), jnp.float32)  # NCHW like PyTorch

    pkeys = jax.random.split(kp, num_block)
    blocks_params = [init_preact_block(pkeys[0], cin, cout, stride)]
    for i in range(1, num_block):
        blocks_params.append(init_preact_block(pkeys[i], cout, cout, 1))

    out = jax.block_until_ready(stage_block_forward(x, blocks_params, stride))
    ref = jax.block_until_ready(_stage_reference(x, blocks_params, stride))

    assert out.shape == (2, cout, 8, 8), out.shape
    assert jnp.allclose(out, ref, atol=1e-4, rtol=1e-4), float(
        jnp.max(jnp.abs(out - ref)))

    print("KERNEL_OK")
</pallas_src>

<mosaic_0001>
module attributes {stable_mosaic.version = 11 : i64} {
  func.func @kernel(%arg0: i32, %arg1: memref<1x4x8x8x4xf32, #tpu.memory_space<vmem>>, %arg2: memref<1x4xf32, #tpu.memory_space<vmem>>, %arg3: memref<1x4xf32, #tpu.memory_space<vmem>>, %arg4: memref<36x8xf32, #tpu.memory_space<vmem>>, %arg5: memref<1x8xf32, #tpu.memory_space<vmem>>, %arg6: memref<1x8xf32, #tpu.memory_space<vmem>>, %arg7: memref<72x8xf32, #tpu.memory_space<vmem>>, %arg8: memref<4x8xf32, #tpu.memory_space<vmem>>, %arg9: memref<1x8xf32, #tpu.memory_space<vmem>>, %arg10: memref<1x8xf32, #tpu.memory_space<vmem>>, %arg11: memref<1x8xf32, #tpu.memory_space<vmem>>, %arg12: memref<72x8xf32, #tpu.memory_space<vmem>>, %arg13: memref<1x8xf32, #tpu.memory_space<vmem>>, %arg14: memref<1x8xf32, #tpu.memory_space<vmem>>, %arg15: memref<72x8xf32, #tpu.memory_space<vmem>>, %arg16: memref<1x8x64xf32, #tpu.memory_space<vmem>>, %arg17: memref<4x9x9x4xf32, #tpu.memory_space<vmem>>, %arg18: memref<10x10x8xf32, #tpu.memory_space<vmem>>) attributes {dimension_semantics = [#tpu.dimension_semantics<parallel>], iteration_bounds = array<i64: 2>, scalar_prefetch = 0 : i64, scratch_operands = 2 : i64, tpu.core_type = #tpu.core_type<tc>, window_params = [{transform_indices = @transform_0, window_bounds = array<i64: 1, 4, 8, 8, 4>}, {pipeline_mode = #tpu.pipeline_mode<synchronous>, transform_indices = @transform_1, window_bounds = array<i64: 1, 4>}, {pipeline_mode = #tpu.pipeline_mode<synchronous>, transform_indices = @transform_2, window_bounds = array<i64: 1, 4>}, {pipeline_mode = #tpu.pipeline_mode<synchronous>, transform_indices = @transform_3, window_bounds = array<i64: 36, 8>}, {pipeline_mode = #tpu.pipeline_mode<synchronous>, transform_indices = @transform_4, window_bounds = array<i64: 1, 8>}, {pipeline_mode = #tpu.pipeline_mode<synchronous>, transform_indices = @transform_5, window_bounds = array<i64: 1, 8>}, {pipeline_mode = #tpu.pipeline_mode<synchronous>, transform_indices = @transform_6, window_bounds = array<i64: 72, 8>}, {pipeline_mode = #tpu.pipeline_mode<synchronous>, transform_indices = @transform_7, window_bounds = array<i64: 4, 8>}, {pipeline_mode = #tpu.pipeline_mode<synchronous>, transform_indices = @transform_8, window_bounds = array<i64: 1, 8>}, {pipeline_mode = #tpu.pipeline_mode<synchronous>, transform_indices = @transform_9, window_bounds = array<i64: 1, 8>}, {pipeline_mode = #tpu.pipeline_mode<synchronous>, transform_indices = @transform_10, window_bounds = array<i64: 1, 8>}, {pipeline_mode = #tpu.pipeline_mode<synchronous>, transform_indices = @transform_11, window_bounds = array<i64: 72, 8>}, {pipeline_mode = #tpu.pipeline_mode<synchronous>, transform_indices = @transform_12, window_bounds = array<i64: 1, 8>}, {pipeline_mode = #tpu.pipeline_mode<synchronous>, transform_indices = @transform_13, window_bounds = array<i64: 1, 8>}, {pipeline_mode = #tpu.pipeline_mode<synchronous>, transform_indices = @transform_14, window_bounds = array<i64: 72, 8>}, {transform_indices = @transform_15, window_bounds = array<i64: 1, 8, 64>}]} {
    %cst = arith.constant 0.000000e+00 : f32
    %0 = vector.broadcast %cst : f32 to vector<4x1x9x4xf32>
    %c0 = arith.constant 0 : index
    %c0_0 = arith.constant 0 : index
    %c0_1 = arith.constant 0 : index
    %c0_2 = arith.constant 0 : index
    %1 = vector.load %arg17[%c0, %c0_0, %c0_1, %c0_2] : memref<4x9x9x4xf32, #tpu.memory_space<vmem>>, vector<4x1x9x4xf32>
    tpu.vector_store %arg17[%c0, %c0_0, %c0_1, %c0_2], %0 {strides = array<i32>} : memref<4x9x9x4xf32, #tpu.memory_space<vmem>>, vector<4x1x9x4xf32>,
    %cst_3 = arith.constant 0.000000e+00 : f32
    %2 = vector.broadcast %cst_3 : f32 to vector<4x9x1x4xf32>
    %c0_4 = arith.constant 0 : index
    %c0_5 = arith.constant 0 : index
    %c0_6 = arith.constant 0 : index
    %c0_7 = arith.constant 0 : index
    %3 = vector.load %arg17[%c0_4, %c0_5, %c0_6, %c0_7] : memref<4x9x9x4xf32, #tpu.memory_space<vmem>>, vector<4x9x1x4xf32>
    tpu.vector_store %arg17[%c0_4, %c0_5, %c0_6, %c0_7], %2 {strides = array<i32>} : memref<4x9x9x4xf32, #tpu.memory_space<vmem>>, vector<4x9x1x4xf32>,
    %cst_8 = arith.constant 0.000000e+00 : f32
    %4 = vector.broadcast %cst_8 : f32 to vector<1x10x8xf32>
    %c0_9 = arith.constant 0 : index
    %c0_10 = arith.constant 0 : index
    %c0_11 = arith.constant 0 : index
    %5 = vector.load %arg18[%c0_9, %c0_10, %c0_11] : memref<10x10x8xf32, #tpu.memory_space<vmem>>, vector<1x10x8xf32>
    tpu.vector_store %arg18[%c0_9, %c0_10, %c0_11], %4 {strides = array<i32>} : memref<10x10x8xf32, #tpu.memory_space<vmem>>, vector<1x10x8xf32>,
    %cst_12 = arith.constant 0.000000e+00 : f32
    %6 = vector.broadcast %cst_12 : f32 to vector<1x10x8xf32>
    %c9 = arith.constant 9 : index
    %c0_13 = arith.constant 0 : index
    %c0_14 = arith.constant 0 : index
    %7 = vector.load %arg18[%c9, %c0_13, %c0_14] : memref<10x10x8xf32, #tpu.memory_space<vmem>>, vector<1x10x8xf32>
    tpu.vector_store %arg18[%c9, %c0_13, %c0_14], %6 {strides = array<i32>} : memref<10x10x8xf32, #tpu.memory_space<vmem>>, vector<1x10x8xf32>,
    %cst_15 = arith.constant 0.000000e+00 : f32
    %8 = vector.broadcast %cst_15 : f32 to vector<10x1x8xf32>
    %c0_16 = arith.constant 0 : index
    %c0_17 = arith.constant 0 : index
    %c0_18 = arith.constant 0 : index
    %9 = vector.load %arg18[%c0_16, %c0_17, %c0_18] : memref<10x10x8xf32, #tpu.memory_space<vmem>>, vector<10x1x8xf32>
    tpu.vector_store %arg18[%c0_16, %c0_17, %c0_18], %8 {strides = array<i32>} : memref<10x10x8xf32, #tpu.memory_space<vmem>>, vector<10x1x8xf32>,
    %cst_19 = arith.constant 0.000000e+00 : f32
    %10 = vector.broadcast %cst_19 : f32 to vector<10x1x8xf32>
    %c0_20 = arith.constant 0 : index
    %c9_21 = arith.constant 9 : index
    %c0_22 = arith.constant 0 : index
    %11 = vector.load %arg18[%c0_20, %c9_21, %c0_22] : memref<10x10x8xf32, #tpu.memory_space<vmem>>, vector<10x1x8xf32>
    tpu.vector_store %arg18[%c0_20, %c9_21, %c0_22], %10 {strides = array<i32>} : memref<10x10x8xf32, #tpu.memory_space<vmem>>, vector<10x1x8xf32>,
    %c0_23 = arith.constant 0 : index
    %c0_24 = arith.constant 0 : index
    %12 = vector.load %arg2[%c0_23, %c0_24] : memref<1x4xf32, #tpu.memory_space<vmem>>, vector<1x4xf32>
    %c0_25 = arith.constant 0 : index
    %c0_26 = arith.constant 0 : index
    %13 = vector.load %arg3[%c0_25, %c0_26] : memref<1x4xf32, #tpu.memory_space<vmem>>, vector<1x4xf32>
    %c0_27 = arith.constant 0 : index
    %c0_28 = arith.constant 0 : index
    %14 = vector.load %arg5[%c0_27, %c0_28] : memref<1x8xf32, #tpu.memory_space<vmem>>, vector<1x8xf32>
    %c0_29 = arith.constant 0 : index
    %c0_30 = arith.constant 0 : index
    %15 = vector.load %arg6[%c0_29, %c0_30] : memref<1x8xf32, #tpu.memory_space<vmem>>, vector<1x8xf32>
    %c0_31 = arith.constant 0 : index
    %c0_32 = arith.constant 0 : index
    %c0_33 = arith.constant 0 : index
    %c0_34 = arith.constant 0 : index
    %c0_35 = arith.constant 0 : index
    %16 = vector.load %arg1[%c0_31, %c0_32, %c0_33, %c0_34, %c0_35] : memref<1x4x8x8x4xf32, #tpu.memory_space<vmem>>, vector<1x1x8x8x4xf32>
    %17 = vector.shape_cast %16 : vector<1x1x8x8x4xf32> to vector<8x8x4xf32>
    %18 = vector.shape_cast %12 : vector<1x4xf32> to vector<1x1x4xf32>
    %19 = vector.broadcast %18 : vector<1x1x4xf32> to vector<8x8x4xf32>
    %20 = arith.mulf %17, %19 : vector<8x8x4xf32>
    %21 = vector.shape_cast %13 : vector<1x4xf32> to vector<1x1x4xf32>
    %22 = vector.broadcast %21 : vector<1x1x4xf32> to vector<8x8x4xf32>
    %23 = arith.addf %20, %22 : vector<8x8x4xf32>
    %cst_36 = arith.constant 0.000000e+00 : f32
    %24 = vector.broadcast %cst_36 : f32 to vector<8x8x4xf32>
    %25 = arith.maximumf %23, %24 : vector<8x8x4xf32>
    %c0_37 = arith.constant 0 : index
    %c1 = arith.constant 1 : index
    %c1_38 = arith.constant 1 : index
    %c0_39 = arith.constant 0 : index
    %26 = vector.load %arg17[%c0_37, %c1, %c1_38, %c0_39] : memref<4x9x9x4xf32, #tpu.memory_space<vmem>>, vector<1x8x8x4xf32>
    %27 = vector.shape_cast %26 : vector<1x8x8x4xf32> to vector<8x8x4xf32>
    %28 = vector.shape_cast %25 : vector<8x8x4xf32> to vector<1x8x8x4xf32>
    tpu.vector_store %arg17[%c0_37, %c1, %c1_38, %c0_39], %28 {strides = array<i32>} : memref<4x9x9x4xf32, #tpu.memory_space<vmem>>, vector<1x8x8x4xf32>,
    %c0_40 = arith.constant 0 : index
    %c1_41 = arith.constant 1 : index
    %c0_42 = arith.constant 0 : index
    %c0_43 = arith.constant 0 : index
    %c0_44 = arith.constant 0 : index
    %29 = vector.load %arg1[%c0_40, %c1_41, %c0_42, %c0_43, %c0_44] : memref<1x4x8x8x4xf32, #tpu.memory_space<vmem>>, vector<1x1x8x8x4xf32>
    %30 = vector.shape_cast %29 : vector<1x1x8x8x4xf32> to vector<8x8x4xf32>
    %31 = vector.shape_cast %12 : vector<1x4xf32> to vector<1x1x4xf32>
    %32 = vector.broadcast %31 : vector<1x1x4xf32> to vector<8x8x4xf32>
    %33 = arith.mulf %30, %32 : vector<8x8x4xf32>
    %34 = vector.shape_cast %13 : vector<1x4xf32> to vector<1x1x4xf32>
    %35 = vector.broadcast %34 : vector<1x1x4xf32> to vector<8x8x4xf32>
    %36 = arith.addf %33, %35 : vector<8x8x4xf32>
    %cst_45 = arith.constant 0.000000e+00 : f32
    %37 = vector.broadcast %cst_45 : f32 to vector<8x8x4xf32>
    %38 = arith.maximumf %36, %37 : vector<8x8x4xf32>
    %c1_46 = arith.constant 1 : index
    %c1_47 = arith.constant 1 : index
    %c1_48 = arith.constant 1 : index
    %c0_49 = arith.constant 0 : index
    %39 = vector.load %arg17[%c1_46, %c1_47, %c1_48, %c0_49] : memref<4x9x9x4xf32, #tpu.memory_space<vmem>>, vector<1x8x8x4xf32>
    %40 = vector.shape_cast %39 : vector<1x8x8x4xf32> to vector<8x8x4xf32>
    %41 = vector.shape_cast %38 : vector<8x8x4xf32> to vector<1x8x8x4xf32>
    tpu.vector_store %arg17[%c1_46, %c1_47, %c1_48, %c0_49], %41 {strides = array<i32>} : memref<4x9x9x4xf32, #tpu.memory_space<vmem>>, vector<1x8x8x4xf32>,
    %c0_50 = arith.constant 0 : index
    %c2 = arith.constant 2 : index
    %c0_51 = arith.constant 0 : index
    %c0_52 = arith.constant 0 : index
    %c0_53 = arith.constant 0 : index
    %42 = vector.load %arg1[%c0_50, %c2, %c0_51, %c0_52, %c0_53] : memref<1x4x8x8x4xf32, #tpu.memory_space<vmem>>, vector<1x1x8x8x4xf32>
    %43 = vector.shape_cast %42 : vector<1x1x8x8x4xf32> to vector<8x8x4xf32>
    %44 = vector.shape_cast %12 : vector<1x4xf32> to vector<1x1x4xf32>
    %45 = vector.broadcast %44 : vector<1x1x4xf32> to vector<8x8x4xf32>
    %46 = arith.mulf %43, %45 : vector<8x8x4xf32>
    %47 = vector.shape_cast %13 : vector<1x4xf32> to vector<1x1x4xf32>
    %48 = vector.broadcast %47 : vector<1x1x4xf32> to vector<8x8x4xf32>
    %49 = arith.addf %46, %48 : vector<8x8x4xf32>
    %cst_54 = arith.constant 0.000000e+00 : f32
    %50 = vector.broadcast %cst_54 : f32 to vector<8x8x4xf32>
    %51 = arith.maximumf %49, %50 : vector<8x8x4xf32>
    %c2_55 = arith.constant 2 : index
    %c1_56 = arith.constant 1 : index
    %c1_57 = arith.constant 1 : index
    %c0_58 = arith.constant 0 : index
    %52 = vector.load %arg17[%c2_55, %c1_56, %c1_57, %c0_58] : memref<4x9x9x4xf32, #tpu.memory_space<vmem>>, vector<1x8x8x4xf32>
    %53 = vector.shape_cast %52 : vector<1x8x8x4xf32> to vector<8x8x4xf32>
    %54 = vector.shape_cast %51 : vector<8x8x4xf32> to vector<1x8x8x4xf32>
    tpu.vector_store %arg17[%c2_55, %c1_56, %c1_57, %c0_58], %54 {strides = array<i32>} : memref<4x9x9x4xf32, #tpu.memory_space<vmem>>, vector<1x8x8x4xf32>,
    %c0_59 = arith.constant 0 : index
    %c3 = arith.constant 3 : index
    %c0_60 = arith.constant 0 : index
    %c0_61 = arith.constant 0 : index
    %c0_62 = arith.constant 0 : index
    %55 = vector.load %arg1[%c0_59, %c3, %c0_60, %c0_61, %c0_62] : memref<1x4x8x8x4xf32, #tpu.memory_space<vmem>>, vector<1x1x8x8x4xf32>
    %56 = vector.shape_cast %55 : vector<1x1x8x8x4xf32> to vector<8x8x4xf32>
    %57 = vector.shape_cast %12 : vector<1x4xf32> to vector<1x1x4xf32>
    %58 = vector.broadcast %57 : vector<1x1x4xf32> to vector<8x8x4xf32>
    %59 = arith.mulf %56, %58 : vector<8x8x4xf32>
    %60 = vector.shape_cast %13 : vector<1x4xf32> to vector<1x1x4xf32>
    %61 = vector.broadcast %60 : vector<1x1x4xf32> to vector<8x8x4xf32>
    %62 = arith.addf %59, %61 : vector<8x8x4xf32>
    %cst_63 = arith.constant 0.000000e+00 : f32
    %63 = vector.broadcast %cst_63 : f32 to vector<8x8x4xf32>
    %64 = arith.maximumf %62, %63 : vector<8x8x4xf32>
    %c3_64 = arith.constant 3 : index
    %c1_65 = arith.constant 1 : index
    %c1_66 = arith.constant 1 : index
    %c0_67 = arith.constant 0 : index
    %65 = vector.load %arg17[%c3_64, %c1_65, %c1_66, %c0_67] : memref<4x9x9x4xf32, #tpu.memory_space<vmem>>, vector<1x8x8x4xf32>
    %66 = vector.shape_cast %65 : vector<1x8x8x4xf32> to vector<8x8x4xf32>
    %67 = vector.shape_cast %64 : vector<8x8x4xf32> to vector<1x8x8x4xf32>
    tpu.vector_store %arg17[%c3_64, %c1_65, %c1_66, %c0_67], %67 {strides = array<i32>} : memref<4x9x9x4xf32, #tpu.memory_space<vmem>>, vector<1x8x8x4xf32>,
    %cst_68 = arith.constant 0.000000e+00 : f32
    %68 = vector.broadcast %cst_68 : f32 to vector<64x8xf32>
    %c3_69 = arith.constant 3 : index
    %c0_70 = arith.constant 0 : index
    %c0_71 = arith.constant 0 : index
    %c0_72 = arith.constant 0 : index
    %69 = vector.load %arg17[%c3_69, %c0_70, %c0_71, %c0_72] : memref<4x9x9x4xf32, #tpu.memory_space<vmem>>, vector<1x8x8x4xf32>
    %70 = vector.shape_cast %69 : vector<1x8x8x4xf32> to vector<8x8x4xf32>
    %71 = vector.shape_cast %70 : vector<8x8x4xf32> to vector<64x4xf32>
    %c0_73 = arith.constant 0 : index
    %c0_74 = arith.constant 0 : index
    %72 = vector.load %arg4[%c0_73, %c0_74] : memref<36x8xf32, #tpu.memory_space<vmem>>, vector<4x8xf32>
    %cst_75 = arith.constant dense<0.000000e+00> : vector<64x8xf32>
    %73 = tpu.matmul %71, %72, %cst_75 {dimension_numbers = #tpu.dot_dimension_numbers<[1], [0], [0], [1], [0, 0, 1, 1], [], []>} : vector<64x4xf32>, vector<4x8xf32>, vector<64x8xf32> -> vector<64x8xf32>
    %74 = arith.addf %68, %73 : vector<64x8xf32>
    %c2_76 = arith.constant 2 : index
    %c0_77 = arith.constant 0 : index
    %c1_78 = arith.constant 1 : index
    %c0_79 = arith.constant 0 : index
    %75 = vector.load %arg17[%c2_76, %c0_77, %c1_78, %c0_79] : memref<4x9x9x4xf32, #tpu.memory_space<vmem>>, vector<1x8x8x4xf32>
    %76 = vector.shape_cast %75 : vector<1x8x8x4xf32> to vector<8x8x4xf32>
    %77 = vector.shape_cast %76 : vector<8x8x4xf32> to vector<64x4xf32>
    %c4 = arith.constant 4 : index
    %c0_80 = arith.constant 0 : index
    %78 = vector.load %arg4[%c4, %c0_80] : memref<36x8xf32, #tpu.memory_space<vmem>>, vector<4x8xf32>
    %cst_81 = arith.constant dense<0.000000e+00> : vector<64x8xf32>
    %79 = tpu.matmul %77, %78, %cst_81 {dimension_numbers = #tpu.dot_dimension_numbers<[1], [0], [0], [1], [0, 0, 1, 1], [], []>} : vector<64x4xf32>, vector<4x8xf32>, vector<64x8xf32> -> vector<64x8xf32>
    %80 = arith.addf %74, %79 : vector<64x8xf32>
    %c3_82 = arith.constant 3 : index
    %c0_83 = arith.constant 0 : index
    %c1_84 = arith.constant 1 : index
    %c0_85 = arith.constant 0 : index
    %81 = vector.load %arg17[%c3_82, %c0_83, %c1_84, %c0_85] : memref<4x9x9x4xf32, #tpu.memory_space<vmem>>, vector<1x8x8x4xf32>
    %82 = vector.shape_cast %81 : vector<1x8x8x4xf32> to vector<8x8x4xf32>
    %83 = vector.shape_cast %82 : vector<8x8x4xf32> to vector<64x4xf32>
    %c8 = arith.constant 8 : index
    %c0_86 = arith.constant 0 : index
    %84 = vector.load %arg4[%c8, %c0_86] : memref<36x8xf32, #tpu.memory_space<vmem>>, vector<4x8xf32>
    %cst_87 = arith.constant dense<0.000000e+00> : vector<64x8xf32>
    %85 = tpu.matmul %83, %84, %cst_87 {dimension_numbers = #tpu.dot_dimension_numbers<[1], [0], [0], [1], [0, 0, 1, 1], [], []>} : vector<64x4xf32>, vector<4x8xf32>, vector<64x8xf32> -> vector<64x8xf32>
    %86 = arith.addf %80, %85 : vector<64x8xf32>
    %c1_88 = arith.constant 1 : index
    %c1_89 = arith.constant 1 : index
    %c0_90 = arith.constant 0 : index
    %c0_91 = arith.constant 0 : index
    %87 = vector.load %arg17[%c1_88, %c1_89, %c0_90, %c0_91] : memref<4x9x9x4xf32, #tpu.memory_space<vmem>>, vector<1x8x8x4xf32>
    %88 = vector.shape_cast %87 : vector<1x8x8x4xf32> to vector<8x8x4xf32>
    %89 = vector.shape_cast %88 : vector<8x8x4xf32> to vector<64x4xf32>
    %c12 = arith.constant 12 : index
    %c0_92 = arith.constant 0 : index
    %90 = vector.load %arg4[%c12, %c0_92] : memref<36x8xf32, #tpu.memory_space<vmem>>, vector<4x8xf32>
    %cst_93 = arith.constant dense<0.000000e+00> : vector<64x8xf32>
    %91 = tpu.matmul %89, %90, %cst_93 {dimension_numbers = #tpu.dot_dimension_numbers<[1], [0], [0], [1], [0, 0, 1, 1], [], []>} : vector<64x4xf32>, vector<4x8xf32>, vector<64x8xf32> -> vector<64x8xf32>
    %92 = arith.addf %86, %91 : vector<64x8xf32>
    %c0_94 = arith.constant 0 : index
    %c1_95 = arith.constant 1 : index
    %c1_96 = arith.constant 1 : index
    %c0_97 = arith.constant 0 : index
    %93 = vector.load %arg17[%c0_94, %c1_95, %c1_96, %c0_97] : memref<4x9x9x4xf32, #tpu.memory_space<vmem>>, vector<1x8x8x4xf32>
    %94 = vector.shape_cast %93 : vector<1x8x8x4xf32> to vector<8x8x4xf32>
    %95 = vector.shape_cast %94 : vector<8x8x4xf32> to vector<64x4xf32>
    %c16 = arith.constant 16 : index
    %c0_98 = arith.constant 0 : index
    %96 = vector.load %arg4[%c16, %c0_98] : memref<36x8xf32, #tpu.memory_space<vmem>>, vector<4x8xf32>
    %cst_99 = arith.constant dense<0.000000e+00> : vector<64x8xf32>
    %97 = tpu.matmul %95, %96, %cst_99 {dimension_numbers = #tpu.dot_dimension_numbers<[1], [0], [0], [1], [0, 0, 1, 1], [], []>} : vector<64x4xf32>, vector<4x8xf32>, vector<64x8xf32> -> vector<64x8xf32>
    %98 = arith.addf %92, %97 : vector<64x8xf32>
    %c1_100 = arith.constant 1 : index
    %c1_101 = arith.constant 1 : index
    %c1_102 = arith.constant 1 : index
    %c0_103 = arith.constant 0 : index
    %99 = vector.load %arg17[%c1_100, %c1_101, %c1_102, %c0_103] : memref<4x9x9x4xf32, #tpu.memory_space<vmem>>, vector<1x8x8x4xf32>
    %100 = vector.shape_cast %99 : vector<1x8x8x4xf32> to vector<8x8x4xf32>
    %101 = vector.shape_cast %100 : vector<8x8x4xf32> to vector<64x4xf32>
    %c20 = arith.constant 20 : index
    %c0_104 = arith.constant 0 : index
    %102 = vector.load %arg4[%c20, %c0_104] : memref<36x8xf32, #tpu.memory_space<vmem>>, vector<4x8xf32>
    %cst_105 = arith.constant dense<0.000000e+00> : vector<64x8xf32>
    %103 = tpu.matmul %101, %102, %cst_105 {dimension_numbers = #tpu.dot_dimension_numbers<[1], [0], [0], [1], [0, 0, 1, 1], [], []>} : vector<64x4xf32>, vector<4x8xf32>, vector<64x8xf32> -> vector<64x8xf32>
    %104 = arith.addf %98, %103 : vector<64x8xf32>
    %c3_106 = arith.constant 3 : index
    %c1_107 = arith.constant 1 : index
    %c0_108 = arith.constant 0 : index
    %c0_109 = arith.constant 0 : index
    %105 = vector.load %arg17[%c3_106, %c1_107, %c0_108, %c0_109] : memref<4x9x9x4xf32, #tpu.memory_space<vmem>>, vector<1x8x8x4xf32>
    %106 = vector.shape_cast %105 : vector<1x8x8x4xf32> to vector<8x8x4xf32>
    %107 = vector.shape_cast %106 : vector<8x8x4xf32> to vector<64x4xf32>
    %c24 = arith.constant 24 : index
    %c0_110 = arith.constant 0 : index
    %108 = vector.load %arg4[%c24, %c0_110] : memref<36x8xf32, #tpu.memory_space<vmem>>, vector<4x8xf32>
    %cst_111 = arith.constant dense<0.000000e+00> : vector<64x8xf32>
    %109 = tpu.matmul %107, %108, %cst_111 {dimension_numbers = #tpu.dot_dimension_numbers<[1], [0], [0], [1], [0, 0, 1, 1], [], []>} : vector<64x4xf32>, vector<4x8xf32>, vector<64x8xf32> -> vector<64x8xf32>
    %110 = arith.addf %104, %109 : vector<64x8xf32>
    %c2_112 = arith.constant 2 : index
    %c1_113 = arith.constant 1 : index
    %c1_114 = arith.constant 1 : index
    %c0_115 = arith.constant 0 : index
    %111 = vector.load %arg17[%c2_112, %c1_113, %c1_114, %c0_115] : memref<4x9x9x4xf32, #tpu.memory_space<vmem>>, vector<1x8x8x4xf32>
    %112 = vector.shape_cast %111 : vector<1x8x8x4xf32> to vector<8x8x4xf32>
    %113 = vector.shape_cast %112 : vector<8x8x4xf32> to vector<64x4xf32>
    %c28 = arith.constant 28 : index
    %c0_116 = arith.constant 0 : index
    %114 = vector.load %arg4[%c28, %c0_116] : memref<36x8xf32, #tpu.memory_space<vmem>>, vector<4x8xf32>
    %cst_117 = arith.constant dense<0.000000e+00> : vector<64x8xf32>
    %115 = tpu.matmul %113, %114, %cst_117 {dimension_numbers = #tpu.dot_dimension_numbers<[1], [0], [0], [1], [0, 0, 1, 1], [], []>} : vector<64x4xf32>, vector<4x8xf32>, vector<64x8xf32> -> vector<64x8xf32>
    %116 = arith.addf %110, %115 : vector<64x8xf32>
    %c3_118 = arith.constant 3 : index
    %c1_119 = arith.constant 1 : index
    %c1_120 = arith.constant 1 : index
    %c0_121 = arith.constant 0 : index
    %117 = vector.load %arg17[%c3_118, %c1_119, %c1_120, %c0_121] : memref<4x9x9x4xf32, #tpu.memory_space<vmem>>, vector<1x8x8x4xf32>
    %118 = vector.shape_cast %117 : vector<1x8x8x4xf32> to vector<8x8x4xf32>
    %119 = vector.shape_cast %118 : vector<8x8x4xf32> to vector<64x4xf32>
    %c32 = arith.constant 32 : index
    %c0_122 = arith.constant 0 : index
    %120 = vector.load %arg4[%c32, %c0_122] : memref<36x8xf32, #tpu.memory_space<vmem>>, vector<4x8xf32>
    %cst_123 = arith.constant dense<0.000000e+00> : vector<64x8xf32>
    %121 = tpu.matmul %119, %120, %cst_123 {dimension_numbers = #tpu.dot_dimension_numbers<[1], [0], [0], [1], [0, 0, 1, 1], [], []>} : vector<64x4xf32>, vector<4x8xf32>, vector<64x8xf32> -> vector<64x8xf32>
    %122 = arith.addf %116, %121 : vector<64x8xf32>
    %c0_124 = arith.constant 0 : index
    %c0_125 = arith.constant 0 : index
    %c0_126 = arith.constant 0 : index
    %c0_127 = arith.constant 0 : index
    %c0_128 = arith.constant 0 : index
    %123 = vector.load %arg1[%c0_124, %c0_125, %c0_126, %c0_127, %c0_128] : memref<1x4x8x8x4xf32, #tpu.memory_space<vmem>>, vector<1x1x8x8x4xf32>
    %124 = vector.shape_cast %123 : vector<1x1x8x8x4xf32> to vector<8x8x4xf32>
    %125 = vector.shape_cast %124 : vector<8x8x4xf32> to vector<64x4xf32>
    %126 = vector.shape_cast %122 : vector<64x8xf32> to vector<8x8x8xf32>
    %127 = vector.shape_cast %14 : vector<1x8xf32> to vector<1x1x8xf32>
    %128 = vector.broadcast %127 : vector<1x1x8xf32> to vector<8x8x8xf32>
    %129 = arith.mulf %126, %128 : vector<8x8x8xf32>
    %130 = vector.shape_cast %15 : vector<1x8xf32> to vector<1x1x8xf32>
    %131 = vector.broadcast %130 : vector<1x1x8xf32> to vector<8x8x8xf32>
    %132 = arith.addf %129, %131 : vector<8x8x8xf32>
    %cst_129 = arith.constant 0.000000e+00 : f32
    %133 = vector.broadcast %cst_129 : f32 to vector<8x8x8xf32>
    %134 = arith.maximumf %132, %133 : vector<8x8x8xf32>
    %c1_130 = arith.constant 1 : index
    %c1_131 = arith.constant 1 : index
    %c0_132 = arith.constant 0 : index
    %135 = vector.load %arg18[%c1_130, %c1_131, %c0_132] : memref<10x10x8xf32, #tpu.memory_space<vmem>>, vector<8x8x8xf32>
    tpu.vector_store %arg18[%c1_130, %c1_131, %c0_132], %134 {strides = array<i32>} : memref<10x10x8xf32, #tpu.memory_space<vmem>>, vector<8x8x8xf32>,
    %cst_133 = arith.constant 0.000000e+00 : f32
    %136 = vector.broadcast %cst_133 : f32 to vector<64x8xf32>
    %c0_134 = arith.constant 0 : index
    %c0_135 = arith.constant 0 : index
    %c0_136 = arith.constant 0 : index
    %137 = vector.load %arg18[%c0_134, %c0_135, %c0_136] : memref<10x10x8xf32, #tpu.memory_space<vmem>>, vector<8x8x8xf32>
    %138 = vector.shape_cast %137 : vector<8x8x8xf32> to vector<64x8xf32>
    %c0_137 = arith.constant 0 : index
    %c0_138 = arith.constant 0 : index
    %139 = vector.load %arg7[%c0_137, %c0_138] : memref<72x8xf32, #tpu.memory_space<vmem>>, vector<8x8xf32>
    %cst_139 = arith.constant dense<0.000000e+00> : vector<64x8xf32>
    %140 = tpu.matmul %138, %139, %cst_139 {dimension_numbers = #tpu.dot_dimension_numbers<[1], [0], [0], [1], [0, 0, 1, 1], [], []>} : vector<64x8xf32>, vector<8x8xf32>, vector<64x8xf32> -> vector<64x8xf32>
    %141 = arith.addf %136, %140 : vector<64x8xf32>
    %c0_140 = arith.constant 0 : index
    %c1_141 = arith.constant 1 : index
    %c0_142 = arith.constant 0 : index
    %142 = vector.load %arg18[%c0_140, %c1_141, %c0_142] : memref<10x10x8xf32, #tpu.memory_space<vmem>>, vector<8x8x8xf32>
    %143 = vector.shape_cast %142 : vector<8x8x8xf32> to vector<64x8xf32>
    %c8_143 = arith.constant 8 : index
    %c0_144 = arith.constant 0 : index
    %144 = vector.load %arg7[%c8_143, %c0_144] : memref<72x8xf32, #tpu.memory_space<vmem>>, vector<8x8xf32>
    %cst_145 = arith.constant dense<0.000000e+00> : vector<64x8xf32>
    %145 = tpu.matmul %143, %144, %cst_145 {dimension_numbers = #tpu.dot_dimension_numbers<[1], [0], [0], [1], [0, 0, 1, 1], [], []>} : vector<64x8xf32>, vector<8x8xf32>, vector<64x8xf32> -> vector<64x8xf32>
    %146 = arith.addf %141, %145 : vector<64x8xf32>
    %c0_146 = arith.constant 0 : index
    %c2_147 = arith.constant 2 : index
    %c0_148 = arith.constant 0 : index
    %147 = vector.load %arg18[%c0_146, %c2_147, %c0_148] : memref<10x10x8xf32, #tpu.memory_space<vmem>>, vector<8x8x8xf32>
    %148 = vector.shape_cast %147 : vector<8x8x8xf32> to vector<64x8xf32>
    %c16_149 = arith.constant 16 : index
    %c0_150 = arith.constant 0 : index
    %149 = vector.load %arg7[%c16_149, %c0_150] : memref<72x8xf32, #tpu.memory_space<vmem>>, vector<8x8xf32>
    %cst_151 = arith.constant dense<0.000000e+00> : vector<64x8xf32>
    %150 = tpu.matmul %148, %149, %cst_151 {dimension_numbers = #tpu.dot_dimension_numbers<[1], [0], [0], [1], [0, 0, 1, 1], [], []>} : vector<64x8xf32>, vector<8x8xf32>, vector<64x8xf32> -> vector<64x8xf32>
    %151 = arith.addf %146, %150 : vector<64x8xf32>
    %c1_152 = arith.constant 1 : index
    %c0_153 = arith.constant 0 : index
    %c0_154 = arith.constant 0 : index
    %152 = vector.load %arg18[%c1_152, %c0_153, %c0_154] : memref<10x10x8xf32, #tpu.memory_space<vmem>>, vector<8x8x8xf32>
    %153 = vector.shape_cast %152 : vector<8x8x8xf32> to vector<64x8xf32>
    %c24_155 = arith.constant 24 : index
    %c0_156 = arith.constant 0 : index
    %154 = vector.load %arg7[%c24_155, %c0_156] : memref<72x8xf32, #tpu.memory_space<vmem>>, vector<8x8xf32>
    %cst_157 = arith.constant dense<0.000000e+00> : vector<64x8xf32>
    %155 = tpu.matmul %153, %154, %cst_157 {dimension_numbers = #tpu.dot_dimension_numbers<[1], [0], [0], [1], [0, 0, 1, 1], [], []>} : vector<64x8xf32>, vector<8x8xf32>, vector<64x8xf32> -> vector<64x8xf32>
    %156 = arith.addf %151, %155 : vector<64x8xf32>
    %c1_158 = arith.constant 1 : index
    %c1_159 = arith.constant 1 : index
    %c0_160 = arith.constant 0 : index
    %157 = vector.load %arg18[%c1_158, %c1_159, %c0_160] : memref<10x10x8xf32, #tpu.memory_space<vmem>>, vector<8x8x8xf32>
    %158 = vector.shape_cast %157 : vector<8x8x8xf32> to vector<64x8xf32>
    %c32_161 = arith.constant 32 : index
    %c0_162 = arith.constant 0 : index
    %159 = vector.load %arg7[%c32_161, %c0_162] : memref<72x8xf32, #tpu.memory_space<vmem>>, vector<8x8xf32>
    %cst_163 = arith.constant dense<0.000000e+00> : vector<64x8xf32>
    %160 = tpu.matmul %158, %159, %cst_163 {dimension_numbers = #tpu.dot_dimension_numbers<[1], [0], [0], [1], [0, 0, 1, 1], [], []>} : vector<64x8xf32>, vector<8x8xf32>, vector<64x8xf32> -> vector<64x8xf32>
    %161 = arith.addf %156, %160 : vector<64x8xf32>
    %c1_164 = arith.constant 1 : index
    %c2_165 = arith.constant 2 : index
    %c0_166 = arith.constant 0 : index
    %162 = vector.load %arg18[%c1_164, %c2_165, %c0_166] : memref<10x10x8xf32, #tpu.memory_space<vmem>>, vector<8x8x8xf32>
    %163 = vector.shape_cast %162 : vector<8x8x8xf32> to vector<64x8xf32>
    %c40 = arith.constant 40 : index
    %c0_167 = arith.constant 0 : index
    %164 = vector.load %arg7[%c40, %c0_167] : memref<72x8xf32, #tpu.memory_space<vmem>>, vector<8x8xf32>
    %cst_168 = arith.constant dense<0.000000e+00> : vector<64x8xf32>
    %165 = tpu.matmul %163, %164, %cst_168 {dimension_numbers = #tpu.dot_dimension_numbers<[1], [0], [0], [1], [0, 0, 1, 1], [], []>} : vector<64x8xf32>, vector<8x8xf32>, vector<64x8xf32> -> vector<64x8xf32>
    %166 = arith.addf %161, %165 : vector<64x8xf32>
    %c2_169 = arith.constant 2 : index
    %c0_170 = arith.constant 0 : index
    %c0_171 = arith.constant 0 : index
    %167 = vector.load %arg18[%c2_169, %c0_170, %c0_171] : memref<10x10x8xf32, #tpu.memory_space<vmem>>, vector<8x8x8xf32>
    %168 = vector.shape_cast %167 : vector<8x8x8xf32> to vector<64x8xf32>
    %c48 = arith.constant 48 : index
    %c0_172 = arith.constant 0 : index
    %169 = vector.load %arg7[%c48, %c0_172] : memref<72x8xf32, #tpu.memory_space<vmem>>, vector<8x8xf32>
    %cst_173 = arith.constant dense<0.000000e+00> : vector<64x8xf32>
    %170 = tpu.matmul %168, %169, %cst_173 {dimension_numbers = #tpu.dot_dimension_numbers<[1], [0], [0], [1], [0, 0, 1, 1], [], []>} : vector<64x8xf32>, vector<8x8xf32>, vector<64x8xf32> -> vector<64x8xf32>
    %171 = arith.addf %166, %170 : vector<64x8xf32>
    %c2_174 = arith.constant 2 : index
    %c1_175 = arith.constant 1 : index
    %c0_176 = arith.constant 0 : index
    %172 = vector.load %arg18[%c2_174, %c1_175, %c0_176] : memref<10x10x8xf32, #tpu.memory_space<vmem>>, vector<8x8x8xf32>
    %173 = vector.shape_cast %172 : vector<8x8x8xf32> to vector<64x8xf32>
    %c56 = arith.constant 56 : index
    %c0_177 = arith.constant 0 : index
    %174 = vector.load %arg7[%c56, %c0_177] : memref<72x8xf32, #tpu.memory_space<vmem>>, vector<8x8xf32>
    %cst_178 = arith.constant dense<0.000000e+00> : vector<64x8xf32>
    %175 = tpu.matmul %173, %174, %cst_178 {dimension_numbers = #tpu.dot_dimension_numbers<[1], [0], [0], [1], [0, 0, 1, 1], [], []>} : vector<64x8xf32>, vector<8x8xf32>, vector<64x8xf32> -> vector<64x8xf32>
    %176 = arith.addf %171, %175 : vector<64x8xf32>
    %c2_179 = arith.constant 2 : index
    %c2_180 = arith.constant 2 : index
    %c0_181 = arith.constant 0 : index
    %177 = vector.load %arg18[%c2_179, %c2_180, %c0_181] : memref<10x10x8xf32, #tpu.memory_space<vmem>>, vector<8x8x8xf32>
    %178 = vector.shape_cast %177 : vector<8x8x8xf32> to vector<64x8xf32>
    %c64 = arith.constant 64 : index
    %c0_182 = arith.constant 0 : index
    %179 = vector.load %arg7[%c64, %c0_182] : memref<72x8xf32, #tpu.memory_space<vmem>>, vector<8x8xf32>
    %cst_183 = arith.constant dense<0.000000e+00> : vector<64x8xf32>
    %180 = tpu.matmul %178, %179, %cst_183 {dimension_numbers = #tpu.dot_dimension_numbers<[1], [0], [0], [1], [0, 0, 1, 1], [], []>} : vector<64x8xf32>, vector<8x8xf32>, vector<64x8xf32> -> vector<64x8xf32>
    %181 = arith.addf %176, %180 : vector<64x8xf32>
    %c0_184 = arith.constant 0 : index
    %c0_185 = arith.constant 0 : index
    %182 = vector.load %arg8[%c0_184, %c0_185] : memref<4x8xf32, #tpu.memory_space<vmem>>, vector<4x8xf32>
    %cst_186 = arith.constant dense<0.000000e+00> : vector<64x8xf32>
    %183 = tpu.matmul %125, %182, %cst_186 {dimension_numbers = #tpu.dot_dimension_numbers<[1], [0], [0], [1], [0, 0, 1, 1], [], []>} : vector<64x4xf32>, vector<4x8xf32>, vector<64x8xf32> -> vector<64x8xf32>
    %c0_187 = arith.constant 0 : index
    %c0_188 = arith.constant 0 : index
    %184 = vector.load %arg9[%c0_187, %c0_188] : memref<1x8xf32, #tpu.memory_space<vmem>>, vector<1x8xf32>
    %185 = vector.broadcast %184 : vector<1x8xf32> to vector<64x8xf32>
    %186 = arith.addf %183, %185 : vector<64x8xf32>
    %187 = arith.addf %181, %186 : vector<64x8xf32>
    %c0_189 = arith.constant 0 : index
    %c0_190 = arith.constant 0 : index
    %188 = vector.load %arg10[%c0_189, %c0_190] : memref<1x8xf32, #tpu.memory_space<vmem>>, vector<1x8xf32>
    %c0_191 = arith.constant 0 : index
    %c0_192 = arith.constant 0 : index
    %189 = vector.load %arg11[%c0_191, %c0_192] : memref<1x8xf32, #tpu.memory_space<vmem>>, vector<1x8xf32>
    %c0_193 = arith.constant 0 : index
    %c0_194 = arith.constant 0 : index
    %190 = vector.load %arg13[%c0_193, %c0_194] : memref<1x8xf32, #tpu.memory_space<vmem>>, vector<1x8xf32>
    %c0_195 = arith.constant 0 : index
    %c0_196 = arith.constant 0 : index
    %191 = vector.load %arg14[%c0_195, %c0_196] : memref<1x8xf32, #tpu.memory_space<vmem>>, vector<1x8xf32>
    %192 = vector.shape_cast %187 : vector<64x8xf32> to vector<8x8x8xf32>
    %193 = vector.shape_cast %188 : vector<1x8xf32> to vector<1x1x8xf32>
    %194 = vector.broadcast %193 : vector<1x1x8xf32> to vector<8x8x8xf32>
    %195 = arith.mulf %192, %194 : vector<8x8x8xf32>
    %196 = vector.shape_cast %189 : vector<1x8xf32> to vector<1x1x8xf32>
    %197 = vector.broadcast %196 : vector<1x1x8xf32> to vector<8x8x8xf32>
    %198 = arith.addf %195, %197 : vector<8x8x8xf32>
    %cst_197 = arith.constant 0.000000e+00 : f32
    %199 = vector.broadcast %cst_197 : f32 to vector<8x8x8xf32>
    %200 = arith.maximumf %198, %199 : vector<8x8x8xf32>
    %c1_198 = arith.constant 1 : index
    %c1_199 = arith.constant 1 : index
    %c0_200 = arith.constant 0 : index
    %201 = vector.load %arg18[%c1_198, %c1_199, %c0_200] : memref<10x10x8xf32, #tpu.memory_space<vmem>>, vector<8x8x8xf32>
    tpu.vector_store %arg18[%c1_198, %c1_199, %c0_200], %200 {strides = array<i32>} : memref<10x10x8xf32, #tpu.memory_space<vmem>>, vector<8x8x8xf32>,
    %cst_201 = arith.constant 0.000000e+00 : f32
    %202 = vector.broadcast %cst_201 : f32 to vector<64x8xf32>
    %c0_202 = arith.constant 0 : index
    %c0_203 = arith.constant 0 : index
    %c0_204 = arith.constant 0 : index
    %203 = vector.load %arg18[%c0_202, %c0_203, %c0_204] : memref<10x10x8xf32, #tpu.memory_space<vmem>>, vector<8x8x8xf32>
    %204 = vector.shape_cast %203 : vector<8x8x8xf32> to vector<64x8xf32>
    %c0_205 = arith.constant 0 : index
    %c0_206 = arith.constant 0 : index
    %205 = vector.load %arg12[%c0_205, %c0_206] : memref<72x8xf32, #tpu.memory_space<vmem>>, vector<8x8xf32>
    %cst_207 = arith.constant dense<0.000000e+00> : vector<64x8xf32>
    %206 = tpu.matmul %204, %205, %cst_207 {dimension_numbers = #tpu.dot_dimension_numbers<[1], [0], [0], [1], [0, 0, 1, 1], [], []>} : vector<64x8xf32>, vector<8x8xf32>, vector<64x8xf32> -> vector<64x8xf32>
    %207 = arith.addf %202, %206 : vector<64x8xf32>
    %c0_208 = arith.constant 0 : index
    %c1_209 = arith.constant 1 : index
    %c0_210 = arith.constant 0 : index
    %208 = vector.load %arg18[%c0_208, %c1_209, %c0_210] : memref<10x10x8xf32, #tpu.memory_space<vmem>>, vector<8x8x8xf32>
    %209 = vector.shape_cast %208 : vector<8x8x8xf32> to vector<64x8xf32>
    %c8_211 = arith.constant 8 : index
    %c0_212 = arith.constant 0 : index
    %210 = vector.load %arg12[%c8_211, %c0_212] : memref<72x8xf32, #tpu.memory_space<vmem>>, vector<8x8xf32>
    %cst_213 = arith.constant dense<0.000000e+00> : vector<64x8xf32>
    %211 = tpu.matmul %209, %210, %cst_213 {dimension_numbers = #tpu.dot_dimension_numbers<[1], [0], [0], [1], [0, 0, 1, 1], [], []>} : vector<64x8xf32>, vector<8x8xf32>, vector<64x8xf32> -> vector<64x8xf32>
    %212 = arith.addf %207, %211 : vector<64x8xf32>
    %c0_214 = arith.constant 0 : index
    %c2_215 = arith.constant 2 : index
    %c0_216 = arith.constant 0 : index
    %213 = vector.load %arg18[%c0_214, %c2_215, %c0_216] : memref<10x10x8xf32, #tpu.memory_space<vmem>>, vector<8x8x8xf32>
    %214 = vector.shape_cast %213 : vector<8x8x8xf32> to vector<64x8xf32>
    %c16_217 = arith.constant 16 : index
    %c0_218 = arith.constant 0 : index
    %215 = vector.load %arg12[%c16_217, %c0_218] : memref<72x8xf32, #tpu.memory_space<vmem>>, vector<8x8xf32>
    %cst_219 = arith.constant dense<0.000000e+00> : vector<64x8xf32>
    %216 = tpu.matmul %214, %215, %cst_219 {dimension_numbers = #tpu.dot_dimension_numbers<[1], [0], [0], [1], [0, 0, 1, 1], [], []>} : vector<64x8xf32>, vector<8x8xf32>, vector<64x8xf32> -> vector<64x8xf32>
    %217 = arith.addf %212, %216 : vector<64x8xf32>
    %c1_220 = arith.constant 1 : index
    %c0_221 = arith.constant 0 : index
    %c0_222 = arith.constant 0 : index
    %218 = vector.load %arg18[%c1_220, %c0_221, %c0_222] : memref<10x10x8xf32, #tpu.memory_space<vmem>>, vector<8x8x8xf32>
    %219 = vector.shape_cast %218 : vector<8x8x8xf32> to vector<64x8xf32>
    %c24_223 = arith.constant 24 : index
    %c0_224 = arith.constant 0 : index
    %220 = vector.load %arg12[%c24_223, %c0_224] : memref<72x8xf32, #tpu.memory_space<vmem>>, vector<8x8xf32>
    %cst_225 = arith.constant dense<0.000000e+00> : vector<64x8xf32>
    %221 = tpu.matmul %219, %220, %cst_225 {dimension_numbers = #tpu.dot_dimension_numbers<[1], [0], [0], [1], [0, 0, 1, 1], [], []>} : vector<64x8xf32>, vector<8x8xf32>, vector<64x8xf32> -> vector<64x8xf32>
    %222 = arith.addf %217, %221 : vector<64x8xf32>
    %c1_226 = arith.constant 1 : index
    %c1_227 = arith.constant 1 : index
    %c0_228 = arith.constant 0 : index
    %223 = vector.load %arg18[%c1_226, %c1_227, %c0_228] : memref<10x10x8xf32, #tpu.memory_space<vmem>>, vector<8x8x8xf32>
    %224 = vector.shape_cast %223 : vector<8x8x8xf32> to vector<64x8xf32>
    %c32_229 = arith.constant 32 : index
    %c0_230 = arith.constant 0 : index
    %225 = vector.load %arg12[%c32_229, %c0_230] : memref<72x8xf32, #tpu.memory_space<vmem>>, vector<8x8xf32>
    %cst_231 = arith.constant dense<0.000000e+00> : vector<64x8xf32>
    %226 = tpu.matmul %224, %225, %cst_231 {dimension_numbers = #tpu.dot_dimension_numbers<[1], [0], [0], [1], [0, 0, 1, 1], [], []>} : vector<64x8xf32>, vector<8x8xf32>, vector<64x8xf32> -> vector<64x8xf32>
    %227 = arith.addf %222, %226 : vector<64x8xf32>
    %c1_232 = arith.constant 1 : index
    %c2_233 = arith.constant 2 : index
    %c0_234 = arith.constant 0 : index
    %228 = vector.load %arg18[%c1_232, %c2_233, %c0_234] : memref<10x10x8xf32, #tpu.memory_space<vmem>>, vector<8x8x8xf32>
    %229 = vector.shape_cast %228 : vector<8x8x8xf32> to vector<64x8xf32>
    %c40_235 = arith.constant 40 : index
    %c0_236 = arith.constant 0 : index
    %230 = vector.load %arg12[%c40_235, %c0_236] : memref<72x8xf32, #tpu.memory_space<vmem>>, vector<8x8xf32>
    %cst_237 = arith.constant dense<0.000000e+00> : vector<64x8xf32>
    %231 = tpu.matmul %229, %230, %cst_237 {dimension_numbers = #tpu.dot_dimension_numbers<[1], [0], [0], [1], [0, 0, 1, 1], [], []>} : vector<64x8xf32>, vector<8x8xf32>, vector<64x8xf32> -> vector<64x8xf32>
    %232 = arith.addf %227, %231 : vector<64x8xf32>
    %c2_238 = arith.constant 2 : index
    %c0_239 = arith.constant 0 : index
    %c0_240 = arith.constant 0 : index
    %233 = vector.load %arg18[%c2_238, %c0_239, %c0_240] : memref<10x10x8xf32, #tpu.memory_space<vmem>>, vector<8x8x8xf32>
    %234 = vector.shape_cast %233 : vector<8x8x8xf32> to vector<64x8xf32>
    %c48_241 = arith.constant 48 : index
    %c0_242 = arith.constant 0 : index
    %235 = vector.load %arg12[%c48_241, %c0_242] : memref<72x8xf32, #tpu.memory_space<vmem>>, vector<8x8xf32>
    %cst_243 = arith.constant dense<0.000000e+00> : vector<64x8xf32>
    %236 = tpu.matmul %234, %235, %cst_243 {dimension_numbers = #tpu.dot_dimension_numbers<[1], [0], [0], [1], [0, 0, 1, 1], [], []>} : vector<64x8xf32>, vector<8x8xf32>, vector<64x8xf32> -> vector<64x8xf32>
    %237 = arith.addf %232, %236 : vector<64x8xf32>
    %c2_244 = arith.constant 2 : index
    %c1_245 = arith.constant 1 : index
    %c0_246 = arith.constant 0 : index
    %238 = vector.load %arg18[%c2_244, %c1_245, %c0_246] : memref<10x10x8xf32, #tpu.memory_space<vmem>>, vector<8x8x8xf32>
    %239 = vector.shape_cast %238 : vector<8x8x8xf32> to vector<64x8xf32>
    %c56_247 = arith.constant 56 : index
    %c0_248 = arith.constant 0 : index
    %240 = vector.load %arg12[%c56_247, %c0_248] : memref<72x8xf32, #tpu.memory_space<vmem>>, vector<8x8xf32>
    %cst_249 = arith.constant dense<0.000000e+00> : vector<64x8xf32>
    %241 = tpu.matmul %239, %240, %cst_249 {dimension_numbers = #tpu.dot_dimension_numbers<[1], [0], [0], [1], [0, 0, 1, 1], [], []>} : vector<64x8xf32>, vector<8x8xf32>, vector<64x8xf32> -> vector<64x8xf32>
    %242 = arith.addf %237, %241 : vector<64x8xf32>
    %c2_250 = arith.constant 2 : index
    %c2_251 = arith.constant 2 : index
    %c0_252 = arith.constant 0 : index
    %243 = vector.load %arg18[%c2_250, %c2_251, %c0_252] : memref<10x10x8xf32, #tpu.memory_space<vmem>>, vector<8x8x8xf32>
    %244 = vector.shape_cast %243 : vector<8x8x8xf32> to vector<64x8xf32>
    %c64_253 = arith.constant 64 : index
    %c0_254 = arith.constant 0 : index
    %245 = vector.load %arg12[%c64_253, %c0_254] : memref<72x8xf32, #tpu.memory_space<vmem>>, vector<8x8xf32>
    %cst_255 = arith.constant dense<0.000000e+00> : vector<64x8xf32>
    %246 = tpu.matmul %244, %245, %cst_255 {dimension_numbers = #tpu.dot_dimension_numbers<[1], [0], [0], [1], [0, 0, 1, 1], [], []>} : vector<64x8xf32>, vector<8x8xf32>, vector<64x8xf32> -> vector<64x8xf32>
    %247 = arith.addf %242, %246 : vector<64x8xf32>
    %248 = vector.shape_cast %247 : vector<64x8xf32> to vector<8x8x8xf32>
    %249 = vector.shape_cast %190 : vector<1x8xf32> to vector<1x1x8xf32>
    %250 = vector.broadcast %249 : vector<1x1x8xf32> to vector<8x8x8xf32>
    %251 = arith.mulf %248, %250 : vector<8x8x8xf32>
    %252 = vector.shape_cast %191 : vector<1x8xf32> to vector<1x1x8xf32>
    %253 = vector.broadcast %252 : vector<1x1x8xf32> to vector<8x8x8xf32>
    %254 = arith.addf %251, %253 : vector<8x8x8xf32>
    %cst_256 = arith.constant 0.000000e+00 : f32
    %255 = vector.broadcast %cst_256 : f32 to vector<8x8x8xf32>
    %256 = arith.maximumf %254, %255 : vector<8x8x8xf32>
    %c1_257 = arith.constant 1 : index
    %c1_258 = arith.constant 1 : index
    %c0_259 = arith.constant 0 : index
    %257 = vector.load %arg18[%c1_257, %c1_258, %c0_259] : memref<10x10x8xf32, #tpu.memory_space<vmem>>, vector<8x8x8xf32>
    tpu.vector_store %arg18[%c1_257, %c1_258, %c0_259], %256 {strides = array<i32>} : memref<10x10x8xf32, #tpu.memory_space<vmem>>, vector<8x8x8xf32>,
    %cst_260 = arith.constant 0.000000e+00 : f32
    %258 = vector.broadcast %cst_260 : f32 to vector<64x8xf32>
    %c0_261 = arith.constant 0 : index
    %c0_262 = arith.constant 0 : index
    %c0_263 = arith.constant 0 : index
    %259 = vector.load %arg18[%c0_261, %c0_262, %c0_263] : memref<10x10x8xf32, #tpu.memory_space<vmem>>, vector<8x8x8xf32>
    %260 = vector.shape_cast %259 : vector<8x8x8xf32> to vector<64x8xf32>
    %c0_264 = arith.constant 0 : index
    %c0_265 = arith.constant 0 : index
    %261 = vector.load %arg15[%c0_264, %c0_265] : memref<72x8xf32, #tpu.memory_space<vmem>>, vector<8x8xf32>
    %cst_266 = arith.constant dense<0.000000e+00> : vector<64x8xf32>
    %262 = tpu.matmul %260, %261, %cst_266 {dimension_numbers = #tpu.dot_dimension_numbers<[1], [0], [0], [1], [0, 0, 1, 1], [], []>} : vector<64x8xf32>, vector<8x8xf32>, vector<64x8xf32> -> vector<64x8xf32>
    %263 = arith.addf %258, %262 : vector<64x8xf32>
    %c0_267 = arith.constant 0 : index
    %c1_268 = arith.constant 1 : index
    %c0_269 = arith.constant 0 : index
    %264 = vector.load %arg18[%c0_267, %c1_268, %c0_269] : memref<10x10x8xf32, #tpu.memory_space<vmem>>, vector<8x8x8xf32>
    %265 = vector.shape_cast %264 : vector<8x8x8xf32> to vector<64x8xf32>
    %c8_270 = arith.constant 8 : index
    %c0_271 = arith.constant 0 : index
    %266 = vector.load %arg15[%c8_270, %c0_271] : memref<72x8xf32, #tpu.memory_space<vmem>>, vector<8x8xf32>
    %cst_272 = arith.constant dense<0.000000e+00> : vector<64x8xf32>
    %267 = tpu.matmul %265, %266, %cst_272 {dimension_numbers = #tpu.dot_dimension_numbers<[1], [0], [0], [1], [0, 0, 1, 1], [], []>} : vector<64x8xf32>, vector<8x8xf32>, vector<64x8xf32> -> vector<64x8xf32>
    %268 = arith.addf %263, %267 : vector<64x8xf32>
    %c0_273 = arith.constant 0 : index
    %c2_274 = arith.constant 2 : index
    %c0_275 = arith.constant 0 : index
    %269 = vector.load %arg18[%c0_273, %c2_274, %c0_275] : memref<10x10x8xf32, #tpu.memory_space<vmem>>, vector<8x8x8xf32>
    %270 = vector.shape_cast %269 : vector<8x8x8xf32> to vector<64x8xf32>
    %c16_276 = arith.constant 16 : index
    %c0_277 = arith.constant 0 : index
    %271 = vector.load %arg15[%c16_276, %c0_277] : memref<72x8xf32, #tpu.memory_space<vmem>>, vector<8x8xf32>
    %cst_278 = arith.constant dense<0.000000e+00> : vector<64x8xf32>
    %272 = tpu.matmul %270, %271, %cst_278 {dimension_numbers = #tpu.dot_dimension_numbers<[1], [0], [0], [1], [0, 0, 1, 1], [], []>} : vector<64x8xf32>, vector<8x8xf32>, vector<64x8xf32> -> vector<64x8xf32>
    %273 = arith.addf %268, %272 : vector<64x8xf32>
    %c1_279 = arith.constant 1 : index
    %c0_280 = arith.constant 0 : index
    %c0_281 = arith.constant 0 : index
    %274 = vector.load %arg18[%c1_279, %c0_280, %c0_281] : memref<10x10x8xf32, #tpu.memory_space<vmem>>, vector<8x8x8xf32>
    %275 = vector.shape_cast %274 : vector<8x8x8xf32> to vector<64x8xf32>
    %c24_282 = arith.constant 24 : index
    %c0_283 = arith.constant 0 : index
    %276 = vector.load %arg15[%c24_282, %c0_283] : memref<72x8xf32, #tpu.memory_space<vmem>>, vector<8x8xf32>
    %cst_284 = arith.constant dense<0.000000e+00> : vector<64x8xf32>
    %277 = tpu.matmul %275, %276, %cst_284 {dimension_numbers = #tpu.dot_dimension_numbers<[1], [0], [0], [1], [0, 0, 1, 1], [], []>} : vector<64x8xf32>, vector<8x8xf32>, vector<64x8xf32> -> vector<64x8xf32>
    %278 = arith.addf %273, %277 : vector<64x8xf32>
    %c1_285 = arith.constant 1 : index
    %c1_286 = arith.constant 1 : index
    %c0_287 = arith.constant 0 : index
    %279 = vector.load %arg18[%c1_285, %c1_286, %c0_287] : memref<10x10x8xf32, #tpu.memory_space<vmem>>, vector<8x8x8xf32>
    %280 = vector.shape_cast %279 : vector<8x8x8xf32> to vector<64x8xf32>
    %c32_288 = arith.constant 32 : index
    %c0_289 = arith.constant 0 : index
    %281 = vector.load %arg15[%c32_288, %c0_289] : memref<72x8xf32, #tpu.memory_space<vmem>>, vector<8x8xf32>
    %cst_290 = arith.constant dense<0.000000e+00> : vector<64x8xf32>
    %282 = tpu.matmul %280, %281, %cst_290 {dimension_numbers = #tpu.dot_dimension_numbers<[1], [0], [0], [1], [0, 0, 1, 1], [], []>} : vector<64x8xf32>, vector<8x8xf32>, vector<64x8xf32> -> vector<64x8xf32>
    %283 = arith.addf %278, %282 : vector<64x8xf32>
    %c1_291 = arith.constant 1 : index
    %c2_292 = arith.constant 2 : index
    %c0_293 = arith.constant 0 : index
    %284 = vector.load %arg18[%c1_291, %c2_292, %c0_293] : memref<10x10x8xf32, #tpu.memory_space<vmem>>, vector<8x8x8xf32>
    %285 = vector.shape_cast %284 : vector<8x8x8xf32> to vector<64x8xf32>
    %c40_294 = arith.constant 40 : index
    %c0_295 = arith.constant 0 : index
    %286 = vector.load %arg15[%c40_294, %c0_295] : memref<72x8xf32, #tpu.memory_space<vmem>>, vector<8x8xf32>
    %cst_296 = arith.constant dense<0.000000e+00> : vector<64x8xf32>
    %287 = tpu.matmul %285, %286, %cst_296 {dimension_numbers = #tpu.dot_dimension_numbers<[1], [0], [0], [1], [0, 0, 1, 1], [], []>} : vector<64x8xf32>, vector<8x8xf32>, vector<64x8xf32> -> vector<64x8xf32>
    %288 = arith.addf %283, %287 : vector<64x8xf32>
    %c2_297 = arith.constant 2 : index
    %c0_298 = arith.constant 0 : index
    %c0_299 = arith.constant 0 : index
    %289 = vector.load %arg18[%c2_297, %c0_298, %c0_299] : memref<10x10x8xf32, #tpu.memory_space<vmem>>, vector<8x8x8xf32>
    %290 = vector.shape_cast %289 : vector<8x8x8xf32> to vector<64x8xf32>
    %c48_300 = arith.constant 48 : index
    %c0_301 = arith.constant 0 : index
    %291 = vector.load %arg15[%c48_300, %c0_301] : memref<72x8xf32, #tpu.memory_space<vmem>>, vector<8x8xf32>
    %cst_302 = arith.constant dense<0.000000e+00> : vector<64x8xf32>
    %292 = tpu.matmul %290, %291, %cst_302 {dimension_numbers = #tpu.dot_dimension_numbers<[1], [0], [0], [1], [0, 0, 1, 1], [], []>} : vector<64x8xf32>, vector<8x8xf32>, vector<64x8xf32> -> vector<64x8xf32>
    %293 = arith.addf %288, %292 : vector<64x8xf32>
    %c2_303 = arith.constant 2 : index
    %c1_304 = arith.constant 1 : index
    %c0_305 = arith.constant 0 : index
    %294 = vector.load %arg18[%c2_303, %c1_304, %c0_305] : memref<10x10x8xf32, #tpu.memory_space<vmem>>, vector<8x8x8xf32>
    %295 = vector.shape_cast %294 : vector<8x8x8xf32> to vector<64x8xf32>
    %c56_306 = arith.constant 56 : index
    %c0_307 = arith.constant 0 : index
    %296 = vector.load %arg15[%c56_306, %c0_307] : memref<72x8xf32, #tpu.memory_space<vmem>>, vector<8x8xf32>
    %cst_308 = arith.constant dense<0.000000e+00> : vector<64x8xf32>
    %297 = tpu.matmul %295, %296, %cst_308 {dimension_numbers = #tpu.dot_dimension_numbers<[1], [0], [0], [1], [0, 0, 1, 1], [], []>} : vector<64x8xf32>, vector<8x8xf32>, vector<64x8xf32> -> vector<64x8xf32>
    %298 = arith.addf %293, %297 : vector<64x8xf32>
    %c2_309 = arith.constant 2 : index
    %c2_310 = arith.constant 2 : index
    %c0_311 = arith.constant 0 : index
    %299 = vector.load %arg18[%c2_309, %c2_310, %c0_311] : memref<10x10x8xf32, #tpu.memory_space<vmem>>, vector<8x8x8xf32>
    %300 = vector.shape_cast %299 : vector<8x8x8xf32> to vector<64x8xf32>
    %c64_312 = arith.constant 64 : index
    %c0_313 = arith.constant 0 : index
    %301 = vector.load %arg15[%c64_312, %c0_313] : memref<72x8xf32, #tpu.memory_space<vmem>>, vector<8x8xf32>
    %cst_314 = arith.constant dense<0.000000e+00> : vector<64x8xf32>
    %302 = tpu.matmul %300, %301, %cst_314 {dimension_numbers = #tpu.dot_dimension_numbers<[1], [0], [0], [1], [0, 0, 1, 1], [], []>} : vector<64x8xf32>, vector<8x8xf32>, vector<64x8xf32> -> vector<64x8xf32>
    %303 = arith.addf %298, %302 : vector<64x8xf32>
    %304 = arith.addf %187, %303 : vector<64x8xf32>
    %305 = tpu.transpose %304, [1, 0] : vector<64x8xf32> -> vector<8x64xf32>
    %306 = vector.shape_cast %305 : vector<8x64xf32> to vector<1x8x64xf32>
    %c0_315 = arith.constant 0 : index
    %c0_316 = arith.constant 0 : index
    %c0_317 = arith.constant 0 : index
    %307 = vector.load %arg16[%c0_315, %c0_316, %c0_317] : memref<1x8x64xf32, #tpu.memory_space<vmem>>, vector<1x8x64xf32>
    tpu.vector_store %arg16[%c0_315, %c0_316, %c0_317], %306 {strides = array<i32>} : memref<1x8x64xf32, #tpu.memory_space<vmem>>, vector<1x8x64xf32>,
    return
  }
  func.func @transform_0(%arg0: i32) -> (i32, i32, i32, i32, i32) {
    %c0_i32 = arith.constant 0 : i32
    %c0_i32_0 = arith.constant 0 : i32
    %c0_i32_1 = arith.constant 0 : i32
    %c0_i32_2 = arith.constant 0 : i32
    %c0_i32_3 = arith.constant 0 : i32
    return %arg0, %c0_i32, %c0_i32_0, %c0_i32_1, %c0_i32_2 : i32, i32, i32, i32, i32
  }
  func.func @transform_1(%arg0: i32) -> (i32, i32) {
    %c0_i32 = arith.constant 0 : i32
    %c0_i32_0 = arith.constant 0 : i32
    %c0_i32_1 = arith.constant 0 : i32
    return %c0_i32, %c0_i32_0 : i32, i32
  }
  func.func @transform_2(%arg0: i32) -> (i32, i32) {
    %c0_i32 = arith.constant 0 : i32
    %c0_i32_0 = arith.constant 0 : i32
    %c0_i32_1 = arith.constant 0 : i32
    return %c0_i32, %c0_i32_0 : i32, i32
  }
  func.func @transform_3(%arg0: i32) -> (i32, i32) {
    %c0_i32 = arith.constant 0 : i32
    %c0_i32_0 = arith.constant 0 : i32
    %c0_i32_1 = arith.constant 0 : i32
    return %c0_i32, %c0_i32_0 : i32, i32
  }
  func.func @transform_4(%arg0: i32) -> (i32, i32) {
    %c0_i32 = arith.constant 0 : i32
    %c0_i32_0 = arith.constant 0 : i32
    %c0_i32_1 = arith.constant 0 : i32
    return %c0_i32, %c0_i32_0 : i32, i32
  }
  func.func @transform_5(%arg0: i32) -> (i32, i32) {
    %c0_i32 = arith.constant 0 : i32
    %c0_i32_0 = arith.constant 0 : i32
    %c0_i32_1 = arith.constant 0 : i32
    return %c0_i32, %c0_i32_0 : i32, i32
  }
  func.func @transform_6(%arg0: i32) -> (i32, i32) {
    %c0_i32 = arith.constant 0 : i32
    %c0_i32_0 = arith.constant 0 : i32
    %c0_i32_1 = arith.constant 0 : i32
    return %c0_i32, %c0_i32_0 : i32, i32
  }
  func.func @transform_7(%arg0: i32) -> (i32, i32) {
    %c0_i32 = arith.constant 0 : i32
    %c0_i32_0 = arith.constant 0 : i32
    %c0_i32_1 = arith.constant 0 : i32
    return %c0_i32, %c0_i32_0 : i32, i32
  }
  func.func @transform_8(%arg0: i32) -> (i32, i32) {
    %c0_i32 = arith.constant 0 : i32
    %c0_i32_0 = arith.constant 0 : i32
    %c0_i32_1 = arith.constant 0 : i32
    return %c0_i32, %c0_i32_0 : i32, i32
  }
  func.func @transform_9(%arg0: i32) -> (i32, i32) {
    %c0_i32 = arith.constant 0 : i32
    %c0_i32_0 = arith.constant 0 : i32
    %c0_i32_1 = arith.constant 0 : i32
    return %c0_i32, %c0_i32_0 : i32, i32
  }
  func.func @transform_10(%arg0: i32) -> (i32, i32) {
    %c0_i32 = arith.constant 0 : i32
    %c0_i32_0 = arith.constant 0 : i32
    %c0_i32_1 = arith.constant 0 : i32
    return %c0_i32, %c0_i32_0 : i32, i32
  }
  func.func @transform_11(%arg0: i32) -> (i32, i32) {
    %c0_i32 = arith.constant 0 : i32
    %c0_i32_0 = arith.constant 0 : i32
    %c0_i32_1 = arith.constant 0 : i32
    return %c0_i32, %c0_i32_0 : i32, i32
  }
  func.func @transform_12(%arg0: i32) -> (i32, i32) {
    %c0_i32 = arith.constant 0 : i32
    %c0_i32_0 = arith.constant 0 : i32
    %c0_i32_1 = arith.constant 0 : i32
    return %c0_i32, %c0_i32_0 : i32, i32
  }
  func.func @transform_13(%arg0: i32) -> (i32, i32) {
    %c0_i32 = arith.constant 0 : i32
    %c0_i32_0 = arith.constant 0 : i32
    %c0_i32_1 = arith.constant 0 : i32
    return %c0_i32, %c0_i32_0 : i32, i32
  }
  func.func @transform_14(%arg0: i32) -> (i32, i32) {
    %c0_i32 = arith.constant 0 : i32
    %c0_i32_0 = arith.constant 0 : i32
    %c0_i32_1 = arith.constant 0 : i32
    return %c0_i32, %c0_i32_0 : i32, i32
  }
  func.func @transform_15(%arg0: i32) -> (i32, i32, i32) {
    %c0_i32 = arith.constant 0 : i32
    %c0_i32_0 = arith.constant 0 : i32
    %c0_i32_1 = arith.constant 0 : i32
    return %arg0, %c0_i32, %c0_i32_0 : i32, i32, i32
  }
}

</mosaic_0001>

<bundles_post_ra>
// kernel: tpu_custom_call.1
= control target key start
LH: loop header
LB: loop body
LE: loop exit
PB: predicated region body
PF: predicated region fallthrough
CT: control target
= control target key end

     0   :  { %s9311_s0 = inlined_call_operand.vmem [shape: f32[2,4,8,8,4], index: 0, kind: input, shape index: {}]   ;;  %s9312_s1 = inlined_call_operand.vmem [shape: f32[1,4], index: 1, kind: input, shape index: {}]   ;;  %s9313_s2 = inlined_call_operand.vmem [shape: f32[1,4], index: 2, kind: input, shape index: {}]   ;;  %s9314_s3 = inlined_call_operand.vmem [shape: f32[36,8], index: 3, kind: input, shape index: {}]   ;;  %s9315_s4 = inlined_call_operand.vmem [shape: f32[1,8], index: 4, kind: input, shape index: {}]   ;;  %s9316_s5 = inlined_call_operand.vmem [shape: f32[1,8], index: 5, kind: input, shape index: {}]   ;;  %s9317_s6 = inlined_call_operand.vmem [shape: f32[72,8], index: 6, kind: input, shape index: {}]   ;;  %s9318_s7 = inlined_call_operand.vmem [shape: f32[4,8], index: 7, kind: input, shape index: {}]   ;;  %s9319_s8 = inlined_call_operand.vmem [shape: f32[1,8], index: 8, kind: input, shape index: {}]   ;;  %s9320_s9 = inlined_call_operand.vmem [shape: f32[1,8], index: 9, kind: input, shape index: {}]   ;;  %s9321_s10 = inlined_call_operand.vmem [shape: f32[1,8], index: 10, kind: input, shape index: {}]   ;;  %s9322_s11 = inlined_call_operand.vmem [shape: f32[72,8], index: 11, kind: input, shape index: {}]   ;;  %s9323_s12 = inlined_call_operand.vmem [shape: f32[1,8], index: 12, kind: input, shape index: {}]   ;;  %s9324_s13 = inlined_call_operand.vmem [shape: f32[1,8], index: 13, kind: input, shape index: {}]   ;;  %s9325_s14 = inlined_call_operand.vmem [shape: f32[72,8], index: 14, kind: input, shape index: {}]   ;;  %s9326_s15 = inlined_call_operand.hbm [shape: f32[2,8,64], index: 15, kind: output, shape index: {}]  }
   0x1   :  { %9330 = sst [smem:[#allocation10_spill]] %s9311_s0 }
   0x2   :  { %9331 = sst [smem:[#allocation11_spill]] %s9312_s1 }
   0x3   :  { %20 = vsyncpa [#allocation5], 0 }
   0x4   :  { %22 = vsyncpa [#allocation5 + $0x1], 0  ;;  %s8043_s18 = smov 0   ;;  %s8045_s19 = smov 0  }
   0x5   :  { %s8047_s20 = smov 0   ;;  %s8049_s21 = smov 0  }
   0x6 LB: > { %9332 = sst [smem:[#allocation7_spill]] %s7955_s20  ;;  %s8064_s22 = sadd.s32 4294967295, %s7959_s21   ;;  %s7959_s21 = sphi %s8049_s21, %s9339_s21   ;;  %s7955_s20 = sphi %s8047_s20, %s9341_s20   ;;  %s7951_s19 = sphi %s8045_s19, %s9343_s19   ;;  %s7947_s18 = sphi %s8043_s18, %s9342_s18  }
   0x7   : > { %s6381_s23 = sadd.s32 4294967294, %s7959_s21   ;;  %s8068_s24 = sadd.s32 1, %s7959_s21  }
   0x8   : > { %9333 = sst [smem:[#allocation8_spill]] %s8068_s24  ;;  %s355_s25 = sadd.s32 1, %s7955_s20 }
   0x9   : > { %s352_s26 = ssub.s32 %s7959_s21, %s8068_s24  ;;  %p365_p0 = scmp.ne.s32.totalorder %s7955_s20, %s7951_s19 }
   0xa   : > { %p353_p1 = scmp.eq.s32.totalorder %s352_s26, 0  ;;  %p366_p2 = scmp.eq.s32.totalorder %s8064_s22, 1 }
   0xb   : > { %p371_p3 = scmp.ne.s32.totalorder %s7951_s19, %s7947_s18  ;;  %p372_p4 = scmp.eq.s32.totalorder %s6381_s23, 1 }
   0xc   : > { %s8079_s27 = scalar_select %p353_p1, %s7955_s20, %s355_s25  }
   0xd   : > { %p8081_p5 = por %p366_p2, %p365_p0  ;;  %p8085_p6 = por %p372_p4, %p371_p3 }
   0xe   : > { %9334 = sst [smem:[#allocation9_spill]] %s8079_s27  ;;  %p6384_p7 = scmp.ge.s32.totalorder %s7959_s21, 1 }
   0xf   : > { %p440_p8 = scmp.lt.s32.totalorder %s7959_s21, 3 }
  0x11   : > { %p441_p9 = pnand %p6384_p7, %p440_p8 }
  0x12   : > { %v769_v0 = vld [vmem:[%s9314_s3 + $0x4] sm:$0xf] (!%p441_p9)  ;;  %vm794_vm0 = vcmask (!%p441_p9), 1043456   ;;  %vm493_vm1 = vcmask (!%p441_p9), 31744   ;;  %vm495_vm2 = vcmask (!%p441_p9), 24576   ;;  %v7961_v1 = vmov (!%p441_p9), 0.0  }
  0x13   : > { %444 = sbr.rel (%p441_p9) target bundleno = 1616 (0x650), region = 80  ;;  %7065 = vmatprep.subr.msk.mxu0 (!%p441_p9), %vm794_vm0, %v769_v0  ;;  %499 = vst.msk [vmem:[#allocation2 + $0x120] sm:$0xff] (!%p441_p9), %vm493_vm1, %v7961_v1  ;;  %501 = vst.msk [vmem:[#allocation2 + $0x1b0] sm:$0xff] (!%p441_p9), %vm493_vm1, %v7961_v1  ;;  %v8138_v2 = vld [vmem:[%s9314_s3] sm:$0xf] (!%p441_p9)  ;;  %p488_p10 = scmp.lt.s32.totalorder (!%p441_p9), %s8064_s22, 1 }
  0x14   : > { %500 = vst.msk [vmem:[#allocation2 + $0x128] sm:$0x1] (!%p441_p9), %vm495_vm2, %v7961_v1  ;;  %502 = vst.msk [vmem:[#allocation2 + $0x1b8] sm:$0x1] (!%p441_p9), %vm495_vm2, %v7961_v1  ;;  %7066 = vmatpush3.msk.msra.mxu0 (!%p441_p9), %vm794_vm0, %v769_v0  ;;  %s9337_s1 = sld [smem:[#allocation11_spill]] (!%p441_p9)  ;;  %s9338_s0 = sld [smem:[#allocation10_spill]] (!%p441_p9) }
  0x15   : > { %513 = vst.msk [vmem:[#allocation2 + $0xa0] sm:$0x1] (!%p441_p9), %vm495_vm2, %v7961_v1  ;;  %514 = vst.msk [vmem:[#allocation2 + $0xb0] sm:$0x1] (!%p441_p9), %vm495_vm2, %v7961_v1  ;;  %7079 = vmatprep.subr.msk.mxu0 (!%p441_p9), %vm794_vm0, %v8138_v2  ;;  %v8160_v4 = vld [vmem:[%s9313_s2] ss:$0 sm:$0xff] (!%p441_p9) }
  0x16   : > { %515 = vst.msk [vmem:[#allocation2 + $0xc0] sm:$0x1] (!%p441_p9), %vm495_vm2, %v7961_v1  ;;  %516 = vst.msk [vmem:[#allocation2 + $0xd0] sm:$0x1] (!%p441_p9), %vm495_vm2, %v7961_v1  ;;  %vm539_vm3 = vcmask (!%p441_p9), 64512   ;;  %vm541_vm4 = vcmask (!%p441_p9), 58368  }
  0x17   : > { %517 = vst.msk [vmem:[#allocation2 + $0xe0] sm:$0x1] (!%p441_p9), %vm495_vm2, %v7961_v1  ;;  %518 = vst.msk [vmem:[#allocation2 + $0xf0] sm:$0x1] (!%p441_p9), %vm495_vm2, %v7961_v1  ;;  %vm546_vm5 = vcmask (!%p441_p9), 57344   ;;  %s6728_s30 = sshll.u32 (!%p441_p9), %s8064_s22, 7 }
  0x18   : > { %519 = vst.msk [vmem:[#allocation2 + $0x100] sm:$0x1] (!%p441_p9), %vm495_vm2, %v7961_v1  ;;  %520 = vst.msk [vmem:[#allocation2 + $0x110] sm:$0x1] (!%p441_p9), %vm495_vm2, %v7961_v1  ;;  %vm6306_vm6 = vcmask (!%p441_p9), 523264   ;;  %s9269_s24 = scalar_lea.hbm (!%p441_p9), %s9326_s15, %s6728_s30 }
  0x19   : > { %531 = vst.msk [vmem:[#allocation2 + $0x1c0] sm:$0x1] (!%p441_p9), %vm495_vm2, %v7961_v1  ;;  %532 = vst.msk [vmem:[#allocation2 + $0x1d0] sm:$0x1] (!%p441_p9), %vm495_vm2, %v7961_v1 }
  0x1a   : > { %533 = vst.msk [vmem:[#allocation2 + $0x1e0] sm:$0x1] %vm495_vm2, %v7961_v1  ;;  %534 = vst.msk [vmem:[#allocation2 + $0x1f0] sm:$0x1] %vm495_vm2, %v7961_v1  ;;  %s489_s25 = scalar_select %p488_p10, %s8064_s22, 1 }
  0x1b   : > { %535 = vst.msk [vmem:[#allocation2 + $0x200] sm:$0x1] %vm495_vm2, %v7961_v1  ;;  %536 = vst.msk [vmem:[#allocation2 + $0x210] sm:$0x1] %vm495_vm2, %v7961_v1  ;;  %v8150_v3 = vld [vmem:[%s9337_s1] ss:$0 sm:$0xff] }
  0x1c   : > { %537 = vst.msk [vmem:[#allocation2 + $0x220] sm:$0x1] %vm495_vm2, %v7961_v1  ;;  %538 = vst.msk [vmem:[#allocation2 + $0x230] sm:$0x1] %vm495_vm2, %v7961_v1  ;;  %s6731_s26 = sshll.u32 %s489_s25, 8  ;;  %v761_v8 = vld [vmem:[#allocation2 + $0x121] sm:$0xff] }
  0x1d   : > { %530 = vst.msk [vmem:[#allocation2 + $0x1b0] sm:$0x1] %vm495_vm2, %v7961_v1  ;;  %s8155_s23 = scalar_lea.vmem %s9338_s0, %s6731_s26  ;;  %7067 = vmatprep.mubr.msk.f32.mxu0 %vm493_vm1, %v761_v8  ;;  %s485_s25 = sand.u32 1, %s7951_s19  }
  0x1e   : > { %v6398_v5 = vld [vmem:[%s8155_s23 + $0x80] sm:$0xff]  ;;  %v6399_v6 = vld [vmem:[%s8155_s23 + $0x88] sm:$0xff]  ;;  %v6400_v7 = vld [vmem:[%s8155_s23 + $0x90] sm:$0xff]  ;;  %540 = vst.msk [vmem:[#allocation3] sm:$0xff] %vm539_vm3, %v7961_v1  ;;  %s6385_s26 = sshll.u32 %s485_s25, 3  ;;  %s6309_s27 = scalar_lea.sflag [#allocation5], %s485_s25 }
  0x1f   : > { %v675_v9 = vmul.f32 %v6398_v5, %v8150_v3  ;;  %v676_v10 = vmul.f32 %v6399_v6, %v8150_v3  ;;  %v677_v11 = vmul.f32 %v6400_v7, %v8150_v3  ;;  %v6401_v12 = vld [vmem:[%s8155_s23 + $0x98] sm:$0xff]  ;;  %v6402_v13 = vld [vmem:[%s8155_s23 + $0xa0] sm:$0xff]  ;;  %v6403_v16 = vld [vmem:[%s8155_s23 + $0xa8] sm:$0xff]  ;;  %544 = vst.msk [vmem:[#allocation3 + $0x90] sm:$0xff] %vm539_vm3, %v7961_v1  ;;  %s487_s16 = scalar_lea.vmem [#allocation4], %s6385_s26  ;;  %s7962_s22 = smov [#allocation4]  }
  0x20   : > { %v678_v14 = vmul.f32 %v6401_v12, %v8150_v3  ;;  %v679_v15 = vmul.f32 %v6402_v13, %v8150_v3  ;;  %v6404_v17 = vld [vmem:[%s8155_s23 + $0xb0] sm:$0xff]  ;;  %v680_v21 = vmul.f32 %v6403_v16, %v8150_v3  ;;  %v6406_v22 = vld [vmem:[%s8155_s23 + $0xc0] sm:$0xff]  ;;  %v6407_v27 = vld [vmem:[%s8155_s23 + $0xc8] sm:$0xff]  ;;  %542 = vst.msk [vmem:[#allocation3 + $0x8] sm:$0x3] %vm541_vm4, %v7961_v1  ;;  %s6322_s17 = sshll.u32 %s487_s16, 4  ;;  %s9271_s17 = int_to_ptr.vmem [resolvable:$true] %s6322_s17 }
  0x21   : > { %v683_v18 = vadd.f32 %v8160_v4, %v675_v9  ;;  %v684_v19 = vadd.f32 %v8160_v4, %v676_v10  ;;  %v685_v20 = vadd.f32 %v8160_v4, %v677_v11  ;;  %v681_v25 = vmul.f32 %v6404_v17, %v8150_v3  ;;  %v6408_v28 = vld [vmem:[%s8155_s23 + $0xd0] sm:$0xff]  ;;  %v6409_v29 = vld [vmem:[%s8155_s23 + $0xd8] sm:$0xff]  ;;  %v6410_v34 = vld [vmem:[%s8155_s23 + $0xe0] sm:$0xff]  ;;  %545 = vst.msk [vmem:[#allocation3 + $0x98] sm:$0x3] %vm541_vm4, %v7961_v1  ;;  %s7897_s0 = scalar_lea.vmem %s9271_s17, 128 }
  0x22   : > { %v686_v23 = vadd.f32 %v8160_v4, %v678_v14  ;;  %v687_v24 = vadd.f32 %v8160_v4, %v679_v15  ;;  %v717_v26 = vmul.f32 %v6406_v22, %v8150_v3  ;;  %v688_v33 = vadd.f32 %v8160_v4, %v680_v21  ;;  %v6411_v35 = vld [vmem:[%s8155_s23 + $0xe8] sm:$0xff]  ;;  %v6412_v40 = vld [vmem:[%s8155_s23 + $0xf0] sm:$0xff]  ;;  %v6390_v45 = vld [vmem:[%s8155_s23 + $0x40] sm:$0xff]  ;;  %547 = vst.msk [vmem:[#allocation3] sm:$0x1] %vm546_vm5, %v7961_v1  ;;  %p7898_p11 = scmp.ne.s32.totalorder %s9271_s17, %s7897_s0  ;;  %s7901_s26 = sshll.u32 %s7962_s22, 4  ;;  %s7902_s26 = int_to_ptr.vmem [resolvable:$false] %s7901_s26 }
  0x23   : > { %v691_v30 = vmax.f32 %v683_v18, 0.0  ;;  %v692_v31 = vmax.f32 %v684_v19, 0.0  ;;  %v693_v32 = vmax.f32 %v685_v20, 0.0  ;;  %v689_v38 = vadd.f32 %v8160_v4, %v681_v25  ;;  %v6391_v46 = vld [vmem:[%s8155_s23 + $0x48] sm:$0xff]  ;;  %v6392_v59 = vld [vmem:[%s8155_s23 + $0x50] sm:$0xff]  ;;  %v6393_v60 = vld [vmem:[%s8155_s23 + $0x58] sm:$0xff]  ;;  %p7904_p0 = scmp.lt.s32.totalorder %s9271_s17, %s7902_s26 }
  0x24   : > { %v694_v36 = vmax.f32 %v686_v23, 0.0  ;;  %v695_v37 = vmax.f32 %v687_v24, 0.0  ;;  %v725_v39 = vadd.f32 %v8160_v4, %v717_v26  ;;  %v696_v41 = vmax.f32 %v688_v33, 0.0  ;;  %v6394_v61 = vld [vmem:[%s8155_s23 + $0x60] sm:$0xff]  ;;  %v6395_v6 = vld [vmem:[%s8155_s23 + $0x68] sm:$0xff]  ;;  %v6396_v7 = vld [vmem:[%s8155_s23 + $0x70] sm:$0xff]  ;;  %p7899_p12 = pnand %p7898_p11, %p8081_p5 }
  0x25   : > { %700 = vst.msk [vmem:[#allocation2 + $0x131] sm:$0xff] %vm493_vm1, %v691_v30  ;;  %701 = vst.msk [vmem:[#allocation2 + $0x141] sm:$0xff] %vm493_vm1, %v692_v31  ;;  %v718_v42 = vmul.f32 %v6407_v27, %v8150_v3  ;;  %v719_v43 = vmul.f32 %v6408_v28, %v8150_v3  ;;  %v720_v44 = vmul.f32 %v6409_v29, %v8150_v3  ;;  %v697_v47 = vmax.f32 %v689_v38, 0.0  ;;  %v6397_v12 = vld [vmem:[%s8155_s23 + $0x78] sm:$0xff]  ;;  %v8232_v17 = vld [vmem:[%s8155_s23] sm:$0xff]  ;;  %s7903_s1 = scalar_lea.vmem %s7902_s26, 256 }
  0x26   : > { %702 = vst.msk [vmem:[#allocation2 + $0x151] sm:$0xff] %vm493_vm1, %v693_v32  ;;  %703 = vst.msk [vmem:[#allocation2 + $0x161] sm:$0xff] %vm493_vm1, %v694_v36  ;;  %v733_v48 = vmax.f32 %v725_v39, 0.0  ;;  %v721_v49 = vmul.f32 %v6410_v34, %v8150_v3  ;;  %v722_v50 = vmul.f32 %v6411_v35, %v8150_v3  ;;  %v723_v54 = vmul.f32 %v6412_v40, %v8150_v3  ;;  %v8241_v20 = vld [vmem:[%s9314_s3 + $0x8] sm:$0xf]  ;;  %v8258_v30 = vld [vmem:[%s8155_s23 + $0x10] sm:$0xff]  ;;  %p7900_p13 = pneg %p7899_p12  ;;  %p7905_p1 = scmp.lt.s32.totalorder %s7903_s1, %s7897_s0 }
  0x27   : > { %704 = vst.msk [vmem:[#allocation2 + $0x171] sm:$0xff] %vm493_vm1, %v695_v37  ;;  %705 = vst.msk [vmem:[#allocation2 + $0x181] sm:$0xff] %vm493_vm1, %v696_v41  ;;  %v726_v51 = vadd.f32 %v8160_v4, %v718_v42  ;;  %v727_v52 = vadd.f32 %v8160_v4, %v719_v43  ;;  %v728_v53 = vadd.f32 %v8160_v4, %v720_v44  ;;  %v8255_v29 = vld [vmem:[%s8155_s23 + $0x8] sm:$0xff]  ;;  %v8276_v35 = vld [vmem:[%s8155_s23 + $0x20] sm:$0xff] }
  0x28   : > { %706 = vst.msk [vmem:[#allocation2 + $0x191] sm:$0xff] %vm493_vm1, %v697_v47  ;;  %742 = vst.msk [vmem:[#allocation2 + $0x1c1] sm:$0xff] %vm493_vm1, %v733_v48  ;;  %v729_v55 = vadd.f32 %v8160_v4, %v721_v49  ;;  %v730_v56 = vadd.f32 %v8160_v4, %v722_v50  ;;  %v633_v57 = vmul.f32 %v6390_v45, %v8150_v3  ;;  %v8284_v41 = vld [vmem:[%s8155_s23 + $0x28] sm:$0xff]  ;;  %v8287_v42 = vld [vmem:[%s8155_s23 + $0x30] sm:$0xff]  ;;  %p7906_p2 = por %p7905_p1, %p7904_p0 }
  0x29   : > { %v634_v58 = vmul.f32 %v6391_v46, %v8150_v3  ;;  %v734_v62 = vmax.f32 %v726_v51, 0.0  ;;  %v735_v63 = vmax.f32 %v727_v52, 0.0  ;;  %v736_v0 = vmax.f32 %v728_v53, 0.0  ;;  %v8293_v47 = vld [vmem:[%s8155_s23 + $0x38] sm:$0xff]  ;;  %548 = vst.msk [vmem:[#allocation3 + $0x10] sm:$0x1] %vm546_vm5, %v7961_v1 }
  0x2a   : > { %v731_v5 = vadd.f32 %v8160_v4, %v723_v54  ;;  %v737_v8 = vmax.f32 %v729_v55, 0.0  ;;  %v738_v9 = vmax.f32 %v730_v56, 0.0  ;;  %v641_v10 = vadd.f32 %v8160_v4, %v633_v57  ;;  %v6413_v52 = vld [vmem:[%s8155_s23 + $0xf8] sm:$0xff]  ;;  %549 = vst.msk [vmem:[#allocation3 + $0x20] sm:$0x1] %vm546_vm5, %v7961_v1  ;;  %p7907_p3 = pnand %p7906_p2, %p7900_p13 }
  0x2b   : > { %v642_v11 = vadd.f32 %v8160_v4, %v634_v58  ;;  %743 = vst.msk [vmem:[#allocation2 + $0x1d1] sm:$0xff] %vm493_vm1, %v734_v62  ;;  %744 = vst.msk [vmem:[#allocation2 + $0x1e1] sm:$0xff] %vm493_vm1, %v735_v63  ;;  %v635_v14 = vmul.f32 %v6392_v59, %v8150_v3  ;;  %v636_v15 = vmul.f32 %v6393_v60, %v8150_v3  ;;  %v6405_v63 = vld [vmem:[%s8155_s23 + $0xb8] sm:$0xff] }
  0x2c   : > { %745 = vst.msk [vmem:[#allocation2 + $0x1f1] sm:$0xff] %vm493_vm1, %v736_v0  ;;  %v739_v13 = vmax.f32 %v731_v5, 0.0  ;;  %v637_v16 = vmul.f32 %v6394_v61, %v8150_v3  ;;  %v8234_v18 = vld [vmem:[#allocation2 + $0x131] sm:$0xff]  ;;  %v8236_v19 = vld [vmem:[#allocation2 + $0x141] sm:$0xff]  ;;  %746 = vst.msk [vmem:[#allocation2 + $0x201] sm:$0xff] %vm493_vm1, %v737_v8  ;;  %v649_v21 = vmax.f32 %v641_v10, 0.0  ;;  %v638_v23 = vmul.f32 %v6395_v6, %v8150_v3 }
  0x2d   : > { %747 = vst.msk [vmem:[#allocation2 + $0x211] sm:$0xff] %vm493_vm1, %v738_v9  ;;  %v650_v22 = vmax.f32 %v642_v11, 0.0  ;;  %v639_v24 = vmul.f32 %v6396_v7, %v8150_v3  ;;  %7068 = vmatmul.mubr.msk.f32.vlgmr.msra.gmra.mrb[0].mxu0 %vm493_vm1, %v8234_v18  ;;  %v643_v25 = vadd.f32 %v8160_v4, %v635_v14  ;;  %v644_v26 = vadd.f32 %v8160_v4, %v636_v15  ;;  %v8264_v31 = vld [vmem:[#allocation2 + $0x151] sm:$0xff]  ;;  %v8278_v36 = vld [vmem:[#allocation2 + $0x161] sm:$0xff] }
  0x2e   : > { %748 = vst.msk [vmem:[#allocation2 + $0x221] sm:$0xff] %vm493_vm1, %v739_v13  ;;  %v645_v27 = vadd.f32 %v8160_v4, %v637_v16  ;;  %v640_v28 = vmul.f32 %v6397_v12, %v8150_v3  ;;  %7080 = vmatpush3.msk.msra.mxu0 %vm794_vm0, %v8138_v2  ;;  %7070 = vmatprep.mubr.msk.f32.mxu0 %vm493_vm1, %v8236_v19  ;;  %658 = vst.msk [vmem:[#allocation2 + $0xa1] sm:$0xff] %vm493_vm1, %v649_v21  ;;  %v8273_v2 = vld [vmem:[%s8155_s23 + $0x18] sm:$0xff]  ;;  %v8318_v58 = vld [vmem:[#allocation2 + $0x181] sm:$0xff] }
  0x2f   : > { %659 = vst.msk [vmem:[#allocation2 + $0xb1] sm:$0xff] %vm493_vm1, %v650_v22  ;;  %v646_v32 = vadd.f32 %v8160_v4, %v638_v23  ;;  %v647_v33 = vadd.f32 %v8160_v4, %v639_v24  ;;  %v585_v34 = vmul.f32 %v8150_v3, %v8232_v17  ;;  %7093 = vmatprep.subr.msk.mxu0 %vm794_vm0, %v8241_v20  ;;  %v651_v37 = vmax.f32 %v643_v25, 0.0  ;;  %v8309_v53 = vld [vmem:[#allocation2 + $0x171] sm:$0xff] }
  0x30   : > { %v652_v38 = vmax.f32 %v644_v26, 0.0  ;;  %v653_v39 = vmax.f32 %v645_v27, 0.0  ;;  %v648_v40 = vadd.f32 %v8160_v4, %v640_v28  ;;  %v586_v46 = vmul.f32 %v8150_v3, %v8255_v29  ;;  %v8336_v12 = vld [vmem:[#allocation2 + $0x191] sm:$0xff]  ;;  %v1192_v26 = vld [vmem:[%s9314_s3 + $0xc] sm:$0xf] }
  0x31   : > { %v654_v43 = vmax.f32 %v646_v32, 0.0  ;;  %v655_v44 = vmax.f32 %v647_v33, 0.0  ;;  %v599_v45 = vadd.f32 %v8160_v4, %v585_v34  ;;  %7071 = vmatmul.mubr.msk.f32.gmra.mrb[2].mxu0 %vm493_vm1, %v8264_v31  ;;  %660 = vst.msk [vmem:[#allocation2 + $0xc1] sm:$0xff] %vm493_vm1, %v651_v37  ;;  %v587_v49 = vmul.f32 %v8150_v3, %v8258_v30  ;;  %v751_v21 = vld [vmem:[#allocation2 + $0x1b0] sm:$0xff]  ;;  %v8392_v37 = vld [vmem:[#allocation2 + $0x1c1] sm:$0xff] }
  0x32   : > { %661 = vst.msk [vmem:[#allocation2 + $0xd1] sm:$0xff] %vm493_vm1, %v652_v38  ;;  %662 = vst.msk [vmem:[#allocation2 + $0xe1] sm:$0xff] %vm493_vm1, %v653_v39  ;;  %v656_v48 = vmax.f32 %v648_v40, 0.0  ;;  %v588_v50 = vmul.f32 %v8150_v3, %v8273_v2  ;;  %v589_v51 = vmul.f32 %v8150_v3, %v8276_v35  ;;  %7073 = vmatprep.mubr.msk.f32.mxu0 %vm493_vm1, %v8278_v36  ;;  %v8370_v27 = vld [vmem:[#allocation2 + $0x1e0] sm:$0xff]  ;;  %v1035_v34 = vld [vmem:[#allocation2 + $0x1b1] sm:$0xff] }
  0x33   : > { %663 = vst.msk [vmem:[#allocation2 + $0xf1] sm:$0xff] %vm493_vm1, %v654_v43  ;;  %664 = vst.msk [vmem:[#allocation2 + $0x101] sm:$0xff] %vm493_vm1, %v655_v44  ;;  %v607_v54 = vmax.f32 %v599_v45, 0.0  ;;  %v600_v55 = vadd.f32 %v8160_v4, %v586_v46  ;;  %v590_v56 = vmul.f32 %v8150_v3, %v8284_v41  ;;  %v591_v57 = vmul.f32 %v8150_v3, %v8287_v42  ;;  %v8372_v28 = vld [vmem:[#allocation2 + $0x1f0] sm:$0xff]  ;;  %v8379_v32 = vld [vmem:[#allocation2 + $0x200] sm:$0xff] }
  0x34   : > { %665 = vst.msk [vmem:[#allocation2 + $0x111] sm:$0xff] %vm493_vm1, %v656_v48  ;;  %v601_v59 = vadd.f32 %v8160_v4, %v587_v49  ;;  %v602_v60 = vadd.f32 %v8160_v4, %v588_v50  ;;  %v603_v61 = vadd.f32 %v8160_v4, %v589_v51  ;;  %v592_v62 = vmul.f32 %v8150_v3, %v8293_v47  ;;  %v8381_v33 = vld [vmem:[#allocation2 + $0x210] sm:$0xff]  ;;  %v8404_v40 = vld [vmem:[#allocation2 + $0x1e1] sm:$0xff] }
  0x35   : > { %616 = vst.msk [vmem:[#allocation2 + $0x11] sm:$0xff] %vm493_vm1, %v607_v54  ;;  %v608_v0 = vmax.f32 %v600_v55, 0.0  ;;  %v604_v5 = vadd.f32 %v8160_v4, %v590_v56  ;;  %v605_v6 = vadd.f32 %v8160_v4, %v591_v57  ;;  %v724_v7 = vmul.f32 %v6413_v52, %v8150_v3  ;;  %7074 = vmatmul.mubr.msk.f32.gmra.mrb[4].mxu0 %vm493_vm1, %v8309_v53  ;;  %v8394_v38 = vld [vmem:[#allocation2 + $0x1d1] sm:$0xff]  ;;  %v8413_v44 = vld [vmem:[#allocation2 + $0x201] sm:$0xff] }
  0x36   : > { %v609_v8 = vmax.f32 %v601_v59, 0.0  ;;  %v610_v9 = vmax.f32 %v602_v60, 0.0  ;;  %v611_v10 = vmax.f32 %v603_v61, 0.0  ;;  %v606_v11 = vadd.f32 %v8160_v4, %v592_v62  ;;  %7076 = vmatprep.mubr.msk.f32.mxu0 %vm493_vm1, %v8318_v58  ;;  %v1341_v39 = vld [vmem:[%s9314_s3 + $0x10] sm:$0xf]  ;;  %v8421_v46 = vld [vmem:[#allocation2 + $0x221] sm:$0xff] }
  0x37   : > { %617 = vst.msk [vmem:[#allocation2 + $0x21] sm:$0xff] %vm493_vm1, %v608_v0  ;;  %v612_v13 = vmax.f32 %v604_v5, 0.0  ;;  %v613_v14 = vmax.f32 %v605_v6, 0.0  ;;  %v732_v15 = vadd.f32 %v8160_v4, %v724_v7  ;;  %v682_v16 = vmul.f32 %v6405_v63, %v8150_v3  ;;  %v8351_v3 = vld [vmem:[#allocation2 + $0x1c0] sm:$0xff]  ;;  %v8406_v43 = vld [vmem:[#allocation2 + $0x1f1] sm:$0xff] }
  0x38   : > { %618 = vst.msk [vmem:[#allocation2 + $0x31] sm:$0xff] %vm493_vm1, %v609_v8  ;;  %619 = vst.msk [vmem:[#allocation2 + $0x41] sm:$0xff] %vm493_vm1, %v610_v9  ;;  %v614_v22 = vmax.f32 %v606_v11, 0.0  ;;  %v8415_v45 = vld [vmem:[#allocation2 + $0x211] sm:$0xff]  ;;  %v1184_v48 = vld [vmem:[#allocation2 + $0xa0] sm:$0xff] }
  0x39   : > { %620 = vst.msk [vmem:[#allocation2 + $0x51] sm:$0xff] %vm493_vm1, %v611_v10  ;;  %621 = vst.msk [vmem:[#allocation2 + $0x61] sm:$0xff] %vm493_vm1, %v612_v13  ;;  %v740_v23 = vmax.f32 %v732_v15, 0.0  ;;  %v690_v24 = vadd.f32 %v8160_v4, %v682_v16  ;;  %7077 = vmatmul.mubr.msk.f32.gmra.mrb[6].mxu0 %vm493_vm1, %v8336_v12  ;;  %v8358_v4 = vld [vmem:[#allocation2 + $0x1d0] sm:$0xff]  ;;  %v1186_v50 = vld [vmem:[#allocation2 + $0xc0] sm:$0xff] }
  0x3a   : > { %622 = vst.msk [vmem:[#allocation2 + $0x71] sm:$0xff] %vm493_vm1, %v613_v14  ;;  %623 = vst.msk [vmem:[#allocation2 + $0x81] sm:$0xff] %vm493_vm1, %v614_v22  ;;  %7081 = vmatprep.mubr.msk.f32.mxu0 %vm493_vm1, %v751_v21  ;;  %v1185_v49 = vld [vmem:[#allocation2 + $0xb0] sm:$0xff]  ;;  %v1188_v54 = vld [vmem:[#allocation2 + $0xe0] sm:$0xff] }
  0x3b   : > { %749 = vst.msk [vmem:[#allocation2 + $0x231] sm:$0xff] %vm493_vm1, %v740_v23  ;;  %v698_v25 = vmax.f32 %v690_v24, 0.0  ;;  %v1490_v51 = vld [vmem:[%s9314_s3 + $0x14] sm:$0xf]  ;;  %v1190_v56 = vld [vmem:[#allocation2 + $0x100] sm:$0xff] }
  0x3c   : > { %v1187_v52 = vld [vmem:[#allocation2 + $0xd0] sm:$0xff]  ;;  %v1639_v62 = vld [vmem:[%s9314_s3 + $0x18] sm:$0xf]  ;;  %v1482_v8 = vld [vmem:[#allocation2 + $0xa1] sm:$0xff]  ;;  %550 = vst.msk [vmem:[#allocation3 + $0x30] sm:$0x1] %vm546_vm5, %v7961_v1 }
  0x3d   : > { %707 = vst.msk [vmem:[#allocation2 + $0x1a1] sm:$0xff] %vm493_vm1, %v698_v25  ;;  %7082 = vmatmul.mubr.msk.f32.vlgmr.msra.gmra.mrb[0].mxu0 %vm493_vm1, %v8351_v3  ;;  %v1189_v55 = vld [vmem:[#allocation2 + $0xf0] sm:$0xff]  ;;  %v1484_v10 = vld [vmem:[#allocation2 + $0xc1] sm:$0xff]  ;;  %v1788_v11 = vld [vmem:[%s9314_s3 + $0x1c] sm:$0xf] }
  0x3e   : > { %7094 = vmatpush3.msk.msra.mxu0 %vm794_vm0, %v8241_v20  ;;  %7084 = vmatprep.mubr.msk.f32.mxu0 %vm493_vm1, %v8358_v4  ;;  %v8387_v20 = vld [vmem:[#allocation2 + $0x220] sm:$0xff]  ;;  %v1191_v57 = vld [vmem:[#allocation2 + $0x110] sm:$0xff]  ;;  %551 = vst.msk [vmem:[#allocation3 + $0x40] sm:$0x1] %vm546_vm5, %v7961_v1  ;;  %552 = vst.msk [vmem:[#allocation3 + $0x50] sm:$0x1] %vm546_vm5, %v7961_v1 }
  0x3f   : > { %7107 = vmatprep.subr.msk.mxu0 %vm794_vm0, %v1192_v26  ;;  %v1333_v59 = vld [vmem:[#allocation2 + $0x11] sm:$0xff]  ;;  %v1334_v60 = vld [vmem:[#allocation2 + $0x21] sm:$0xff]  ;;  %553 = vst.msk [vmem:[#allocation3 + $0x60] sm:$0x1] %vm546_vm5, %v7961_v1  ;;  %554 = vst.msk [vmem:[#allocation3 + $0x70] sm:$0x1] %vm546_vm5, %v7961_v1 }
  0x40   : > { %v1335_v61 = vld [vmem:[#allocation2 + $0x31] sm:$0xff]  ;;  %v1336_v63 = vld [vmem:[#allocation2 + $0x41] sm:$0xff]  ;;  %555 = vst.msk [vmem:[#allocation3 + $0x80] sm:$0x1] %vm546_vm5, %v7961_v1  ;;  %556 = vst.msk [vmem:[#allocation3 + $0x90] sm:$0x1] %vm546_vm5, %v7961_v1 }
  0x41   : > { %7085 = vmatmul.mubr.msk.f32.gmra.mrb[2].mxu0 %vm493_vm1, %v8370_v27  ;;  %v1337_v0 = vld [vmem:[#allocation2 + $0x51] sm:$0xff]  ;;  %v1338_v5 = vld [vmem:[#allocation2 + $0x61] sm:$0xff]  ;;  %558 = vst.msk [vmem:[#allocation3 + $0x19] sm:$0x1] %vm546_vm5, %v7961_v1  ;;  %559 = vst.msk [vmem:[#allocation3 + $0x29] sm:$0x1] %vm546_vm5, %v7961_v1 }
  0x42   : > { %7087 = vmatprep.mubr.msk.f32.mxu0 %vm493_vm1, %v8372_v28  ;;  %v1339_v6 = vld [vmem:[#allocation2 + $0x71] sm:$0xff]  ;;  %v1340_v7 = vld [vmem:[#allocation2 + $0x81] sm:$0xff]  ;;  %560 = vst.msk [vmem:[#allocation3 + $0x39] sm:$0x1] %vm546_vm5, %v7961_v1  ;;  %561 = vst.msk [vmem:[#allocation3 + $0x49] sm:$0x1] %vm546_vm5, %v7961_v1 }
  0x43   : > { %v1483_v9 = vld [vmem:[#allocation2 + $0xb1] sm:$0xff]  ;;  %v1486_v14 = vld [vmem:[#allocation2 + $0xe1] sm:$0xff]  ;;  %562 = vst.msk [vmem:[#allocation3 + $0x59] sm:$0x1] %vm546_vm5, %v7961_v1  ;;  %563 = vst.msk [vmem:[#allocation3 + $0x69] sm:$0x1] %vm546_vm5, %v7961_v1 }
  0x44   : > { %v1485_v13 = vld [vmem:[#allocation2 + $0xd1] sm:$0xff]  ;;  %v1488_v16 = vld [vmem:[#allocation2 + $0x101] sm:$0xff]  ;;  %564 = vst.msk [vmem:[#allocation3 + $0x79] sm:$0x1] %vm546_vm5, %v7961_v1  ;;  %565 = vst.msk [vmem:[#allocation3 + $0x89] sm:$0x1] %vm546_vm5, %v7961_v1 }
  0x45   : > { %7088 = vmatmul.mubr.msk.f32.gmra.mrb[4].mxu0 %vm493_vm1, %v8379_v32  ;;  %v1487_v15 = vld [vmem:[#allocation2 + $0xf1] sm:$0xff]  ;;  %v1937_v22 = vld [vmem:[%s9314_s3 + $0x20] sm:$0xf]  ;;  %557 = vst.msk [vmem:[#allocation3 + $0x9] sm:$0x1] %vm546_vm5, %v7961_v1 }
  0x46   : > { %7090 = vmatprep.mubr.msk.f32.mxu0 %vm493_vm1, %v8381_v33  ;;  %v1489_v21 = vld [vmem:[#allocation2 + $0x111] sm:$0xff]  ;;  %566 = vst.msk [vmem:[#allocation3 + $0x99] sm:$0x1] %vm546_vm5, %v7961_v1  ;;  %v6495_v1 = vld [vmem:[%s9315_s4] ss:$0 sm:$0xff] }
  0x47   : > { %v1638_v23 = vld [vmem:[#allocation2 + $0x230] sm:$0xff] }
  0x49   : > { %7091 = vmatmul.mubr.msk.f32.gmra.mrb[6].mxu0 %vm493_vm1, %v8387_v20 }
  0x4a   : > { %7095 = vmatprep.mubr.msk.f32.mxu0 %vm493_vm1, %v1035_v34 }
  0x4d   : > { %7096 = vmatmul.mubr.msk.f32.vlgmr.msra.gmra.mrb[0].mxu0 %vm493_vm1, %v8392_v37 }
  0x4e   : > { %7108 = vmatpush3.msk.msra.mxu0 %vm794_vm0, %v1192_v26  ;;  %7098 = vmatprep.mubr.msk.f32.mxu0 %vm493_vm1, %v8394_v38 }
  0x4f   : > { %7121 = vmatprep.subr.msk.mxu0 %vm794_vm0, %v1341_v39 }
  0x51   : > { %7099 = vmatmul.mubr.msk.f32.gmra.mrb[2].mxu0 %vm493_vm1, %v8404_v40 }
  0x52   : > { %7101 = vmatprep.mubr.msk.f32.mxu0 %vm493_vm1, %v8406_v43 }
  0x55   : > { %7102 = vmatmul.mubr.msk.f32.gmra.mrb[4].mxu0 %vm493_vm1, %v8413_v44 }
  0x56   : > { %7104 = vmatprep.mubr.msk.f32.mxu0 %vm493_vm1, %v8415_v45 }
  0x59   : > { %7105 = vmatmul.mubr.msk.f32.gmra.mrb[6].mxu0 %vm493_vm1, %v8421_v46 }
  0x5a   : > { %7109 = vmatprep.mubr.msk.f32.mxu0 %vm493_vm1, %v1184_v48 }
  0x5d   : > { %7110 = vmatmul.mubr.msk.f32.vlgmr.msra.gmra.mrb[0].mxu0 %vm493_vm1, %v1185_v49 }
  0x5e   : > { %7122 = vmatpush3.msk.msra.mxu0 %vm794_vm0, %v1341_v39  ;;  %7112 = vmatprep.mubr.msk.f32.mxu0 %vm493_vm1, %v1186_v50 }
  0x5f   : > { %7135 = vmatprep.subr.msk.mxu0 %vm794_vm0, %v1490_v51 }
  0x61   : > { %7113 = vmatmul.mubr.msk.f32.gmra.mrb[2].mxu0 %vm493_vm1, %v1187_v52 }
  0x62   : > { %7115 = vmatprep.mubr.msk.f32.mxu0 %vm493_vm1, %v1188_v54 }
  0x65   : > { %7116 = vmatmul.mubr.msk.f32.gmra.mrb[4].mxu0 %vm493_vm1, %v1189_v55 }
  0x66   : > { %7118 = vmatprep.mubr.msk.f32.mxu0 %vm493_vm1, %v1190_v56 }
  0x69   : > { %7119 = vmatmul.mubr.msk.f32.gmra.mrb[6].mxu0 %vm493_vm1, %v1191_v57 }
  0x6a   : > { %7123 = vmatprep.mubr.msk.f32.mxu0 %vm493_vm1, %v1333_v59 }
  0x6d   : > { %7124 = vmatmul.mubr.msk.f32.vlgmr.msra.gmra.mrb[0].mxu0 %vm493_vm1, %v1334_v60 }
  0x6e   : > { %7136 = vmatpush3.msk.msra.mxu0 %vm794_vm0, %v1490_v51  ;;  %7126 = vmatprep.mubr.msk.f32.mxu0 %vm493_vm1, %v1335_v61 }
  0x6f   : > { %7149 = vmatprep.subr.msk.mxu0 %vm794_vm0, %v1639_v62 }
  0x71   : > { %7127 = vmatmul.mubr.msk.f32.gmra.mrb[2].mxu0 %vm493_vm1, %v1336_v63 }
  0x72   : > { %7129 = vmatprep.mubr.msk.f32.mxu0 %vm493_vm1, %v1337_v0 }
  0x75   : > { %7130 = vmatmul.mubr.msk.f32.gmra.mrb[4].mxu0 %vm493_vm1, %v1338_v5 }
  0x76   : > { %7132 = vmatprep.mubr.msk.f32.mxu0 %vm493_vm1, %v1339_v6 }
  0x79   : > { %7133 = vmatmul.mubr.msk.f32.gmra.mrb[6].mxu0 %vm493_vm1, %v1340_v7  ;;  %v2415_v7 = vld [vmem:[%s9317_s6 + $0x10] sm:$0xff] }
  0x7a   : > { %7137 = vmatprep.mubr.msk.f32.mxu0 %vm493_vm1, %v1482_v8 }
  0x7d   : > { %7138 = vmatmul.mubr.msk.f32.vlgmr.msra.gmra.mrb[0].mxu0 %vm493_vm1, %v1483_v9  ;;  %v8610_v9 = vld [vmem:[#allocation3] sm:$0xff] }
  0x7e   : > { %7150 = vmatpush3.msk.msra.mxu0 %vm794_vm0, %v1639_v62  ;;  %7140 = vmatprep.mubr.msk.f32.mxu0 %vm493_vm1, %v1484_v10 }
  0x7f   : > { %7163 = vmatprep.subr.msk.mxu0 %vm794_vm0, %v1788_v11 }
  0x81   : > { %7141 = vmatmul.mubr.msk.f32.gmra.mrb[2].mxu0 %vm493_vm1, %v1485_v13  ;;  %v2561_v13 = vld [vmem:[%s9317_s6 + $0x18] sm:$0xff] }
  0x82   : > { %7143 = vmatprep.mubr.msk.f32.mxu0 %vm493_vm1, %v1486_v14 }
  0x85   : > { %7144 = vmatmul.mubr.msk.f32.gmra.mrb[4].mxu0 %vm493_vm1, %v1487_v15 }
  0x86   : > { %7146 = vmatprep.mubr.msk.f32.mxu0 %vm493_vm1, %v1488_v16 }
  0x89   : > { %7147 = vmatmul.mubr.msk.f32.gmra.mrb[6].mxu0 %vm493_vm1, %v1489_v21 }
  0x8a   : > { %7151 = vmatprep.mubr.msk.f32.mxu0 %vm493_vm1, %v8351_v3 }
  0x8d   : > { %7152 = vmatmul.mubr.msk.f32.vlgmr.msra.gmra.mrb[0].mxu0 %vm493_vm1, %v8358_v4 }
  0x8e   : > { %7164 = vmatpush3.msk.msra.mxu0 %vm794_vm0, %v1788_v11  ;;  %7154 = vmatprep.mubr.msk.f32.mxu0 %vm493_vm1, %v8370_v27 }
  0x8f   : > { %7177 = vmatprep.subr.msk.mxu0 %vm794_vm0, %v1937_v22 }
  0x91   : > { %7155 = vmatmul.mubr.msk.f32.gmra.mrb[2].mxu0 %vm493_vm1, %v8372_v28 }
  0x92   : > { %7157 = vmatprep.mubr.msk.f32.mxu0 %vm493_vm1, %v8379_v32 }
  0x95   : > { %7158 = vmatmul.mubr.msk.f32.gmra.mrb[4].mxu0 %vm493_vm1, %v8381_v33 }
  0x96   : > { %7160 = vmatprep.mubr.msk.f32.mxu0 %vm493_vm1, %v8387_v20 }
  0x99   : > { %7161 = vmatmul.mubr.msk.f32.gmra.mrb[6].mxu0 %vm493_vm1, %v1638_v23  ;;  %v8642_v23 = vld [vmem:[#allocation3 + $0x2] sm:$0xff] }
  0x9a   : > { %7165 = vmatprep.mubr.msk.f32.mxu0 %vm493_vm1, %v8234_v18  ;;  %v1787_v18 = vld [vmem:[#allocation2 + $0x1a1] sm:$0xff] }
  0x9d   : > { %7166 = vmatmul.mubr.msk.f32.vlgmr.msra.gmra.mrb[0].mxu0 %vm493_vm1, %v8236_v19  ;;  %v1936_v19 = vld [vmem:[#allocation2 + $0x231] sm:$0xff] }
  0x9e   : > { %7178 = vmatpush3.msk.msra.mxu0 %vm794_vm0, %v1937_v22  ;;  %7168 = vmatprep.mubr.msk.f32.mxu0 %vm493_vm1, %v8264_v31  ;;  %v2148_v31 = vld [vmem:[%s9317_s6 + $0x8] sm:$0xff] }
  0x9f   : > { %7191 = vmatprep.subr.mxu0 %v2148_v31  ;;  %7583 = vmatprep.subr.mxu1 %v2148_v31 }
  0xa0   : > { %7584 = vmatpush3.msra.mxu1 %v2148_v31 }
  0xa1   : > { %7169 = vmatmul.mubr.msk.f32.gmra.mrb[2].mxu0 %vm493_vm1, %v8278_v36  ;;  %v8560_v36 = vld [vmem:[#allocation3 + $0x1] sm:$0xff] }
  0xa2   : > { %7171 = vmatprep.mubr.msk.f32.mxu0 %vm493_vm1, %v8309_v53  ;;  %v2139_v53 = vld [vmem:[%s9317_s6] sm:$0xff] }
  0xa3   : > { %7205 = vmatprep.subr.mxu1 %v2139_v53 }
  0xa5   : > { %7172 = vmatmul.mubr.msk.f32.gmra.mrb[4].mxu0 %vm493_vm1, %v8318_v58  ;;  %v6496_v58 = vld [vmem:[%s9316_s5] ss:$0 sm:$0xff] }
  0xa6   : > { %7174 = vmatprep.mubr.msk.f32.mxu0 %vm493_vm1, %v8336_v12 }
  0xa9   : > { %7175 = vmatmul.mubr.msk.f32.gmra.mrb[6].mxu0 %vm493_vm1, %v1787_v18 }
  0xaa   : > { %7179 = vmatprep.mubr.msk.f32.mxu0 %vm493_vm1, %v8392_v37 }
  0xad   : > { %7180 = vmatmul.mubr.msk.f32.vlgmr.msra.gmra.mrb[0].mxu0 %vm493_vm1, %v8394_v38 }
  0xae   : > { %7182 = vmatprep.mubr.msk.f32.mxu0 %vm493_vm1, %v8404_v40  ;;  %7192 = vmatpush3.msra.mxu0 %v2148_v31  ;;  %v2707_v31 = vld [vmem:[%s9317_s6 + $0x20] sm:$0xff] }
  0xb1   : > { %7183 = vmatmul.mubr.msk.f32.gmra.mrb[2].mxu0 %vm493_vm1, %v8406_v43 }
  0xb2   : > { %7185 = vmatprep.mubr.msk.f32.mxu0 %vm493_vm1, %v8413_v44 }
  0xb5   : > { %7186 = vmatmul.mubr.msk.f32.gmra.mrb[4].mxu0 %vm493_vm1, %v8415_v45 }
  0xb6   : > { %7188 = vmatprep.mubr.msk.f32.mxu0 %vm493_vm1, %v8421_v46 }
  0xb9   : > { %7189 = vmatmul.mubr.msk.f32.gmra.mrb[6].mxu0 %vm493_vm1, %v1936_v19 }
  0xba   : > { %7193 = vmatprep.mubr.msk.f32.mxu0 %vm539_vm3, %v8560_v36 }
 0x180   : > { %v7181_v12 = vpop.f32.mrb[0].mxu0 }
 0x181   : > { %v2093_v24 = vmul.f32 %v7181_v12, %v6495_v1  ;;  %v2031_v3 = vpop.f32.mrb[1].mxu0 }
 0x182   : > { %v2092_v25 = vmul.f32 %v6495_v1, %v2031_v3 }
 0x183   : > { %v2107_v4 = vadd.f32 %v6496_v58, %v2093_v24 }
 0x184   : > { %v2106_v26 = vadd.f32 %v6496_v58, %v2092_v25  ;;  %v7184_v27 = vpop.f32.mrb[2].mxu0  ;;  %v2853_v25 = vld [vmem:[%s9317_s6 + $0x28] sm:$0xff] }
 0x185   : > { %v2115_v28 = vmax.f32 %v2107_v4, 0.0  ;;  %v2095_v32 = vmul.f32 %v7184_v27, %v6495_v1  ;;  %v2041_v33 = vpop.f32.mrb[3].mxu0 }
 0x186   : > { %v2114_v20 = vmax.f32 %v2106_v26, 0.0  ;;  %v2094_v34 = vmul.f32 %v6495_v1, %v2041_v33  ;;  %v3000_v26 = vld [vmem:[%s9317_s6 + $0x30] sm:$0xff]  ;;  %v3292_v33 = vld [vmem:[%s9317_s6 + $0x40] sm:$0xff] }
 0x187   : > { %2124 = vst.msk [vmem:[#allocation3 + $0x21] sm:$0xff] %vm539_vm3, %v2115_v28  ;;  %v2109_v37 = vadd.f32 %v6496_v58, %v2095_v32  ;;  %v3146_v28 = vld [vmem:[%s9317_s6 + $0x38] sm:$0xff] }
 0x188   : > { %2123 = vst.msk [vmem:[#allocation3 + $0x11] sm:$0xff] %vm539_vm3, %v2114_v20  ;;  %v2108_v38 = vadd.f32 %v6496_v58, %v2094_v34  ;;  %v7187_v39 = vpop.f32.mrb[4].mxu0  ;;  %v8746_v20 = vld [vmem:[#allocation3 + $0x90] sm:$0xff]  ;;  %v3430_v34 = vld [vmem:[%s9318_s7] sm:$0xf] }
 0x189   : > { %v2117_v40 = vmax.f32 %v2109_v37, 0.0  ;;  %v2097_v43 = vmul.f32 %v7187_v39, %v6495_v1  ;;  %v2051_v44 = vpop.f32.mrb[5].mxu0  ;;  %v8767_v37 = vld [vmem:[#allocation3 + $0x91] sm:$0xff] }
 0x18a   : > { %v2116_v45 = vmax.f32 %v2108_v38, 0.0  ;;  %v2096_v46 = vmul.f32 %v6495_v1, %v2051_v44  ;;  %v8785_v38 = vld [vmem:[#allocation3 + $0x92] sm:$0xff] }
 0x18b   : > { %2126 = vst.msk [vmem:[#allocation3 + $0x41] sm:$0xff] %vm539_vm3, %v2117_v40  ;;  %v2111_v48 = vadd.f32 %v6496_v58, %v2097_v43  ;;  %v6579_v40 = vld [vmem:[%s9320_s9] ss:$0 sm:$0xff] }
 0x18c   : > { %2125 = vst.msk [vmem:[#allocation3 + $0x31] sm:$0xff] %vm539_vm3, %v2116_v45  ;;  %v2110_v49 = vadd.f32 %v6496_v58, %v2096_v46  ;;  %v7190_v50 = vpop.f32.mrb[6].mxu0 }
 0x18d   : > { %v2119_v51 = vmax.f32 %v2111_v48, 0.0  ;;  %v2099_v52 = vmul.f32 %v7190_v50, %v6495_v1  ;;  %v2061_v54 = vpop.f32.mrb[7].mxu0  ;;  %v6580_v48 = vld [vmem:[%s9321_s10] ss:$0 sm:$0xff] }
 0x18e   : > { %v2118_v55 = vmax.f32 %v2110_v49, 0.0  ;;  %v2098_v56 = vmul.f32 %v6495_v1, %v2061_v54  ;;  %v8583_v61 = vld [vmem:[#allocation3 + $0x21] sm:$0xff] }
 0x18f   : > { %2128 = vst.msk [vmem:[#allocation3 + $0x61] sm:$0xff] %vm539_vm3, %v2119_v51  ;;  %v2113_v57 = vadd.f32 %v6496_v58, %v2099_v52  ;;  %v8578_v59 = vld [vmem:[#allocation3 + $0x11] sm:$0xff]  ;;  %v8622_v14 = vld [vmem:[#allocation3 + $0x20] sm:$0xff] }
 0x190   : > { %2127 = vst.msk [vmem:[#allocation3 + $0x51] sm:$0xff] %vm539_vm3, %v2118_v55  ;;  %v2112_v60 = vadd.f32 %v6496_v58, %v2098_v56  ;;  %7194 = vmatmul.mubr.msk.f32.vlgmr.msra.gmra.mrb[8].mxu0 %vm539_vm3, %v8578_v59  ;;  %v2132_v11 = vld [vmem:[#allocation3 + $0x10] sm:$0xff] }
 0x191   : > { %v2121_v62 = vmax.f32 %v2113_v57, 0.0  ;;  %7196 = vmatprep.mubr.msk.f32.mxu0 %vm539_vm3, %v8583_v61  ;;  %v2408_v19 = vld [vmem:[#allocation3 + $0x12] sm:$0xff] }
 0x192   : > { %v2120_v63 = vmax.f32 %v2112_v60, 0.0  ;;  %v8587_v0 = vld [vmem:[#allocation3 + $0x41] sm:$0xff] }
 0x193   : > { %2130 = vst.msk [vmem:[#allocation3 + $0x81] sm:$0xff] %vm539_vm3, %v2121_v62  ;;  %7199 = vmatprep.mubr.msk.f32.mxu1 %vm539_vm3, %v8587_v0  ;;  %v8592_v5 = vld [vmem:[#allocation3 + $0x31] sm:$0xff]  ;;  %v8630_v16 = vld [vmem:[#allocation3 + $0x40] sm:$0xff] }
 0x194   : > { %2129 = vst.msk [vmem:[#allocation3 + $0x71] sm:$0xff] %vm539_vm3, %v2120_v63  ;;  %7197 = vmatmul.mubr.msk.f32.gmra.mrb[10].mxu0 %vm539_vm3, %v8592_v5  ;;  %v8626_v15 = vld [vmem:[#allocation3 + $0x30] sm:$0xff]  ;;  %v8662_v58 = vld [vmem:[#allocation3 + $0x42] sm:$0xff] }
 0x195   : > { %7333 = vmatprep.mubr.msk.f32.mxu0 %vm539_vm3, %v8560_v36  ;;  %v8658_v1 = vld [vmem:[#allocation3 + $0x32] sm:$0xff] }
 0x196   : > { %v8606_v8 = vld [vmem:[#allocation3 + $0x61] sm:$0xff] }
 0x197   : > { %v8599_v6 = vld [vmem:[#allocation3 + $0x51] sm:$0xff]  ;;  %v8638_v22 = vld [vmem:[#allocation3 + $0x60] sm:$0xff] }
 0x198   : > { %7200 = vmatmul.mubr.msk.f32.vlgmr.msra.gmra.mrb[0].mxu1 %vm539_vm3, %v8599_v6  ;;  %v8634_v21 = vld [vmem:[#allocation3 + $0x50] sm:$0xff]  ;;  %v8670_v24 = vld [vmem:[#allocation3 + $0x62] sm:$0xff] }
 0x199   : > { %7206 = vmatpush3.msra.mxu1 %v2139_v53  ;;  %7202 = vmatprep.mubr.msk.f32.mxu1 %vm539_vm3, %v8606_v8  ;;  %v8654_v53 = vld [vmem:[#allocation3 + $0x22] sm:$0xff]  ;;  %v8666_v12 = vld [vmem:[#allocation3 + $0x52] sm:$0xff] }
 0x19a   : > { %7219 = vmatprep.subr.mxu1 %v2415_v7  ;;  %v2560_v4 = vld [vmem:[#allocation3 + $0x80] sm:$0xff] }
 0x19b   : > { %v8612_v10 = vld [vmem:[#allocation3 + $0x71] sm:$0xff]  ;;  %v2706_v27 = vld [vmem:[#allocation3 + $0x81] sm:$0xff] }
 0x19c   : > { %7203 = vmatmul.mubr.msk.f32.gmra.mrb[2].mxu1 %vm539_vm3, %v8612_v10  ;;  %v8644_v18 = vld [vmem:[#allocation3 + $0x70] sm:$0xff]  ;;  %v2852_v32 = vld [vmem:[#allocation3 + $0x82] sm:$0xff] }
 0x19d   : > { %7207 = vmatprep.mubr.msk.f32.mxu1 %vm539_vm3, %v8610_v9  ;;  %v8674_v3 = vld [vmem:[#allocation3 + $0x72] sm:$0xff] }
 0x1a0   : > { %7208 = vmatmul.mubr.msk.f32.vlgmr.msra.gmra.mrb[4].mxu1 %vm539_vm3, %v2132_v11 }
 0x1a1   : > { %7220 = vmatpush3.msra.mxu1 %v2415_v7  ;;  %7210 = vmatprep.mubr.msk.f32.mxu1 %vm539_vm3, %v8622_v14 }
 0x1a2   : > { %7233 = vmatprep.subr.mxu1 %v2561_v13 }
 0x1a4   : > { %7211 = vmatmul.mubr.msk.f32.gmra.mrb[6].mxu1 %vm539_vm3, %v8626_v15 }
 0x1a5   : > { %7213 = vmatprep.mubr.msk.f32.mxu1 %vm539_vm3, %v8630_v16 }
 0x1a8   : > { %7214 = vmatmul.mubr.msk.f32.gmra.mrb[0].mxu1 %vm539_vm3, %v8634_v21 }
 0x1a9   : > { %7216 = vmatprep.mubr.msk.f32.mxu1 %vm539_vm3, %v8638_v22 }
 0x1ac   : > { %7217 = vmatmul.mubr.msk.f32.gmra.mrb[2].mxu1 %vm539_vm3, %v8644_v18 }
 0x1ad   : > { %7221 = vmatprep.mubr.msk.f32.mxu1 %vm539_vm3, %v8642_v23 }
 0x1b0   : > { %7222 = vmatmul.mubr.msk.f32.vlgmr.msra.gmra.mrb[4].mxu1 %vm539_vm3, %v2408_v19 }
 0x1b1   : > { %7234 = vmatpush3.msra.mxu1 %v2561_v13  ;;  %7224 = vmatprep.mubr.msk.f32.mxu1 %vm539_vm3, %v8654_v53 }
 0x1b2   : > { %7247 = vmatprep.subr.mxu1 %v2707_v31 }
 0x1b4   : > { %7225 = vmatmul.mubr.msk.f32.gmra.mrb[6].mxu1 %vm539_vm3, %v8658_v1 }
 0x1b5   : > { %7227 = vmatprep.mubr.msk.f32.mxu1 %vm539_vm3, %v8662_v58 }
 0x1b8   : > { %7228 = vmatmul.mubr.msk.f32.gmra.mrb[0].mxu1 %vm539_vm3, %v8666_v12 }
 0x1b9   : > { %7230 = vmatprep.mubr.msk.f32.mxu1 %vm539_vm3, %v8670_v24 }
 0x1bc   : > { %7231 = vmatmul.mubr.msk.f32.gmra.mrb[2].mxu1 %vm539_vm3, %v8674_v3 }
 0x1bd   : > { %7235 = vmatprep.mubr.msk.f32.mxu1 %vm539_vm3, %v2132_v11 }
 0x1c0   : > { %7236 = vmatmul.mubr.msk.f32.vlgmr.msra.gmra.mrb[4].mxu1 %vm539_vm3, %v8622_v14 }
 0x1c1   : > { %7248 = vmatpush3.msra.mxu1 %v2707_v31  ;;  %7238 = vmatprep.mubr.msk.f32.mxu1 %vm539_vm3, %v8626_v15 }
 0x1c2   : > { %7261 = vmatprep.subr.mxu1 %v2853_v25 }
 0x1c4   : > { %7239 = vmatmul.mubr.msk.f32.gmra.mrb[6].mxu1 %vm539_vm3, %v8630_v16 }
 0x1c5   : > { %7241 = vmatprep.mubr.msk.f32.mxu1 %vm539_vm3, %v8634_v21 }
 0x1c8   : > { %7242 = vmatmul.mubr.msk.f32.gmra.mrb[0].mxu1 %vm539_vm3, %v8638_v22 }
 0x1c9   : > { %7244 = vmatprep.mubr.msk.f32.mxu1 %vm539_vm3, %v8644_v18 }
 0x1cc   : > { %7245 = vmatmul.mubr.msk.f32.gmra.mrb[2].mxu1 %vm539_vm3, %v2560_v4 }
 0x1cd   : > { %7249 = vmatprep.mubr.msk.f32.mxu1 %vm539_vm3, %v8578_v59 }
 0x1d0   : > { %7250 = vmatmul.mubr.msk.f32.vlgmr.msra.gmra.mrb[4].mxu1 %vm539_vm3, %v8583_v61 }
 0x1d1   : > { %7262 = vmatpush3.msra.mxu1 %v2853_v25  ;;  %7252 = vmatprep.mubr.msk.f32.mxu1 %vm539_vm3, %v8592_v5 }
 0x1d2   : > { %7275 = vmatprep.subr.mxu1 %v3000_v26 }
 0x1d4   : > { %7253 = vmatmul.mubr.msk.f32.gmra.mrb[6].mxu1 %vm539_vm3, %v8587_v0 }
 0x1d5   : > { %7255 = vmatprep.mubr.msk.f32.mxu1 %vm539_vm3, %v8599_v6 }
 0x1d8   : > { %7256 = vmatmul.mubr.msk.f32.gmra.mrb[0].mxu1 %vm539_vm3, %v8606_v8 }
 0x1d9   : > { %7258 = vmatprep.mubr.msk.f32.mxu1 %vm539_vm3, %v8612_v10 }
 0x1dc   : > { %7259 = vmatmul.mubr.msk.f32.gmra.mrb[2].mxu1 %vm539_vm3, %v2706_v27 }
 0x1dd   : > { %7263 = vmatprep.mubr.msk.f32.mxu1 %vm539_vm3, %v2408_v19 }
 0x1e0   : > { %7264 = vmatmul.mubr.msk.f32.vlgmr.msra.gmra.mrb[4].mxu1 %vm539_vm3, %v8654_v53 }
 0x1e1   : > { %7276 = vmatpush3.msra.mxu1 %v3000_v26  ;;  %7266 = vmatprep.mubr.msk.f32.mxu1 %vm539_vm3, %v8658_v1  ;;  %v3910_v26 = vld [vmem:[%s9322_s11 + $0x10] sm:$0xff] }
 0x1e2   : > { %7289 = vmatprep.subr.mxu1 %v3146_v28 }
 0x1e4   : > { %7267 = vmatmul.mubr.msk.f32.gmra.mrb[6].mxu1 %vm539_vm3, %v8662_v58 }
 0x1e5   : > { %7269 = vmatprep.mubr.msk.f32.mxu1 %vm539_vm3, %v8666_v12 }
 0x1e8   : > { %7270 = vmatmul.mubr.msk.f32.gmra.mrb[0].mxu1 %vm539_vm3, %v8670_v24 }
 0x1e9   : > { %7272 = vmatprep.mubr.msk.f32.mxu1 %vm539_vm3, %v8674_v3 }
 0x1ec   : > { %7273 = vmatmul.mubr.msk.f32.gmra.mrb[2].mxu1 %vm539_vm3, %v2852_v32 }
 0x1ed   : > { %7277 = vmatprep.mubr.msk.f32.mxu1 %vm539_vm3, %v8622_v14 }
 0x1f0   : > { %7278 = vmatmul.mubr.msk.f32.vlgmr.msra.gmra.mrb[4].mxu1 %vm539_vm3, %v8626_v15 }
 0x1f1   : > { %7290 = vmatpush3.msra.mxu1 %v3146_v28  ;;  %7280 = vmatprep.mubr.msk.f32.mxu1 %vm539_vm3, %v8630_v16 }
 0x1f2   : > { %7303 = vmatprep.subr.mxu1 %v3292_v33 }
 0x1f4   : > { %7281 = vmatmul.mubr.msk.f32.gmra.mrb[6].mxu1 %vm539_vm3, %v8634_v21 }
 0x1f5   : > { %7283 = vmatprep.mubr.msk.f32.mxu1 %vm539_vm3, %v8638_v22 }
 0x1f8   : > { %7284 = vmatmul.mubr.msk.f32.gmra.mrb[0].mxu1 %vm539_vm3, %v8644_v18 }
 0x1f9   : > { %7286 = vmatprep.mubr.msk.f32.mxu1 %vm539_vm3, %v2560_v4 }
 0x1fc   : > { %7287 = vmatmul.mubr.msk.f32.gmra.mrb[2].mxu1 %vm539_vm3, %v8746_v20 }
 0x1fd   : > { %7291 = vmatprep.mubr.msk.f32.mxu1 %vm539_vm3, %v8583_v61 }
 0x200   : > { %7292 = vmatmul.mubr.msk.f32.vlgmr.msra.gmra.mrb[4].mxu1 %vm539_vm3, %v8592_v5 }
 0x201   : > { %7304 = vmatpush3.msra.mxu1 %v3292_v33  ;;  %7294 = vmatprep.mubr.msk.f32.mxu1 %vm539_vm3, %v8587_v0 }
 0x202   : > { %7317 = vmatprep.subr.msk.mxu1 %vm794_vm0, %v3430_v34 }
 0x204   : > { %7295 = vmatmul.mubr.msk.f32.gmra.mrb[6].mxu1 %vm539_vm3, %v8599_v6 }
 0x205   : > { %7297 = vmatprep.mubr.msk.f32.mxu1 %vm539_vm3, %v8606_v8 }
 0x208   : > { %7298 = vmatmul.mubr.msk.f32.gmra.mrb[0].mxu1 %vm539_vm3, %v8612_v10 }
 0x209   : > { %7300 = vmatprep.mubr.msk.f32.mxu1 %vm539_vm3, %v2706_v27 }
 0x20c   : > { %7301 = vmatmul.mubr.msk.f32.gmra.mrb[2].mxu1 %vm539_vm3, %v8767_v37 }
 0x20d   : > { %7305 = vmatprep.mubr.msk.f32.mxu1 %vm539_vm3, %v8654_v53 }
 0x210   : > { %7306 = vmatmul.mubr.msk.f32.vlgmr.msra.gmra.mrb[4].mxu1 %vm539_vm3, %v8658_v1 }
 0x211   : > { %7318 = vmatpush3.msk.msra.mxu1 %vm794_vm0, %v3430_v34  ;;  %7308 = vmatprep.mubr.msk.f32.mxu1 %vm539_vm3, %v8662_v58 }
 0x214   : > { %7309 = vmatmul.mubr.msk.f32.gmra.mrb[6].mxu1 %vm539_vm3, %v8666_v12 }
 0x215   : > { %7311 = vmatprep.mubr.msk.f32.mxu1 %vm539_vm3, %v8670_v24 }
 0x218   : > { %7312 = vmatmul.mubr.msk.f32.gmra.mrb[0].mxu1 %vm539_vm3, %v8674_v3 }
 0x219   : > { %7314 = vmatprep.mubr.msk.f32.mxu1 %vm539_vm3, %v2852_v32 }
 0x21c   : > { %7315 = vmatmul.mubr.msk.f32.gmra.mrb[2].mxu1 %vm539_vm3, %v8785_v38 }
 0x21d   : > { %7319 = vmatprep.mubr.msk.f32.mxu1 %vm493_vm1, %v8232_v17 }
 0x220   : > { %7320 = vmatmul.mubr.msk.f32.vlgmr.msra.gmra.mrb[4].mxu1 %vm493_vm1, %v8255_v29 }
 0x221   : > { %7322 = vmatprep.mubr.msk.f32.mxu1 %vm493_vm1, %v8258_v30 }
 0x224   : > { %7323 = vmatmul.mubr.msk.f32.gmra.mrb[6].mxu1 %vm493_vm1, %v8273_v2  ;;  %v3643_v2 = vld [vmem:[%s9322_s11 + $0x8] sm:$0xff] }
 0x225   : > { %7325 = vmatprep.mubr.msk.f32.mxu1 %vm493_vm1, %v8276_v35  ;;  %7331 = vmatprep.subr.mxu0 %v3643_v2  ;;  %v3634_v35 = vld [vmem:[%s9322_s11] sm:$0xff] }
 0x226   : > { %7332 = vmatpush3.msra.mxu0 %v3643_v2  ;;  %v4056_v2 = vld [vmem:[%s9322_s11 + $0x18] sm:$0xff] }
 0x227   : > { %7345 = vmatprep.subr.mxu0 %v3634_v35 }
 0x228   : > { %7326 = vmatmul.mubr.msk.f32.gmra.mrb[0].mxu1 %vm493_vm1, %v8284_v41  ;;  %v6569_v41 = vld [vmem:[%s9319_s8] ss:$0 sm:$0xff] }
 0x229   : > { %7328 = vmatprep.mubr.msk.f32.mxu1 %vm493_vm1, %v8287_v42 }
 0x22c   : > { %7329 = vmatmul.mubr.msk.f32.gmra.mrb[2].mxu1 %vm493_vm1, %v8293_v47 }
 0x22d   : > { %7459 = vmatprep.mubr.msk.f32.mxu1 %vm539_vm3, %v8560_v36 }
 0x263   : > { %v7195_v17 = vpop.f32.mrb[8].mxu0 }
 0x264   : > { %v2239_v29 = vpop.f32.mrb[9].mxu0 }
 0x267   : > { %v7198_v30 = vpop.f32.mrb[10].mxu0 }
 0x268   : > { %v2249_v39 = vpop.f32.mrb[11].mxu0  ;;  %v7589_v44 = vadd.f32 %v7198_v30, %v6569_v41  ;;  %v4985_v30 = vld [vmem:[%s9325_s14 + $0x8] sm:$0xff] }
 0x269   : > { %v7591_v46 = vadd.f32 %v6569_v41, %v2249_v39  ;;  %7457 = vmatprep.subr.mxu1 %v4985_v30 }
 0x26a   : > { %7458 = vmatpush3.msra.mxu1 %v4985_v30 }
 0x2f3   : > { %v7321_v42 = vpop.f32.mrb[4].mxu1 }
 0x2f4   : > { %v7585_v47 = vadd.f32 %v7321_v42, %v7195_v17  ;;  %v3531_v36 = vpop.f32.mrb[5].mxu1 }
 0x2f5   : > { %v7587_v43 = vadd.f32 %v3531_v36, %v2239_v29 }
 0x2f6   : > { %v8819_v45 = vadd.f32 %v7585_v47, %v6569_v41 }
 0x2f7   : > { %v8824_v49 = vadd.f32 %v7587_v43, %v6569_v41  ;;  %v7324_v50 = vpop.f32.mrb[6].mxu1 }
 0x2f8   : > { %v3589_v51 = vmul.f32 %v8819_v45, %v6579_v40  ;;  %v8827_v52 = vadd.f32 %v7589_v44, %v7324_v50  ;;  %v3541_v54 = vpop.f32.mrb[7].mxu1  ;;  %v4202_v44 = vld [vmem:[%s9322_s11 + $0x20] sm:$0xff] }
 0x2f9   : > { %v3588_v55 = vmul.f32 %v8824_v49, %v6579_v40  ;;  %v8830_v56 = vadd.f32 %v7591_v46, %v3541_v54 }
 0x2fa   : > { %v3603_v57 = vadd.f32 %v6580_v48, %v3589_v51  ;;  %v3591_v59 = vmul.f32 %v8827_v52, %v6579_v40 }
 0x2fb   : > { %v3602_v60 = vadd.f32 %v6580_v48, %v3588_v55  ;;  %v3590_v61 = vmul.f32 %v8830_v56, %v6579_v40  ;;  %v7327_v62 = vpop.f32.mrb[0].mxu1 }
 0x2fc   : > { %v3611_v63 = vmax.f32 %v3603_v57, 0.0  ;;  %v3605_v0 = vadd.f32 %v6580_v48, %v3591_v59  ;;  %v8834_v5 = vadd.f32 %v7327_v62, %v6569_v41  ;;  %v3551_v6 = vpop.f32.mrb[1].mxu1  ;;  %v4348_v57 = vld [vmem:[%s9322_s11 + $0x28] sm:$0xff]  ;;  %v4640_v62 = vld [vmem:[%s9322_s11 + $0x38] sm:$0xff] }
 0x2fd   : > { %v3610_v7 = vmax.f32 %v3602_v60, 0.0  ;;  %v3604_v8 = vadd.f32 %v6580_v48, %v3590_v61  ;;  %v8836_v10 = vadd.f32 %v6569_v41, %v3551_v6  ;;  %v4494_v60 = vld [vmem:[%s9322_s11 + $0x30] sm:$0xff]  ;;  %v4976_v6 = vld [vmem:[%s9325_s14] sm:$0xff] }
 0x2fe   : > { %3619 = vst.msk [vmem:[#allocation3 + $0x21] sm:$0xff] %vm539_vm3, %v3611_v63  ;;  %v3613_v11 = vmax.f32 %v3605_v0, 0.0  ;;  %v3593_v13 = vmul.f32 %v6579_v40, %v8834_v5  ;;  %v4786_v0 = vld [vmem:[%s9322_s11 + $0x40] sm:$0xff]  ;;  %7471 = vmatprep.subr.mxu1 %v4976_v6 }
 0x2ff   : > { %3618 = vst.msk [vmem:[#allocation3 + $0x11] sm:$0xff] %vm539_vm3, %v3610_v7  ;;  %v3612_v14 = vmax.f32 %v3604_v8, 0.0  ;;  %v3592_v15 = vmul.f32 %v6579_v40, %v8836_v10  ;;  %v7330_v16 = vpop.f32.mrb[2].mxu1  ;;  %v6653_v7 = vld [vmem:[%s9323_s12] ss:$0 sm:$0xff] }
 0x300   : > { %3621 = vst.msk [vmem:[#allocation3 + $0x41] sm:$0xff] %vm539_vm3, %v3613_v11  ;;  %v3607_v21 = vadd.f32 %v6580_v48, %v3593_v13  ;;  %v8843_v22 = vadd.f32 %v7330_v16, %v6569_v41  ;;  %v3561_v18 = vpop.f32.mrb[3].mxu1  ;;  %v6654_v8 = vld [vmem:[%s9324_s13] ss:$0 sm:$0xff] }
 0x301   : > { %3620 = vst.msk [vmem:[#allocation3 + $0x31] sm:$0xff] %vm539_vm3, %v3612_v14  ;;  %v3606_v19 = vadd.f32 %v6580_v48, %v3592_v15  ;;  %v8846_v31 = vadd.f32 %v6569_v41, %v3561_v18 }
 0x302   : > { %v3615_v53 = vmax.f32 %v3607_v21, 0.0  ;;  %v3595_v1 = vmul.f32 %v6579_v40, %v8843_v22 }
 0x303   : > { %v3614_v58 = vmax.f32 %v3606_v19, 0.0  ;;  %v3594_v12 = vmul.f32 %v6579_v40, %v8846_v31 }
 0x304   : > { %3623 = vst.msk [vmem:[#allocation3 + $0x61] sm:$0xff] %vm539_vm3, %v3615_v53  ;;  %v3609_v24 = vadd.f32 %v6580_v48, %v3595_v1 }
 0x305   : > { %3622 = vst.msk [vmem:[#allocation3 + $0x51] sm:$0xff] %vm539_vm3, %v3614_v58  ;;  %v3608_v3 = vadd.f32 %v6580_v48, %v3594_v12  ;;  %v8859_v28 = vld [vmem:[#allocation3 + $0x21] sm:$0xff] }
 0x306   : > { %v3617_v25 = vmax.f32 %v3609_v24, 0.0  ;;  %v8852_v4 = vld [vmem:[#allocation3 + $0x11] sm:$0xff]  ;;  %v8924_v46 = vld [vmem:[#allocation3 + $0x22] sm:$0xff] }
 0x307   : > { %v3616_v27 = vmax.f32 %v3608_v3, 0.0  ;;  %7334 = vmatmul.mubr.msk.f32.vlgmr.msra.gmra.mrb[12].mxu0 %vm539_vm3, %v8852_v4  ;;  %v8869_v33 = vld [vmem:[#allocation3 + $0x41] sm:$0xff]  ;;  %v3627_v39 = vld [vmem:[#allocation3 + $0x10] sm:$0xff] }
 0x308   : > { %3625 = vst.msk [vmem:[#allocation3 + $0x81] sm:$0xff] %vm539_vm3, %v3617_v25  ;;  %7346 = vmatpush3.msra.mxu0 %v3634_v35  ;;  %7336 = vmatprep.mubr.msk.f32.mxu0 %vm539_vm3, %v8859_v28  ;;  %v8865_v32 = vld [vmem:[#allocation3 + $0x31] sm:$0xff]  ;;  %v8894_v35 = vld [vmem:[#allocation3 + $0x20] sm:$0xff] }
 0x309   : > { %3624 = vst.msk [vmem:[#allocation3 + $0x71] sm:$0xff] %vm539_vm3, %v3616_v27  ;;  %7359 = vmatprep.subr.mxu0 %v3910_v26  ;;  %v8898_v41 = vld [vmem:[#allocation3 + $0x30] sm:$0xff]  ;;  %v8902_v42 = vld [vmem:[#allocation3 + $0x40] sm:$0xff] }
 0x30a   : > { %v3903_v43 = vld [vmem:[#allocation3 + $0x12] sm:$0xff]  ;;  %v8932_v50 = vld [vmem:[#allocation3 + $0x42] sm:$0xff] }
 0x30b   : > { %7337 = vmatmul.mubr.msk.f32.gmra.mrb[14].mxu0 %vm539_vm3, %v8865_v32  ;;  %v8877_v17 = vld [vmem:[#allocation3 + $0x61] sm:$0xff]  ;;  %v8928_v48 = vld [vmem:[#allocation3 + $0x32] sm:$0xff] }
 0x30c   : > { %7339 = vmatprep.mubr.msk.f32.mxu0 %vm539_vm3, %v8869_v33  ;;  %v8873_v34 = vld [vmem:[#allocation3 + $0x51] sm:$0xff]  ;;  %v8910_v36 = vld [vmem:[#allocation3 + $0x60] sm:$0xff] }
 0x30d   : > { %v8906_v47 = vld [vmem:[#allocation3 + $0x50] sm:$0xff]  ;;  %v8940_v54 = vld [vmem:[#allocation3 + $0x62] sm:$0xff] }
 0x30e   : > { %v8936_v51 = vld [vmem:[#allocation3 + $0x52] sm:$0xff] }
 0x30f   : > { %7340 = vmatmul.mubr.msk.f32.gmra.mrb[16].mxu0 %vm539_vm3, %v8873_v34  ;;  %v4055_v59 = vld [vmem:[#allocation3 + $0x80] sm:$0xff] }
 0x310   : > { %7342 = vmatprep.mubr.msk.f32.mxu0 %vm539_vm3, %v8877_v17  ;;  %v8881_v29 = vld [vmem:[#allocation3 + $0x71] sm:$0xff]  ;;  %v4201_v61 = vld [vmem:[#allocation3 + $0x81] sm:$0xff] }
 0x311   : > { %v8914_v40 = vld [vmem:[#allocation3 + $0x70] sm:$0xff]  ;;  %v4347_v63 = vld [vmem:[#allocation3 + $0x82] sm:$0xff] }
 0x312   : > { %v8944_v55 = vld [vmem:[#allocation3 + $0x72] sm:$0xff] }
 0x313   : > { %7343 = vmatmul.mubr.msk.f32.gmra.mrb[18].mxu0 %vm539_vm3, %v8881_v29 }
 0x314   : > { %7347 = vmatprep.mubr.msk.f32.mxu0 %vm539_vm3, %v8610_v9 }
 0x317   : > { %7348 = vmatmul.mubr.msk.f32.vlgmr.msra.gmra.mrb[12].mxu0 %vm539_vm3, %v3627_v39 }
 0x318   : > { %7360 = vmatpush3.msra.mxu0 %v3910_v26  ;;  %7350 = vmatprep.mubr.msk.f32.mxu0 %vm539_vm3, %v8894_v35 }
 0x319   : > { %7373 = vmatprep.subr.mxu0 %v4056_v2 }
 0x31b   : > { %7351 = vmatmul.mubr.msk.f32.gmra.mrb[14].mxu0 %vm539_vm3, %v8898_v41 }
 0x31c   : > { %7353 = vmatprep.mubr.msk.f32.mxu0 %vm539_vm3, %v8902_v42 }
 0x31f   : > { %7354 = vmatmul.mubr.msk.f32.gmra.mrb[16].mxu0 %vm539_vm3, %v8906_v47 }
 0x320   : > { %7356 = vmatprep.mubr.msk.f32.mxu0 %vm539_vm3, %v8910_v36 }
 0x323   : > { %7357 = vmatmul.mubr.msk.f32.gmra.mrb[18].mxu0 %vm539_vm3, %v8914_v40 }
 0x324   : > { %7361 = vmatprep.mubr.msk.f32.mxu0 %vm539_vm3, %v8642_v23 }
 0x327   : > { %7362 = vmatmul.mubr.msk.f32.vlgmr.msra.gmra.mrb[12].mxu0 %vm539_vm3, %v3903_v43 }
 0x328   : > { %7374 = vmatpush3.msra.mxu0 %v4056_v2  ;;  %7364 = vmatprep.mubr.msk.f32.mxu0 %vm539_vm3, %v8924_v46 }
 0x329   : > { %7387 = vmatprep.subr.mxu0 %v4202_v44 }
 0x32b   : > { %7365 = vmatmul.mubr.msk.f32.gmra.mrb[14].mxu0 %vm539_vm3, %v8928_v48 }
 0x32c   : > { %7367 = vmatprep.mubr.msk.f32.mxu0 %vm539_vm3, %v8932_v50 }
 0x32f   : > { %7368 = vmatmul.mubr.msk.f32.gmra.mrb[16].mxu0 %vm539_vm3, %v8936_v51 }
 0x330   : > { %7370 = vmatprep.mubr.msk.f32.mxu0 %vm539_vm3, %v8940_v54 }
 0x333   : > { %7371 = vmatmul.mubr.msk.f32.gmra.mrb[18].mxu0 %vm539_vm3, %v8944_v55 }
 0x334   : > { %7375 = vmatprep.mubr.msk.f32.mxu0 %vm539_vm3, %v3627_v39 }
 0x337   : > { %7376 = vmatmul.mubr.msk.f32.vlgmr.msra.gmra.mrb[12].mxu0 %vm539_vm3, %v8894_v35 }
 0x338   : > { %7388 = vmatpush3.msra.mxu0 %v4202_v44  ;;  %7378 = vmatprep.mubr.msk.f32.mxu0 %vm539_vm3, %v8898_v41 }
 0x339   : > { %7401 = vmatprep.subr.mxu0 %v4348_v57 }
 0x33b   : > { %7379 = vmatmul.mubr.msk.f32.gmra.mrb[14].mxu0 %vm539_vm3, %v8902_v42 }
 0x33c   : > { %7381 = vmatprep.mubr.msk.f32.mxu0 %vm539_vm3, %v8906_v47 }
 0x33f   : > { %7382 = vmatmul.mubr.msk.f32.gmra.mrb[16].mxu0 %vm539_vm3, %v8910_v36 }
 0x340   : > { %7384 = vmatprep.mubr.msk.f32.mxu0 %vm539_vm3, %v8914_v40 }
 0x343   : > { %7385 = vmatmul.mubr.msk.f32.gmra.mrb[18].mxu0 %vm539_vm3, %v4055_v59 }
 0x344   : > { %7389 = vmatprep.mubr.msk.f32.mxu0 %vm539_vm3, %v8852_v4 }
 0x347   : > { %7390 = vmatmul.mubr.msk.f32.vlgmr.msra.gmra.mrb[12].mxu0 %vm539_vm3, %v8859_v28 }
 0x348   : > { %7402 = vmatpush3.msra.mxu0 %v4348_v57  ;;  %7392 = vmatprep.mubr.msk.f32.mxu0 %vm539_vm3, %v8865_v32  ;;  %v5398_v57 = vld [vmem:[%s9325_s14 + $0x18] sm:$0xff] }
 0x349   : > { %7415 = vmatprep.subr.mxu0 %v4494_v60 }
 0x34b   : > { %7393 = vmatmul.mubr.msk.f32.gmra.mrb[14].mxu0 %vm539_vm3, %v8869_v33 }
 0x34c   : > { %7395 = vmatprep.mubr.msk.f32.mxu0 %vm539_vm3, %v8873_v34 }
 0x34f   : > { %7396 = vmatmul.mubr.msk.f32.gmra.mrb[16].mxu0 %vm539_vm3, %v8877_v17 }
 0x350   : > { %7398 = vmatprep.mubr.msk.f32.mxu0 %vm539_vm3, %v8881_v29 }
 0x353   : > { %7399 = vmatmul.mubr.msk.f32.gmra.mrb[18].mxu0 %vm539_vm3, %v4201_v61 }
 0x354   : > { %7403 = vmatprep.mubr.msk.f32.mxu0 %vm539_vm3, %v3903_v43 }
 0x357   : > { %7404 = vmatmul.mubr.msk.f32.vlgmr.msra.gmra.mrb[12].mxu0 %vm539_vm3, %v8924_v46 }
 0x358   : > { %7416 = vmatpush3.msra.mxu0 %v4494_v60  ;;  %7406 = vmatprep.mubr.msk.f32.mxu0 %vm539_vm3, %v8928_v48 }
 0x359   : > { %7429 = vmatprep.subr.mxu0 %v4640_v62 }
 0x35b   : > { %7407 = vmatmul.mubr.msk.f32.gmra.mrb[14].mxu0 %vm539_vm3, %v8932_v50 }
 0x35c   : > { %7409 = vmatprep.mubr.msk.f32.mxu0 %vm539_vm3, %v8936_v51 }
 0x35f   : > { %7410 = vmatmul.mubr.msk.f32.gmra.mrb[16].mxu0 %vm539_vm3, %v8940_v54 }
 0x360   : > { %7412 = vmatprep.mubr.msk.f32.mxu0 %vm539_vm3, %v8944_v55 }
 0x363   : > { %7413 = vmatmul.mubr.msk.f32.gmra.mrb[18].mxu0 %vm539_vm3, %v4347_v63 }
 0x364   : > { %7417 = vmatprep.mubr.msk.f32.mxu0 %vm539_vm3, %v8894_v35 }
 0x367   : > { %7418 = vmatmul.mubr.msk.f32.vlgmr.msra.gmra.mrb[12].mxu0 %vm539_vm3, %v8898_v41 }
 0x368   : > { %7430 = vmatpush3.msra.mxu0 %v4640_v62  ;;  %7420 = vmatprep.mubr.msk.f32.mxu0 %vm539_vm3, %v8902_v42 }
 0x369   : > { %7443 = vmatprep.subr.mxu0 %v4786_v0 }
 0x36b   : > { %7421 = vmatmul.mubr.msk.f32.gmra.mrb[14].mxu0 %vm539_vm3, %v8906_v47  ;;  %v5252_v47 = vld [vmem:[%s9325_s14 + $0x10] sm:$0xff] }
 0x36c   : > { %7423 = vmatprep.mubr.msk.f32.mxu0 %vm539_vm3, %v8910_v36 }
 0x36f   : > { %7424 = vmatmul.mubr.msk.f32.gmra.mrb[16].mxu0 %vm539_vm3, %v8914_v40 }
 0x370   : > { %7426 = vmatprep.mubr.msk.f32.mxu0 %vm539_vm3, %v4055_v59 }
 0x373   : > { %7427 = vmatmul.mubr.msk.f32.gmra.mrb[18].mxu0 %vm539_vm3, %v8746_v20 }
 0x374   : > { %7431 = vmatprep.mubr.msk.f32.mxu0 %vm539_vm3, %v8859_v28 }
 0x377   : > { %7432 = vmatmul.mubr.msk.f32.vlgmr.msra.gmra.mrb[12].mxu0 %vm539_vm3, %v8865_v32 }
 0x378   : > { %7444 = vmatpush3.msra.mxu0 %v4786_v0  ;;  %7434 = vmatprep.mubr.msk.f32.mxu0 %vm539_vm3, %v8869_v33 }
 0x37b   : > { %7435 = vmatmul.mubr.msk.f32.gmra.mrb[14].mxu0 %vm539_vm3, %v8873_v34 }
 0x37c   : > { %7437 = vmatprep.mubr.msk.f32.mxu0 %vm539_vm3, %v8877_v17 }
 0x37f   : > { %7438 = vmatmul.mubr.msk.f32.gmra.mrb[16].mxu0 %vm539_vm3, %v8881_v29 }
 0x380   : > { %7440 = vmatprep.mubr.msk.f32.mxu0 %vm539_vm3, %v4201_v61 }
 0x383   : > { %7441 = vmatmul.mubr.msk.f32.gmra.mrb[18].mxu0 %vm539_vm3, %v8767_v37 }
 0x384   : > { %7445 = vmatprep.mubr.msk.f32.mxu0 %vm539_vm3, %v8924_v46 }
 0x387   : > { %7446 = vmatmul.mubr.msk.f32.vlgmr.msra.gmra.mrb[12].mxu0 %vm539_vm3, %v8928_v48 }
 0x388   : > { %7448 = vmatprep.mubr.msk.f32.mxu0 %vm539_vm3, %v8932_v50 }
 0x38b   : > { %7449 = vmatmul.mubr.msk.f32.gmra.mrb[14].mxu0 %vm539_vm3, %v8936_v51 }
 0x38c   : > { %7451 = vmatprep.mubr.msk.f32.mxu0 %vm539_vm3, %v8940_v54 }
 0x38f   : > { %7452 = vmatmul.mubr.msk.f32.gmra.mrb[16].mxu0 %vm539_vm3, %v8944_v55 }
 0x390   : > { %7454 = vmatprep.mubr.msk.f32.mxu0 %vm539_vm3, %v4347_v63 }
 0x393   : > { %7455 = vmatmul.mubr.msk.f32.gmra.mrb[18].mxu0 %vm539_vm3, %v8785_v38 }
 0x45a   : > { %v7447_v11 = vpop.f32.mrb[12].mxu0 }
 0x45b   : > { %v4931_v13 = vmul.f32 %v7447_v11, %v6653_v7  ;;  %v4877_v14 = vpop.f32.mrb[13].mxu0 }
 0x45c   : > { %v4930_v15 = vmul.f32 %v6653_v7, %v4877_v14 }
 0x45d   : > { %v4945_v16 = vadd.f32 %v6654_v8, %v4931_v13 }
 0x45e   : > { %v4944_v21 = vadd.f32 %v6654_v8, %v4930_v15  ;;  %v7450_v18 = vpop.f32.mrb[14].mxu0  ;;  %v5690_v15 = vld [vmem:[%s9325_s14 + $0x28] sm:$0xff] }
 0x45f   : > { %v4953_v19 = vmax.f32 %v4945_v16, 0.0  ;;  %v4933_v53 = vmul.f32 %v7450_v18, %v6653_v7  ;;  %v4887_v1 = vpop.f32.mrb[15].mxu0 }
 0x460   : > { %v4952_v58 = vmax.f32 %v4944_v21, 0.0  ;;  %v4932_v12 = vmul.f32 %v6653_v7, %v4887_v1  ;;  %v5836_v21 = vld [vmem:[%s9325_s14 + $0x30] sm:$0xff]  ;;  %v6128_v1 = vld [vmem:[%s9325_s14 + $0x40] sm:$0xff] }
 0x461   : > { %4961 = vst.msk [vmem:[#allocation3 + $0x21] sm:$0xff] %vm539_vm3, %v4953_v19  ;;  %v4947_v24 = vadd.f32 %v6654_v8, %v4933_v53  ;;  %v5982_v19 = vld [vmem:[%s9325_s14 + $0x38] sm:$0xff] }
 0x462   : > { %4960 = vst.msk [vmem:[#allocation3 + $0x11] sm:$0xff] %vm539_vm3, %v4952_v58  ;;  %v4946_v3 = vadd.f32 %v6654_v8, %v4932_v12  ;;  %v7453_v25 = vpop.f32.mrb[16].mxu0 }
 0x463   : > { %v4955_v4 = vmax.f32 %v4947_v24, 0.0  ;;  %v4935_v26 = vmul.f32 %v7453_v25, %v6653_v7  ;;  %v4897_v27 = vpop.f32.mrb[17].mxu0 }
 0x464   : > { %v4954_v28 = vmax.f32 %v4946_v3, 0.0  ;;  %v4934_v32 = vmul.f32 %v6653_v7, %v4897_v27 }
 0x465   : > { %4963 = vst.msk [vmem:[#allocation3 + $0x41] sm:$0xff] %vm539_vm3, %v4955_v4  ;;  %v4949_v33 = vadd.f32 %v6654_v8, %v4935_v26 }
 0x466   : > { %4962 = vst.msk [vmem:[#allocation3 + $0x31] sm:$0xff] %vm539_vm3, %v4954_v28  ;;  %v4948_v34 = vadd.f32 %v6654_v8, %v4934_v32  ;;  %v7456_v17 = vpop.f32.mrb[18].mxu0 }
 0x467   : > { %v4957_v29 = vmax.f32 %v4949_v33, 0.0  ;;  %v4937_v30 = vmul.f32 %v7456_v17, %v6653_v7  ;;  %v4907_v39 = vpop.f32.mrb[19].mxu0 }
 0x468   : > { %v4956_v2 = vmax.f32 %v4948_v34, 0.0  ;;  %v4936_v35 = vmul.f32 %v6653_v7, %v4907_v39  ;;  %v9070_v40 = vld [vmem:[#allocation3 + $0x21] sm:$0xff] }
 0x469   : > { %4965 = vst.msk [vmem:[#allocation3 + $0x61] sm:$0xff] %vm539_vm3, %v4957_v29  ;;  %v4951_v41 = vadd.f32 %v6654_v8, %v4937_v30  ;;  %v9062_v42 = vld [vmem:[#allocation3 + $0x11] sm:$0xff]  ;;  %v9102_v59 = vld [vmem:[#allocation3 + $0x20] sm:$0xff] }
 0x46a   : > { %4964 = vst.msk [vmem:[#allocation3 + $0x51] sm:$0xff] %vm539_vm3, %v4956_v2  ;;  %v4950_v36 = vadd.f32 %v6654_v8, %v4936_v35  ;;  %7460 = vmatmul.mubr.msk.f32.vlgmr.msra.gmra.mrb[8].mxu1 %vm539_vm3, %v9062_v42  ;;  %v4969_v55 = vld [vmem:[#allocation3 + $0x10] sm:$0xff]  ;;  %v9132_v7 = vld [vmem:[#allocation3 + $0x22] sm:$0xff] }
 0x46b   : > { %v4959_v43 = vmax.f32 %v4951_v41, 0.0  ;;  %7472 = vmatpush3.msra.mxu1 %v4976_v6  ;;  %7462 = vmatprep.mubr.msk.f32.mxu1 %vm539_vm3, %v9070_v40  ;;  %v5245_v0 = vld [vmem:[#allocation3 + $0x12] sm:$0xff]  ;;  %v5544_v6 = vld [vmem:[%s9325_s14 + $0x20] sm:$0xff] }
 0x46c   : > { %v4958_v44 = vmax.f32 %v4950_v36, 0.0  ;;  %7485 = vmatprep.subr.mxu1 %v5252_v47  ;;  %v9080_v48 = vld [vmem:[#allocation3 + $0x41] sm:$0xff] }
 0x46d   : > { %4967 = vst.msk [vmem:[#allocation3 + $0x81] sm:$0xff] %vm539_vm3, %v4959_v43  ;;  %v9075_v46 = vld [vmem:[#allocation3 + $0x31] sm:$0xff] }
 0x46e   : > { %4966 = vst.msk [vmem:[#allocation3 + $0x71] sm:$0xff] %vm539_vm3, %v4958_v44  ;;  %7463 = vmatmul.mubr.msk.f32.gmra.mrb[10].mxu1 %vm539_vm3, %v9075_v46  ;;  %v9106_v60 = vld [vmem:[#allocation3 + $0x30] sm:$0xff] }
 0x46f   : > { %7465 = vmatprep.mubr.msk.f32.mxu1 %vm539_vm3, %v9080_v48  ;;  %v9136_v8 = vld [vmem:[#allocation3 + $0x32] sm:$0xff] }
 0x470   : > { %v9088_v51 = vld [vmem:[#allocation3 + $0x61] sm:$0xff] }
 0x471   : > { %v9084_v50 = vld [vmem:[#allocation3 + $0x51] sm:$0xff]  ;;  %v9118_v62 = vld [vmem:[#allocation3 + $0x60] sm:$0xff] }
 0x472   : > { %7466 = vmatmul.mubr.msk.f32.gmra.mrb[12].mxu1 %vm539_vm3, %v9084_v50  ;;  %v9114_v61 = vld [vmem:[#allocation3 + $0x50] sm:$0xff]  ;;  %v9148_v13 = vld [vmem:[#allocation3 + $0x62] sm:$0xff] }
 0x473   : > { %7468 = vmatprep.mubr.msk.f32.mxu1 %vm539_vm3, %v9088_v51  ;;  %v9144_v11 = vld [vmem:[#allocation3 + $0x52] sm:$0xff] }
 0x474   : > { %v5397_v16 = vld [vmem:[#allocation3 + $0x80] sm:$0xff] }
 0x475   : > { %v9092_v54 = vld [vmem:[#allocation3 + $0x71] sm:$0xff]  ;;  %v5543_v18 = vld [vmem:[#allocation3 + $0x81] sm:$0xff] }
 0x476   : > { %7469 = vmatmul.mubr.msk.f32.gmra.mrb[14].mxu1 %vm539_vm3, %v9092_v54  ;;  %v9122_v63 = vld [vmem:[#allocation3 + $0x70] sm:$0xff]  ;;  %v5689_v53 = vld [vmem:[#allocation3 + $0x82] sm:$0xff] }
 0x477   : > { %7473 = vmatprep.mubr.msk.f32.mxu1 %vm539_vm3, %v8610_v9  ;;  %v9110_v9 = vld [vmem:[#allocation3 + $0x40] sm:$0xff]  ;;  %v9152_v14 = vld [vmem:[#allocation3 + $0x72] sm:$0xff] }
 0x47a   : > { %7474 = vmatmul.mubr.msk.f32.vlgmr.msra.gmra.mrb[8].mxu1 %vm539_vm3, %v4969_v55 }
 0x47b   : > { %7486 = vmatpush3.msra.mxu1 %v5252_v47  ;;  %7476 = vmatprep.mubr.msk.f32.mxu1 %vm539_vm3, %v9102_v59 }
 0x47c   : > { %7499 = vmatprep.subr.mxu1 %v5398_v57 }
 0x47e   : > { %7477 = vmatmul.mubr.msk.f32.gmra.mrb[10].mxu1 %vm539_vm3, %v9106_v60 }
 0x47f   : > { %7479 = vmatprep.mubr.msk.f32.mxu1 %vm539_vm3, %v9110_v9 }
 0x482   : > { %7480 = vmatmul.mubr.msk.f32.gmra.mrb[12].mxu1 %vm539_vm3, %v9114_v61 }
 0x483   : > { %7482 = vmatprep.mubr.msk.f32.mxu1 %vm539_vm3, %v9118_v62 }
 0x486   : > { %7483 = vmatmul.mubr.msk.f32.gmra.mrb[14].mxu1 %vm539_vm3, %v9122_v63 }
 0x487   : > { %7487 = vmatprep.mubr.msk.f32.mxu1 %vm539_vm3, %v8642_v23  ;;  %v9140_v23 = vld [vmem:[#allocation3 + $0x42] sm:$0xff] }
 0x48a   : > { %7488 = vmatmul.mubr.msk.f32.vlgmr.msra.gmra.mrb[8].mxu1 %vm539_vm3, %v5245_v0 }
 0x48b   : > { %7500 = vmatpush3.msra.mxu1 %v5398_v57  ;;  %7490 = vmatprep.mubr.msk.f32.mxu1 %vm539_vm3, %v9132_v7 }
 0x48c   : > { %7513 = vmatprep.subr.mxu1 %v5544_v6 }
 0x48e   : > { %7491 = vmatmul.mubr.msk.f32.gmra.mrb[10].mxu1 %vm539_vm3, %v9136_v8 }
 0x48f   : > { %7493 = vmatprep.mubr.msk.f32.mxu1 %vm539_vm3, %v9140_v23 }
 0x492   : > { %7494 = vmatmul.mubr.msk.f32.gmra.mrb[12].mxu1 %vm539_vm3, %v9144_v11 }
 0x493   : > { %7496 = vmatprep.mubr.msk.f32.mxu1 %vm539_vm3, %v9148_v13 }
 0x496   : > { %7497 = vmatmul.mubr.msk.f32.gmra.mrb[14].mxu1 %vm539_vm3, %v9152_v14 }
 0x497   : > { %7501 = vmatprep.mubr.msk.f32.mxu1 %vm539_vm3, %v4969_v55 }
 0x49a   : > { %7502 = vmatmul.mubr.msk.f32.vlgmr.msra.gmra.mrb[8].mxu1 %vm539_vm3, %v9102_v59 }
 0x49b   : > { %7514 = vmatpush3.msra.mxu1 %v5544_v6  ;;  %7504 = vmatprep.mubr.msk.f32.mxu1 %vm539_vm3, %v9106_v60 }
 0x49c   : > { %7527 = vmatprep.subr.mxu1 %v5690_v15 }
 0x49e   : > { %7505 = vmatmul.mubr.msk.f32.gmra.mrb[10].mxu1 %vm539_vm3, %v9110_v9 }
 0x49f   : > { %7507 = vmatprep.mubr.msk.f32.mxu1 %vm539_vm3, %v9114_v61 }
 0x4a2   : > { %7508 = vmatmul.mubr.msk.f32.gmra.mrb[12].mxu1 %vm539_vm3, %v9118_v62 }
 0x4a3   : > { %7510 = vmatprep.mubr.msk.f32.mxu1 %vm539_vm3, %v9122_v63 }
 0x4a6   : > { %7511 = vmatmul.mubr.msk.f32.gmra.mrb[14].mxu1 %vm539_vm3, %v5397_v16 }
 0x4a7   : > { %7515 = vmatprep.mubr.msk.f32.mxu1 %vm539_vm3, %v9062_v42 }
 0x4aa   : > { %7516 = vmatmul.mubr.msk.f32.vlgmr.msra.gmra.mrb[8].mxu1 %vm539_vm3, %v9070_v40 }
 0x4ab   : > { %7528 = vmatpush3.msra.mxu1 %v5690_v15  ;;  %7518 = vmatprep.mubr.msk.f32.mxu1 %vm539_vm3, %v9075_v46 }
 0x4ac   : > { %7541 = vmatprep.subr.mxu1 %v5836_v21 }
 0x4ae   : > { %7519 = vmatmul.mubr.msk.f32.gmra.mrb[10].mxu1 %vm539_vm3, %v9080_v48 }
 0x4af   : > { %7521 = vmatprep.mubr.msk.f32.mxu1 %vm539_vm3, %v9084_v50 }
 0x4b2   : > { %7522 = vmatmul.mubr.msk.f32.gmra.mrb[12].mxu1 %vm539_vm3, %v9088_v51 }
 0x4b3   : > { %7524 = vmatprep.mubr.msk.f32.mxu1 %vm539_vm3, %v9092_v54 }
 0x4b6   : > { %7525 = vmatmul.mubr.msk.f32.gmra.mrb[14].mxu1 %vm539_vm3, %v5543_v18 }
 0x4b7   : > { %7529 = vmatprep.mubr.msk.f32.mxu1 %vm539_vm3, %v5245_v0 }
 0x4ba   : > { %7530 = vmatmul.mubr.msk.f32.vlgmr.msra.gmra.mrb[8].mxu1 %vm539_vm3, %v9132_v7 }
 0x4bb   : > { %7542 = vmatpush3.msra.mxu1 %v5836_v21  ;;  %7532 = vmatprep.mubr.msk.f32.mxu1 %vm539_vm3, %v9136_v8 }
 0x4bc   : > { %7555 = vmatprep.subr.mxu1 %v5982_v19 }
 0x4be   : > { %7533 = vmatmul.mubr.msk.f32.gmra.mrb[10].mxu1 %vm539_vm3, %v9140_v23 }
 0x4bf   : > { %7535 = vmatprep.mubr.msk.f32.mxu1 %vm539_vm3, %v9144_v11 }
 0x4c2   : > { %7536 = vmatmul.mubr.msk.f32.gmra.mrb[12].mxu1 %vm539_vm3, %v9148_v13 }
 0x4c3   : > { %7538 = vmatprep.mubr.msk.f32.mxu1 %vm539_vm3, %v9152_v14 }
 0x4c6   : > { %7539 = vmatmul.mubr.msk.f32.gmra.mrb[14].mxu1 %vm539_vm3, %v5689_v53 }
 0x4c7   : > { %7543 = vmatprep.mubr.msk.f32.mxu1 %vm539_vm3, %v9102_v59 }
 0x4ca   : > { %7544 = vmatmul.mubr.msk.f32.vlgmr.msra.gmra.mrb[8].mxu1 %vm539_vm3, %v9106_v60 }
 0x4cb   : > { %7556 = vmatpush3.msra.mxu1 %v5982_v19  ;;  %7546 = vmatprep.mubr.msk.f32.mxu1 %vm539_vm3, %v9110_v9 }
 0x4cc   : > { %7569 = vmatprep.subr.mxu1 %v6128_v1 }
 0x4ce   : > { %7547 = vmatmul.mubr.msk.f32.gmra.mrb[10].mxu1 %vm539_vm3, %v9114_v61 }
 0x4cf   : > { %7549 = vmatprep.mubr.msk.f32.mxu1 %vm539_vm3, %v9118_v62 }
 0x4d2   : > { %7550 = vmatmul.mubr.msk.f32.gmra.mrb[12].mxu1 %vm539_vm3, %v9122_v63 }
 0x4d3   : > { %7552 = vmatprep.mubr.msk.f32.mxu1 %vm539_vm3, %v5397_v16 }
 0x4d6   : > { %7553 = vmatmul.mubr.msk.f32.gmra.mrb[14].mxu1 %vm539_vm3, %v8746_v20 }
 0x4d7   : > { %7557 = vmatprep.mubr.msk.f32.mxu1 %vm539_vm3, %v9070_v40 }
 0x4da   : > { %7558 = vmatmul.mubr.msk.f32.vlgmr.msra.gmra.mrb[8].mxu1 %vm539_vm3, %v9075_v46 }
 0x4db   : > { %7570 = vmatpush3.msra.mxu1 %v6128_v1  ;;  %7560 = vmatprep.mubr.msk.f32.mxu1 %vm539_vm3, %v9080_v48 }
 0x4de   : > { %7561 = vmatmul.mubr.msk.f32.gmra.mrb[10].mxu1 %vm539_vm3, %v9084_v50 }
 0x4df   : > { %7563 = vmatprep.mubr.msk.f32.mxu1 %vm539_vm3, %v9088_v51 }
 0x4e2   : > { %7564 = vmatmul.mubr.msk.f32.gmra.mrb[12].mxu1 %vm539_vm3, %v9092_v54 }
 0x4e3   : > { %7566 = vmatprep.mubr.msk.f32.mxu1 %vm539_vm3, %v5543_v18 }
 0x4e6   : > { %7567 = vmatmul.mubr.msk.f32.gmra.mrb[14].mxu1 %vm539_vm3, %v8767_v37 }
 0x4e7   : > { %7571 = vmatprep.mubr.msk.f32.mxu1 %vm539_vm3, %v9132_v7 }
 0x4ea   : > { %7572 = vmatmul.mubr.msk.f32.vlgmr.msra.gmra.mrb[8].mxu1 %vm539_vm3, %v9136_v8 }
 0x4eb   : > { %7574 = vmatprep.mubr.msk.f32.mxu1 %vm539_vm3, %v9140_v23 }
 0x4ee   : > { %7575 = vmatmul.mubr.msk.f32.gmra.mrb[10].mxu1 %vm539_vm3, %v9144_v11 }
 0x4ef   : > { %7577 = vmatprep.mubr.msk.f32.mxu1 %vm539_vm3, %v9148_v13 }
 0x4f2   : > { %7578 = vmatmul.mubr.msk.f32.gmra.mrb[12].mxu1 %vm539_vm3, %v9152_v14 }
 0x4f3   : > { %7580 = vmatprep.mubr.msk.f32.mxu1 %vm539_vm3, %v5689_v53 }
 0x4f6   : > { %7581 = vmatmul.mubr.msk.f32.gmra.mrb[14].mxu1 %vm539_vm3, %v8785_v38 }
 0x5bd   : > { %v7573_v20 = vpop.f32.mrb[8].mxu1 }
 0x5be   : > { %v6219_v37 = vpop.f32.mrb[9].mxu1  ;;  %v6267_v3 = vadd.f32 %v8819_v45, %v7573_v20 }
 0x5bf   : > { %v6266_v58 = vadd.f32 %v8824_v49, %v6219_v37 }
 0x5c1   : > { %6274 = vxpose.xlu0.b32.start [1/8] (short) (narrow) %v6266_v58, 8  ;;  %v7576_v12 = vpop.f32.mrb[10].mxu1 }
 0x5c2   : > { %v6229_v24 = vpop.f32.mrb[11].mxu1  ;;  %v6269_v38 = vadd.f32 %v8827_v52, %v7576_v12 }
 0x5c3   : > { %v6268_v26 = vadd.f32 %v8830_v56, %v6229_v24 }
 0x5c5   : > { %6275 = vxpose.xlu0.b32.cont [2/8] (short) (narrow) %v6267_v3, 8  ;;  %v7579_v25 = vpop.f32.mrb[12].mxu1 }
 0x5c6   : > { %v6239_v4 = vpop.f32.mrb[13].mxu1  ;;  %v6271_v32 = vadd.f32 %v7579_v25, %v8834_v5 }
 0x5c7   : > { %v6270_v49 = vadd.f32 %v6239_v4, %v8836_v10 }
 0x5c9   : > { %6276 = vxpose.xlu0.b32.cont [3/8] (short) (narrow) %v6268_v26, 8  ;;  %v7582_v27 = vpop.f32.mrb[14].mxu1 }
 0x5ca   : > { %v6249_v28 = vpop.f32.mrb[15].mxu1  ;;  %v6273_v33 = vadd.f32 %v7582_v27, %v8843_v22 }
 0x5cb   : > { %v6272_v45 = vadd.f32 %v6249_v28, %v8846_v31 }
 0x5cd   : > { %6277 = vxpose.xlu0.b32.cont [4/8] (short) (narrow) %v6269_v38, 8 }
 0x5d1   : > { %6278 = vxpose.xlu0.b32.cont [5/8] (short) (narrow) %v6270_v49, 8 }
 0x5d5   : > { %6279 = vxpose.xlu0.b32.cont [6/8] (short) (narrow) %v6271_v32, 8 }
 0x5d9   : > { %6280 = vxpose.xlu0.b32.cont [7/8] (short) (narrow) %v6272_v45, 8 }
 0x5dd   : > { %6281 = vxpose.xlu0.b32.end [8/8] (short) (narrow) %v6273_v33, 8 }
 0x641   : > { %v6290_v52 = vpop.trf.xlu0 }
 0x642   : > { %6307 = vst.msk [vmem:[%s487_s16] sm:$0xff] %vm6306_vm6, %v6290_v52 }
 0x643   : > { %7910 = shalt.err (!%p7907_p3)
}
 0x644   : > { %s7911_s25 = scalar_lea.hbm %s9269_s24, 128  ;;  %s7915_s23 = scalar_lea.hbm %s9326_s15, 256 }
 0x645   : > { %p7912_p4 = scmp.ne.s32.totalorder %s9269_s24, %s7911_s25  ;;  %p7916_p9 = scmp.lt.u32.totalorder %s9269_s24, %s9326_s15 }
 0x646   : > { %p7917_p10 = scmp.lt.u32.totalorder %s7915_s23, %s7911_s25  ;;  %p7919_p12 = scmp.lt.u32.totalorder %s7911_s25, %s9269_s24 }
 0x647   : > { %p7913_p7 = pnand %p7912_p4, %p8081_p5 }
 0x648   : > { %p7918_p11 = por %p7917_p10, %p7916_p9 }
 0x649   : > { %p7914_p8 = pneg %p7913_p7 }
 0x64a   : > { %p7920_p13 = por %p7919_p12, %p7918_p11 }
 0x64c   : > { %p7921_p0 = pnand %p7920_p13, %p7914_p8 }
 0x64e   : > { %7924 = shalt.err (!%p7921_p0)
}
 0x64f   : > { %7857 = dma.vmem_to_hbm [thread:$0]  (%p8081_p5), %s9271_s17, 128, %s9269_s24, %s6309_s27  }
 0x650 PF: > { %p7863_p1 = scmp.ge.s32.totalorder %s7959_s21, 2  ;;  %s6334_s0 = sand.u32 1, %s7947_s18  }
 0x651   : > { %s6335_s1 = scalar_lea.sflag [#allocation5], %s6334_s0 }
 0x652   : > { %p7860_p2 = pnand %p7863_p1, %p8085_p6 }
 0x654   : > { %7942 = dma.done.wait (!%p7860_p2), %s6335_s1, 128  }
 0x655   : > { %7944 = vsyncadd (!%p7860_p2), %s6335_s1, 4294967168  ;;  %s9339_s21 = sld [smem:[#allocation8_spill]]  ;;  %s9340_s26 = sld [smem:[#allocation7_spill]] }
 0x656   : > { %s9341_s20 = sld [smem:[#allocation9_spill]]  ;;  %s9342_s18 = smov %s7951_s19 }
 0x65b   : > { %p25_p3 = scmp.ge.s32.totalorder %s9339_s21, 4   ;;  %s9343_s19 = smov %s9340_s26 }
 0x65d   :  { %27 = sbr.rel (!%p25_p3) target bundleno = 6 (0x6), region = 127 }
 0x664   :  { %6340 = vsyncpa [#allocation5], 1 }
 0x665   :  { %6342 = vsyncpa [#allocation5 + $0x1], 1 }

</bundles_post_ra>
